<compile_context>
chip_gen: v6e
topology: v6e:2x2x1
jax: 0.10.0
libtpu: 0.0.40
codegen_flags: <defaults>
</compile_context>

<pallas_src>
import functools

import numpy as np
import jax
import jax.numpy as jnp
from jax.experimental import pallas as pl
from jax.experimental.pallas import tpu as pltpu

BN_EPS = 1e-5  # torch.nn.BatchNorm1d default eps


def _ttbn_kernel(ib0_ref, xb_ref, w0_ref, wmid_ref, wlast_ref, bn_ref,
                 pool_ref, out_ref, *, length, in_bond, channel, m):
    """Whole TTBN forward in one invocation.

    Refs (all fully resident in VMEM):
      ib0_ref   : (M, in_bond)                      site-0 raw inputs
      xb_ref    : (length-1, in_bond, M, C*H)       sites 1..L-1 inputs,
                                                    pre-broadcast across lanes
      w0_ref    : (in_bond, C*H)                    site-0 weight
      wmid_ref  : (length-2, in_bond, C*H, C*H)     block-diag middle weights
      wlast_ref : (in_bond, C*H, C*out)             block-diag last weight
      bn_ref    : (2, C*H)    row 0 = gamma, row 1 = beta (tiled over channel)
      pool_ref  : (C*H, C*H)  channel pooling:  P[(c,h),(c',h')] = (h == h')
      out_ref   : (M, C*out)
    The bond state lives as y[M, C*H] (lane axis = channel*hidden).
    """
    inv_cnt = 1.0 / float(m * channel)

    # Hoist loop-invariant loads out of the site loop.
    gamma = bn_ref[0:1, :]
    beta = bn_ref[1:2, :]
    pool = pool_ref[...]

    # ---- site 0:  y[m, c*H + h] = sum_d x0[m, d] * w0[d, c*H + h] ----------
    y = jnp.dot(ib0_ref[...], w0_ref[...], preferred_element_type=jnp.float32)

    # ---- middle sites: bond contraction (MXU) + BatchNorm1d(hidden) --------
    # Statically unrolled: `length` is small here.  For large configs switch
    # to lax.fori_loop with dynamic wmid_ref[i] indexing to bound code size.
    for i in range(1, length - 1):
        # x columns are pre-broadcast across the C*H lane axis on the host, so
        # this is a pure VPU multiply feeding the MXU -- no in-kernel
        # cross-lane broadcasts.
        y_new = jnp.dot(xb_ref[i - 1, 0] * y, wmid_ref[i - 1, 0],
                        preferred_element_type=jnp.float32)
        for d in range(1, in_bond):
            y_new = y_new + jnp.dot(xb_ref[i - 1, d] * y, wmid_ref[i - 1, d],
                                    preferred_element_type=jnp.float32)

        # BatchNorm1d over the hidden features, training-mode batch stats,
        # pooled over the M*channel rows:  one sublane (axis-0) reduce, then
        # pool + broadcast across the `channel` lane blocks with one tiny
        # matmul against P (stays on the MXU, no reshapes / relayouts).
        col_sum = jnp.sum(y_new, axis=0, keepdims=True)               # (1, C*H)
        mean = jnp.dot(col_sum, pool,
                       preferred_element_type=jnp.float32) * inv_cnt  # (1, C*H)
        diff = y_new - mean
        sq_sum = jnp.sum(diff * diff, axis=0, keepdims=True)
        var = jnp.dot(sq_sum, pool,
                      preferred_element_type=jnp.float32) * inv_cnt
        y = diff * jax.lax.rsqrt(var + BN_EPS) * gamma + beta

    # ---- last site: project the bond onto output_dim (no BatchNorm) --------
    out = jnp.dot(xb_ref[length - 2, 0] * y, wlast_ref[0],
                  preferred_element_type=jnp.float32)
    for d in range(1, in_bond):
        out = out + jnp.dot(xb_ref[length - 2, d] * y, wlast_ref[d],
                            preferred_element_type=jnp.float32)
    # Output is only M x (channel*output_dim) elements; a >=128-lane-dense
    # output layout is unreachable at this size, so one masked store is fine.
    out_ref[...] = out


def _prepare(x, params, *, lengthX, lengthY, kernel_size, in_bond, hidden_bond,
             output_dim, channel):
    """Host-side glue: sliding-window InputBucket + weight re-layout."""
    n = x.shape[0]
    length = lengthX * lengthY
    windows = []
    for k in range(lengthX - kernel_size + 1):
        for l in range(lengthY - kernel_size + 1):
            windows.append(
                x[:, :, k:k + kernel_size, l:l + kernel_size].reshape(
                    n, in_bond, kernel_size * kernel_size))
    ib = jnp.stack(windows, axis=3)                  # (N, in_bond, ks*ks, B)
    b = ib.shape[3]
    # The torch code only works when ks*ks == lengthX*lengthY, forcing B == 1.
    assert kernel_size * kernel_size == length and b == 1, (
        "TTBN.forward is only self-consistent for kernel_size == lengthX == lengthY")
    m = n * b
    c, h, d, o = channel, hidden_bond, in_bond, output_dim
    ch = c * h

    # Per-site inputs, site-major: (length, M, in_bond).
    ib_k = jnp.transpose(ib, (2, 0, 3, 1)).reshape(length, m, d).astype(jnp.float32)
    ib0_k = ib_k[0]                                             # (M, D)
    # Sites 1..length-1, pre-broadcast across the C*H lane axis:
    #   xb[i, d, m, :] = x[m, site i+1, d]
    xb_k = jnp.broadcast_to(
        jnp.transpose(ib_k[1:], (0, 2, 1))[..., None],          # (L-1, D, M, 1)
        (length - 1, d, m, ch)).astype(jnp.float32)

    eye_c = jnp.eye(c, dtype=jnp.float32)

    # torch w0 (d, h, c)  ->  W0[d, c*H + h] = w0[d, h, c]
    w0_k = jnp.transpose(params["w0"], (0, 2, 1)).reshape(d, ch).astype(jnp.float32)

    # torch wmid (S, h_in, d, h_out, c) -> block-diagonal over channel:
    #   Wmid[s, d, c*H + hin, c'*H + hout] = wmid[s, hin, d, hout, c] * (c == c')
    wm = jnp.transpose(params["wmid"], (0, 2, 4, 1, 3))         # (S, d, c, Hin, Hout)
    wmid_k = (wm[:, :, :, :, None, :] *
              eye_c[None, None, :, None, :, None]).reshape(
                  length - 2, d, ch, ch).astype(jnp.float32)

    # torch wlast (h, d, o, c) -> Wlast[d, c*H + h, c'*O + o] = wlast[h, d, o, c]*(c==c')
    wl = jnp.transpose(params["wlast"], (1, 3, 0, 2))           # (d, c, H, O)
    wlast_k = (wl[:, :, :, None, :] *
               eye_c[None, :, None, :, None]).reshape(d, ch, c * o).astype(jnp.float32)

    # BN affine params tiled to the (c, h) lane layout, packed into one operand.
    bn_k = jnp.stack([jnp.tile(params["gamma"].astype(jnp.float32), c),
                      jnp.tile(params["beta"].astype(jnp.float32), c)],
                     axis=0).reshape(2, ch)

    # Channel-pooling matrix: (row @ pool)[c'*H + h'] = sum_c row[c*H + h'].
    pool = jnp.tile(jnp.eye(h, dtype=jnp.float32), (c, c))      # (C*H, C*H)

    return ib0_k, xb_k, w0_k, wmid_k, wlast_k, bn_k, pool, n, b, m


def ttbn_forward(x, params, *, lengthX, lengthY, kernel_size, in_bond,
                 hidden_bond, output_dim, channel):
    length = lengthX * lengthY
    (ib0_k, xb_k, w0_k, wmid_k, wlast_k, bn_k, pool, n, b, m) = _prepare(
        x, params, lengthX=lengthX, lengthY=lengthY, kernel_size=kernel_size,
        in_bond=in_bond, hidden_bond=hidden_bond, output_dim=output_dim,
        channel=channel)

    kern = functools.partial(_ttbn_kernel, length=length, in_bond=in_bond,
                             channel=channel, m=m)

    vmem_spec = pl.BlockSpec(memory_space=pltpu.MemorySpace.VMEM)
    out_flat = pl.pallas_call(
        kern,
        out_shape=jax.ShapeDtypeStruct((m, channel * output_dim), jnp.float32),
        # Single invocation, no grid: everything fits comfortably in VMEM at
        # this size.  For large configs, stream wmid with pltpu.emit_pipeline
        # and/or add a parallel batch grid axis (with a BN cross-tile combine).
        in_specs=[vmem_spec] * 7,
        out_specs=vmem_spec,
    )(ib0_k, xb_k, w0_k, wmid_k, wlast_k, bn_k, pool)

    # torch output layout: (N, B, channel, output_dim)
    return out_flat.reshape(n, b, channel, output_dim)


def ttbn_ref(x, params, *, lengthX, lengthY, kernel_size, in_bond, hidden_bond,
             output_dim, channel):
    """Plain-JAX reference mirroring the torch forward (torch-layout params)."""
    n = x.shape[0]
    length = lengthX * lengthY
    windows = []
    for k in range(lengthX - kernel_size + 1):
        for l in range(lengthY - kernel_size + 1):
            windows.append(
                x[:, :, k:k + kernel_size, l:l + kernel_size].reshape(
                    n, in_bond, kernel_size * kernel_size))
    ib = jnp.stack(windows, axis=3)                  # (N, in_bond, ks*ks, B)
    b = ib.shape[3]
    assert b == 1
    hp = jax.lax.Precision.HIGHEST
    gamma = params["gamma"].astype(jnp.float32)
    beta = params["beta"].astype(jnp.float32)

    # site 0: tensordot dims=([1],[0]), then permute(0,1,3,2) -> (n, b, c, h)
    y = jnp.einsum('ndb,dhc->nbch', ib[:, :, 0, :], params["w0"], precision=hp)
    for i in range(1, length - 1):
        cw = jnp.einsum('ndb,hdlc->nbchl', ib[:, :, i, :],
                        params["wmid"][i - 1], precision=hp)
        y_new = jnp.einsum('nbch,nbchl->ncbl', y, cw, precision=hp)
        flat = y_new.reshape(-1, hidden_bond)
        mean = jnp.mean(flat, axis=0, keepdims=True)
        var = jnp.mean((flat - mean) ** 2, axis=0, keepdims=True)
        yhat = (flat - mean) * jax.lax.rsqrt(var + BN_EPS) * gamma + beta
        y = yhat.reshape(n, b, channel, hidden_bond)   # valid because b == 1
    cw = jnp.einsum('ndb,hdoc->nbcho', ib[:, :, length - 1, :],
                    params["wlast"], precision=hp)
    return jnp.einsum('nbch,nbcho->nbco', y, cw, precision=hp)


if __name__ == "__main__":
    # Small config consistent with the module (kernel_size == lengthX == lengthY).
    cfg = dict(lengthX=4, lengthY=4, kernel_size=4, in_bond=2, hidden_bond=8,
               output_dim=2, channel=3)
    std = 0.01
    N = 8
    length = cfg["lengthX"] * cfg["lengthY"]

    key = jax.random.PRNGKey(0)
    kx, k0, km, kl = jax.random.split(key, 4)
    x = jax.random.uniform(
        kx, (N, cfg["in_bond"], cfg["lengthX"], cfg["lengthY"]), dtype=jnp.float32)
    params = {
        # torch: normal(0, std) with the shapes from TTBN.__init__
        "w0": std * jax.random.normal(
            k0, (cfg["in_bond"], cfg["hidden_bond"], cfg["channel"]), jnp.float32),
        "wmid": std * jax.random.normal(
            km, (length - 2, cfg["hidden_bond"], cfg["in_bond"],
                 cfg["hidden_bond"], cfg["channel"]), jnp.float32),
        "wlast": std * jax.random.normal(
            kl, (cfg["hidden_bond"], cfg["in_bond"], cfg["output_dim"],
                 cfg["channel"]), jnp.float32),
        # BatchNorm1d default affine init
        "gamma": jnp.ones((cfg["hidden_bond"],), jnp.float32),
        "beta": jnp.zeros((cfg["hidden_bond"],), jnp.float32),
    }

    fwd = jax.jit(functools.partial(ttbn_forward, **cfg))
    out = jax.block_until_ready(fwd(x, params))

    ref = ttbn_ref(x, params, **cfg)
    np.testing.assert_allclose(np.asarray(out), np.asarray(ref),
                               rtol=2e-3, atol=1e-5)
    assert out.shape == (N, 1, cfg["channel"], cfg["output_dim"])
    print("KERNEL_OK")
</pallas_src>

<mosaic_0001>
module attributes {stable_mosaic.version = 11 : i64} {
  func.func @_ttbn_kernel(%arg0: memref<8x2xf32, #tpu.memory_space<vmem>>, %arg1: memref<15x2x8x24xf32, #tpu.memory_space<vmem>>, %arg2: memref<2x24xf32, #tpu.memory_space<vmem>>, %arg3: memref<14x2x24x24xf32, #tpu.memory_space<vmem>>, %arg4: memref<2x24x6xf32, #tpu.memory_space<vmem>>, %arg5: memref<2x24xf32, #tpu.memory_space<vmem>>, %arg6: memref<24x24xf32, #tpu.memory_space<vmem>>, %arg7: memref<8x6xf32, #tpu.memory_space<vmem>>) attributes {dimension_semantics = [], scalar_prefetch = 0 : i64, scratch_operands = 0 : i64, tpu.core_type = #tpu.core_type<tc>} {
    %c0 = arith.constant 0 : index
    %c0_0 = arith.constant 0 : index
    %0 = vector.load %arg5[%c0, %c0_0] : memref<2x24xf32, #tpu.memory_space<vmem>>, vector<1x24xf32>
    %c1 = arith.constant 1 : index
    %c0_1 = arith.constant 0 : index
    %1 = vector.load %arg5[%c1, %c0_1] : memref<2x24xf32, #tpu.memory_space<vmem>>, vector<1x24xf32>
    %c0_2 = arith.constant 0 : index
    %c0_3 = arith.constant 0 : index
    %2 = vector.load %arg6[%c0_2, %c0_3] : memref<24x24xf32, #tpu.memory_space<vmem>>, vector<24x24xf32>
    %c0_4 = arith.constant 0 : index
    %c0_5 = arith.constant 0 : index
    %3 = vector.load %arg0[%c0_4, %c0_5] : memref<8x2xf32, #tpu.memory_space<vmem>>, vector<8x2xf32>
    %c0_6 = arith.constant 0 : index
    %c0_7 = arith.constant 0 : index
    %4 = vector.load %arg2[%c0_6, %c0_7] : memref<2x24xf32, #tpu.memory_space<vmem>>, vector<2x24xf32>
    %cst = arith.constant dense<0.000000e+00> : vector<8x24xf32>
    %5 = tpu.matmul %3, %4, %cst {dimension_numbers = #tpu.dot_dimension_numbers<[1], [0], [0], [1], [0, 0, 1, 1], [], []>} : vector<8x2xf32>, vector<2x24xf32>, vector<8x24xf32> -> vector<8x24xf32>
    %c0_8 = arith.constant 0 : index
    %c0_9 = arith.constant 0 : index
    %c0_10 = arith.constant 0 : index
    %c0_11 = arith.constant 0 : index
    %6 = vector.load %arg1[%c0_8, %c0_9, %c0_10, %c0_11] : memref<15x2x8x24xf32, #tpu.memory_space<vmem>>, vector<1x1x8x24xf32>
    %7 = vector.shape_cast %6 : vector<1x1x8x24xf32> to vector<8x24xf32>
    %8 = arith.mulf %7, %5 : vector<8x24xf32>
    %c0_12 = arith.constant 0 : index
    %c0_13 = arith.constant 0 : index
    %c0_14 = arith.constant 0 : index
    %c0_15 = arith.constant 0 : index
    %9 = vector.load %arg3[%c0_12, %c0_13, %c0_14, %c0_15] : memref<14x2x24x24xf32, #tpu.memory_space<vmem>>, vector<1x1x24x24xf32>
    %10 = vector.shape_cast %9 : vector<1x1x24x24xf32> to vector<24x24xf32>
    %cst_16 = arith.constant dense<0.000000e+00> : vector<8x24xf32>
    %11 = tpu.matmul %8, %10, %cst_16 {dimension_numbers = #tpu.dot_dimension_numbers<[1], [0], [0], [1], [0, 0, 1, 1], [], []>} : vector<8x24xf32>, vector<24x24xf32>, vector<8x24xf32> -> vector<8x24xf32>
    %c0_17 = arith.constant 0 : index
    %c1_18 = arith.constant 1 : index
    %c0_19 = arith.constant 0 : index
    %c0_20 = arith.constant 0 : index
    %12 = vector.load %arg1[%c0_17, %c1_18, %c0_19, %c0_20] : memref<15x2x8x24xf32, #tpu.memory_space<vmem>>, vector<1x1x8x24xf32>
    %13 = vector.shape_cast %12 : vector<1x1x8x24xf32> to vector<8x24xf32>
    %14 = arith.mulf %13, %5 : vector<8x24xf32>
    %c0_21 = arith.constant 0 : index
    %c1_22 = arith.constant 1 : index
    %c0_23 = arith.constant 0 : index
    %c0_24 = arith.constant 0 : index
    %15 = vector.load %arg3[%c0_21, %c1_22, %c0_23, %c0_24] : memref<14x2x24x24xf32, #tpu.memory_space<vmem>>, vector<1x1x24x24xf32>
    %16 = vector.shape_cast %15 : vector<1x1x24x24xf32> to vector<24x24xf32>
    %cst_25 = arith.constant dense<0.000000e+00> : vector<8x24xf32>
    %17 = tpu.matmul %14, %16, %cst_25 {dimension_numbers = #tpu.dot_dimension_numbers<[1], [0], [0], [1], [0, 0, 1, 1], [], []>} : vector<8x24xf32>, vector<24x24xf32>, vector<8x24xf32> -> vector<8x24xf32>
    %18 = arith.addf %11, %17 : vector<8x24xf32>
    %cst_26 = arith.constant dense<0.000000e+00> : vector<24xf32>
    %19 = vector.multi_reduction <add>, %18, %cst_26 [0] : vector<8x24xf32> to vector<24xf32>
    %20 = vector.shape_cast %19 : vector<24xf32> to vector<1x24xf32>
    %cst_27 = arith.constant dense<0.000000e+00> : vector<1x24xf32>
    %21 = tpu.matmul %20, %2, %cst_27 {dimension_numbers = #tpu.dot_dimension_numbers<[1], [0], [0], [1], [0, 0, 1, 1], [], []>} : vector<1x24xf32>, vector<24x24xf32>, vector<1x24xf32> -> vector<1x24xf32>
    %cst_28 = arith.constant 0.0416666679 : f32
    %22 = vector.broadcast %cst_28 : f32 to vector<1x24xf32>
    %23 = arith.mulf %21, %22 : vector<1x24xf32>
    %24 = vector.broadcast %23 : vector<1x24xf32> to vector<8x24xf32>
    %25 = arith.subf %18, %24 : vector<8x24xf32>
    %26 = arith.mulf %25, %25 : vector<8x24xf32>
    %cst_29 = arith.constant dense<0.000000e+00> : vector<24xf32>
    %27 = vector.multi_reduction <add>, %26, %cst_29 [0] : vector<8x24xf32> to vector<24xf32>
    %28 = vector.shape_cast %27 : vector<24xf32> to vector<1x24xf32>
    %cst_30 = arith.constant dense<0.000000e+00> : vector<1x24xf32>
    %29 = tpu.matmul %28, %2, %cst_30 {dimension_numbers = #tpu.dot_dimension_numbers<[1], [0], [0], [1], [0, 0, 1, 1], [], []>} : vector<1x24xf32>, vector<24x24xf32>, vector<1x24xf32> -> vector<1x24xf32>
    %cst_31 = arith.constant 0.0416666679 : f32
    %30 = vector.broadcast %cst_31 : f32 to vector<1x24xf32>
    %31 = arith.mulf %29, %30 : vector<1x24xf32>
    %cst_32 = arith.constant 9.99999974E-6 : f32
    %32 = vector.broadcast %cst_32 : f32 to vector<1x24xf32>
    %33 = arith.addf %31, %32 : vector<1x24xf32>
    %34 = math.rsqrt %33 : vector<1x24xf32>
    %35 = vector.broadcast %34 : vector<1x24xf32> to vector<8x24xf32>
    %36 = arith.mulf %25, %35 : vector<8x24xf32>
    %37 = vector.broadcast %0 : vector<1x24xf32> to vector<8x24xf32>
    %38 = arith.mulf %36, %37 : vector<8x24xf32>
    %39 = vector.broadcast %1 : vector<1x24xf32> to vector<8x24xf32>
    %40 = arith.addf %38, %39 : vector<8x24xf32>
    %c1_33 = arith.constant 1 : index
    %c0_34 = arith.constant 0 : index
    %c0_35 = arith.constant 0 : index
    %c0_36 = arith.constant 0 : index
    %41 = vector.load %arg1[%c1_33, %c0_34, %c0_35, %c0_36] : memref<15x2x8x24xf32, #tpu.memory_space<vmem>>, vector<1x1x8x24xf32>
    %42 = vector.shape_cast %41 : vector<1x1x8x24xf32> to vector<8x24xf32>
    %43 = arith.mulf %42, %40 : vector<8x24xf32>
    %c1_37 = arith.constant 1 : index
    %c0_38 = arith.constant 0 : index
    %c0_39 = arith.constant 0 : index
    %c0_40 = arith.constant 0 : index
    %44 = vector.load %arg3[%c1_37, %c0_38, %c0_39, %c0_40] : memref<14x2x24x24xf32, #tpu.memory_space<vmem>>, vector<1x1x24x24xf32>
    %45 = vector.shape_cast %44 : vector<1x1x24x24xf32> to vector<24x24xf32>
    %cst_41 = arith.constant dense<0.000000e+00> : vector<8x24xf32>
    %46 = tpu.matmul %43, %45, %cst_41 {dimension_numbers = #tpu.dot_dimension_numbers<[1], [0], [0], [1], [0, 0, 1, 1], [], []>} : vector<8x24xf32>, vector<24x24xf32>, vector<8x24xf32> -> vector<8x24xf32>
    %c1_42 = arith.constant 1 : index
    %c1_43 = arith.constant 1 : index
    %c0_44 = arith.constant 0 : index
    %c0_45 = arith.constant 0 : index
    %47 = vector.load %arg1[%c1_42, %c1_43, %c0_44, %c0_45] : memref<15x2x8x24xf32, #tpu.memory_space<vmem>>, vector<1x1x8x24xf32>
    %48 = vector.shape_cast %47 : vector<1x1x8x24xf32> to vector<8x24xf32>
    %49 = arith.mulf %48, %40 : vector<8x24xf32>
    %c1_46 = arith.constant 1 : index
    %c1_47 = arith.constant 1 : index
    %c0_48 = arith.constant 0 : index
    %c0_49 = arith.constant 0 : index
    %50 = vector.load %arg3[%c1_46, %c1_47, %c0_48, %c0_49] : memref<14x2x24x24xf32, #tpu.memory_space<vmem>>, vector<1x1x24x24xf32>
    %51 = vector.shape_cast %50 : vector<1x1x24x24xf32> to vector<24x24xf32>
    %cst_50 = arith.constant dense<0.000000e+00> : vector<8x24xf32>
    %52 = tpu.matmul %49, %51, %cst_50 {dimension_numbers = #tpu.dot_dimension_numbers<[1], [0], [0], [1], [0, 0, 1, 1], [], []>} : vector<8x24xf32>, vector<24x24xf32>, vector<8x24xf32> -> vector<8x24xf32>
    %53 = arith.addf %46, %52 : vector<8x24xf32>
    %cst_51 = arith.constant dense<0.000000e+00> : vector<24xf32>
    %54 = vector.multi_reduction <add>, %53, %cst_51 [0] : vector<8x24xf32> to vector<24xf32>
    %55 = vector.shape_cast %54 : vector<24xf32> to vector<1x24xf32>
    %cst_52 = arith.constant dense<0.000000e+00> : vector<1x24xf32>
    %56 = tpu.matmul %55, %2, %cst_52 {dimension_numbers = #tpu.dot_dimension_numbers<[1], [0], [0], [1], [0, 0, 1, 1], [], []>} : vector<1x24xf32>, vector<24x24xf32>, vector<1x24xf32> -> vector<1x24xf32>
    %cst_53 = arith.constant 0.0416666679 : f32
    %57 = vector.broadcast %cst_53 : f32 to vector<1x24xf32>
    %58 = arith.mulf %56, %57 : vector<1x24xf32>
    %59 = vector.broadcast %58 : vector<1x24xf32> to vector<8x24xf32>
    %60 = arith.subf %53, %59 : vector<8x24xf32>
    %61 = arith.mulf %60, %60 : vector<8x24xf32>
    %cst_54 = arith.constant dense<0.000000e+00> : vector<24xf32>
    %62 = vector.multi_reduction <add>, %61, %cst_54 [0] : vector<8x24xf32> to vector<24xf32>
    %63 = vector.shape_cast %62 : vector<24xf32> to vector<1x24xf32>
    %cst_55 = arith.constant dense<0.000000e+00> : vector<1x24xf32>
    %64 = tpu.matmul %63, %2, %cst_55 {dimension_numbers = #tpu.dot_dimension_numbers<[1], [0], [0], [1], [0, 0, 1, 1], [], []>} : vector<1x24xf32>, vector<24x24xf32>, vector<1x24xf32> -> vector<1x24xf32>
    %cst_56 = arith.constant 0.0416666679 : f32
    %65 = vector.broadcast %cst_56 : f32 to vector<1x24xf32>
    %66 = arith.mulf %64, %65 : vector<1x24xf32>
    %cst_57 = arith.constant 9.99999974E-6 : f32
    %67 = vector.broadcast %cst_57 : f32 to vector<1x24xf32>
    %68 = arith.addf %66, %67 : vector<1x24xf32>
    %69 = math.rsqrt %68 : vector<1x24xf32>
    %70 = vector.broadcast %69 : vector<1x24xf32> to vector<8x24xf32>
    %71 = arith.mulf %60, %70 : vector<8x24xf32>
    %72 = vector.broadcast %0 : vector<1x24xf32> to vector<8x24xf32>
    %73 = arith.mulf %71, %72 : vector<8x24xf32>
    %74 = vector.broadcast %1 : vector<1x24xf32> to vector<8x24xf32>
    %75 = arith.addf %73, %74 : vector<8x24xf32>
    %c2 = arith.constant 2 : index
    %c0_58 = arith.constant 0 : index
    %c0_59 = arith.constant 0 : index
    %c0_60 = arith.constant 0 : index
    %76 = vector.load %arg1[%c2, %c0_58, %c0_59, %c0_60] : memref<15x2x8x24xf32, #tpu.memory_space<vmem>>, vector<1x1x8x24xf32>
    %77 = vector.shape_cast %76 : vector<1x1x8x24xf32> to vector<8x24xf32>
    %78 = arith.mulf %77, %75 : vector<8x24xf32>
    %c2_61 = arith.constant 2 : index
    %c0_62 = arith.constant 0 : index
    %c0_63 = arith.constant 0 : index
    %c0_64 = arith.constant 0 : index
    %79 = vector.load %arg3[%c2_61, %c0_62, %c0_63, %c0_64] : memref<14x2x24x24xf32, #tpu.memory_space<vmem>>, vector<1x1x24x24xf32>
    %80 = vector.shape_cast %79 : vector<1x1x24x24xf32> to vector<24x24xf32>
    %cst_65 = arith.constant dense<0.000000e+00> : vector<8x24xf32>
    %81 = tpu.matmul %78, %80, %cst_65 {dimension_numbers = #tpu.dot_dimension_numbers<[1], [0], [0], [1], [0, 0, 1, 1], [], []>} : vector<8x24xf32>, vector<24x24xf32>, vector<8x24xf32> -> vector<8x24xf32>
    %c2_66 = arith.constant 2 : index
    %c1_67 = arith.constant 1 : index
    %c0_68 = arith.constant 0 : index
    %c0_69 = arith.constant 0 : index
    %82 = vector.load %arg1[%c2_66, %c1_67, %c0_68, %c0_69] : memref<15x2x8x24xf32, #tpu.memory_space<vmem>>, vector<1x1x8x24xf32>
    %83 = vector.shape_cast %82 : vector<1x1x8x24xf32> to vector<8x24xf32>
    %84 = arith.mulf %83, %75 : vector<8x24xf32>
    %c2_70 = arith.constant 2 : index
    %c1_71 = arith.constant 1 : index
    %c0_72 = arith.constant 0 : index
    %c0_73 = arith.constant 0 : index
    %85 = vector.load %arg3[%c2_70, %c1_71, %c0_72, %c0_73] : memref<14x2x24x24xf32, #tpu.memory_space<vmem>>, vector<1x1x24x24xf32>
    %86 = vector.shape_cast %85 : vector<1x1x24x24xf32> to vector<24x24xf32>
    %cst_74 = arith.constant dense<0.000000e+00> : vector<8x24xf32>
    %87 = tpu.matmul %84, %86, %cst_74 {dimension_numbers = #tpu.dot_dimension_numbers<[1], [0], [0], [1], [0, 0, 1, 1], [], []>} : vector<8x24xf32>, vector<24x24xf32>, vector<8x24xf32> -> vector<8x24xf32>
    %88 = arith.addf %81, %87 : vector<8x24xf32>
    %cst_75 = arith.constant dense<0.000000e+00> : vector<24xf32>
    %89 = vector.multi_reduction <add>, %88, %cst_75 [0] : vector<8x24xf32> to vector<24xf32>
    %90 = vector.shape_cast %89 : vector<24xf32> to vector<1x24xf32>
    %cst_76 = arith.constant dense<0.000000e+00> : vector<1x24xf32>
    %91 = tpu.matmul %90, %2, %cst_76 {dimension_numbers = #tpu.dot_dimension_numbers<[1], [0], [0], [1], [0, 0, 1, 1], [], []>} : vector<1x24xf32>, vector<24x24xf32>, vector<1x24xf32> -> vector<1x24xf32>
    %cst_77 = arith.constant 0.0416666679 : f32
    %92 = vector.broadcast %cst_77 : f32 to vector<1x24xf32>
    %93 = arith.mulf %91, %92 : vector<1x24xf32>
    %94 = vector.broadcast %93 : vector<1x24xf32> to vector<8x24xf32>
    %95 = arith.subf %88, %94 : vector<8x24xf32>
    %96 = arith.mulf %95, %95 : vector<8x24xf32>
    %cst_78 = arith.constant dense<0.000000e+00> : vector<24xf32>
    %97 = vector.multi_reduction <add>, %96, %cst_78 [0] : vector<8x24xf32> to vector<24xf32>
    %98 = vector.shape_cast %97 : vector<24xf32> to vector<1x24xf32>
    %cst_79 = arith.constant dense<0.000000e+00> : vector<1x24xf32>
    %99 = tpu.matmul %98, %2, %cst_79 {dimension_numbers = #tpu.dot_dimension_numbers<[1], [0], [0], [1], [0, 0, 1, 1], [], []>} : vector<1x24xf32>, vector<24x24xf32>, vector<1x24xf32> -> vector<1x24xf32>
    %cst_80 = arith.constant 0.0416666679 : f32
    %100 = vector.broadcast %cst_80 : f32 to vector<1x24xf32>
    %101 = arith.mulf %99, %100 : vector<1x24xf32>
    %cst_81 = arith.constant 9.99999974E-6 : f32
    %102 = vector.broadcast %cst_81 : f32 to vector<1x24xf32>
    %103 = arith.addf %101, %102 : vector<1x24xf32>
    %104 = math.rsqrt %103 : vector<1x24xf32>
    %105 = vector.broadcast %104 : vector<1x24xf32> to vector<8x24xf32>
    %106 = arith.mulf %95, %105 : vector<8x24xf32>
    %107 = vector.broadcast %0 : vector<1x24xf32> to vector<8x24xf32>
    %108 = arith.mulf %106, %107 : vector<8x24xf32>
    %109 = vector.broadcast %1 : vector<1x24xf32> to vector<8x24xf32>
    %110 = arith.addf %108, %109 : vector<8x24xf32>
    %c3 = arith.constant 3 : index
    %c0_82 = arith.constant 0 : index
    %c0_83 = arith.constant 0 : index
    %c0_84 = arith.constant 0 : index
    %111 = vector.load %arg1[%c3, %c0_82, %c0_83, %c0_84] : memref<15x2x8x24xf32, #tpu.memory_space<vmem>>, vector<1x1x8x24xf32>
    %112 = vector.shape_cast %111 : vector<1x1x8x24xf32> to vector<8x24xf32>
    %113 = arith.mulf %112, %110 : vector<8x24xf32>
    %c3_85 = arith.constant 3 : index
    %c0_86 = arith.constant 0 : index
    %c0_87 = arith.constant 0 : index
    %c0_88 = arith.constant 0 : index
    %114 = vector.load %arg3[%c3_85, %c0_86, %c0_87, %c0_88] : memref<14x2x24x24xf32, #tpu.memory_space<vmem>>, vector<1x1x24x24xf32>
    %115 = vector.shape_cast %114 : vector<1x1x24x24xf32> to vector<24x24xf32>
    %cst_89 = arith.constant dense<0.000000e+00> : vector<8x24xf32>
    %116 = tpu.matmul %113, %115, %cst_89 {dimension_numbers = #tpu.dot_dimension_numbers<[1], [0], [0], [1], [0, 0, 1, 1], [], []>} : vector<8x24xf32>, vector<24x24xf32>, vector<8x24xf32> -> vector<8x24xf32>
    %c3_90 = arith.constant 3 : index
    %c1_91 = arith.constant 1 : index
    %c0_92 = arith.constant 0 : index
    %c0_93 = arith.constant 0 : index
    %117 = vector.load %arg1[%c3_90, %c1_91, %c0_92, %c0_93] : memref<15x2x8x24xf32, #tpu.memory_space<vmem>>, vector<1x1x8x24xf32>
    %118 = vector.shape_cast %117 : vector<1x1x8x24xf32> to vector<8x24xf32>
    %119 = arith.mulf %118, %110 : vector<8x24xf32>
    %c3_94 = arith.constant 3 : index
    %c1_95 = arith.constant 1 : index
    %c0_96 = arith.constant 0 : index
    %c0_97 = arith.constant 0 : index
    %120 = vector.load %arg3[%c3_94, %c1_95, %c0_96, %c0_97] : memref<14x2x24x24xf32, #tpu.memory_space<vmem>>, vector<1x1x24x24xf32>
    %121 = vector.shape_cast %120 : vector<1x1x24x24xf32> to vector<24x24xf32>
    %cst_98 = arith.constant dense<0.000000e+00> : vector<8x24xf32>
    %122 = tpu.matmul %119, %121, %cst_98 {dimension_numbers = #tpu.dot_dimension_numbers<[1], [0], [0], [1], [0, 0, 1, 1], [], []>} : vector<8x24xf32>, vector<24x24xf32>, vector<8x24xf32> -> vector<8x24xf32>
    %123 = arith.addf %116, %122 : vector<8x24xf32>
    %cst_99 = arith.constant dense<0.000000e+00> : vector<24xf32>
    %124 = vector.multi_reduction <add>, %123, %cst_99 [0] : vector<8x24xf32> to vector<24xf32>
    %125 = vector.shape_cast %124 : vector<24xf32> to vector<1x24xf32>
    %cst_100 = arith.constant dense<0.000000e+00> : vector<1x24xf32>
    %126 = tpu.matmul %125, %2, %cst_100 {dimension_numbers = #tpu.dot_dimension_numbers<[1], [0], [0], [1], [0, 0, 1, 1], [], []>} : vector<1x24xf32>, vector<24x24xf32>, vector<1x24xf32> -> vector<1x24xf32>
    %cst_101 = arith.constant 0.0416666679 : f32
    %127 = vector.broadcast %cst_101 : f32 to vector<1x24xf32>
    %128 = arith.mulf %126, %127 : vector<1x24xf32>
    %129 = vector.broadcast %128 : vector<1x24xf32> to vector<8x24xf32>
    %130 = arith.subf %123, %129 : vector<8x24xf32>
    %131 = arith.mulf %130, %130 : vector<8x24xf32>
    %cst_102 = arith.constant dense<0.000000e+00> : vector<24xf32>
    %132 = vector.multi_reduction <add>, %131, %cst_102 [0] : vector<8x24xf32> to vector<24xf32>
    %133 = vector.shape_cast %132 : vector<24xf32> to vector<1x24xf32>
    %cst_103 = arith.constant dense<0.000000e+00> : vector<1x24xf32>
    %134 = tpu.matmul %133, %2, %cst_103 {dimension_numbers = #tpu.dot_dimension_numbers<[1], [0], [0], [1], [0, 0, 1, 1], [], []>} : vector<1x24xf32>, vector<24x24xf32>, vector<1x24xf32> -> vector<1x24xf32>
    %cst_104 = arith.constant 0.0416666679 : f32
    %135 = vector.broadcast %cst_104 : f32 to vector<1x24xf32>
    %136 = arith.mulf %134, %135 : vector<1x24xf32>
    %cst_105 = arith.constant 9.99999974E-6 : f32
    %137 = vector.broadcast %cst_105 : f32 to vector<1x24xf32>
    %138 = arith.addf %136, %137 : vector<1x24xf32>
    %139 = math.rsqrt %138 : vector<1x24xf32>
    %140 = vector.broadcast %139 : vector<1x24xf32> to vector<8x24xf32>
    %141 = arith.mulf %130, %140 : vector<8x24xf32>
    %142 = vector.broadcast %0 : vector<1x24xf32> to vector<8x24xf32>
    %143 = arith.mulf %141, %142 : vector<8x24xf32>
    %144 = vector.broadcast %1 : vector<1x24xf32> to vector<8x24xf32>
    %145 = arith.addf %143, %144 : vector<8x24xf32>
    %c4 = arith.constant 4 : index
    %c0_106 = arith.constant 0 : index
    %c0_107 = arith.constant 0 : index
    %c0_108 = arith.constant 0 : index
    %146 = vector.load %arg1[%c4, %c0_106, %c0_107, %c0_108] : memref<15x2x8x24xf32, #tpu.memory_space<vmem>>, vector<1x1x8x24xf32>
    %147 = vector.shape_cast %146 : vector<1x1x8x24xf32> to vector<8x24xf32>
    %148 = arith.mulf %147, %145 : vector<8x24xf32>
    %c4_109 = arith.constant 4 : index
    %c0_110 = arith.constant 0 : index
    %c0_111 = arith.constant 0 : index
    %c0_112 = arith.constant 0 : index
    %149 = vector.load %arg3[%c4_109, %c0_110, %c0_111, %c0_112] : memref<14x2x24x24xf32, #tpu.memory_space<vmem>>, vector<1x1x24x24xf32>
    %150 = vector.shape_cast %149 : vector<1x1x24x24xf32> to vector<24x24xf32>
    %cst_113 = arith.constant dense<0.000000e+00> : vector<8x24xf32>
    %151 = tpu.matmul %148, %150, %cst_113 {dimension_numbers = #tpu.dot_dimension_numbers<[1], [0], [0], [1], [0, 0, 1, 1], [], []>} : vector<8x24xf32>, vector<24x24xf32>, vector<8x24xf32> -> vector<8x24xf32>
    %c4_114 = arith.constant 4 : index
    %c1_115 = arith.constant 1 : index
    %c0_116 = arith.constant 0 : index
    %c0_117 = arith.constant 0 : index
    %152 = vector.load %arg1[%c4_114, %c1_115, %c0_116, %c0_117] : memref<15x2x8x24xf32, #tpu.memory_space<vmem>>, vector<1x1x8x24xf32>
    %153 = vector.shape_cast %152 : vector<1x1x8x24xf32> to vector<8x24xf32>
    %154 = arith.mulf %153, %145 : vector<8x24xf32>
    %c4_118 = arith.constant 4 : index
    %c1_119 = arith.constant 1 : index
    %c0_120 = arith.constant 0 : index
    %c0_121 = arith.constant 0 : index
    %155 = vector.load %arg3[%c4_118, %c1_119, %c0_120, %c0_121] : memref<14x2x24x24xf32, #tpu.memory_space<vmem>>, vector<1x1x24x24xf32>
    %156 = vector.shape_cast %155 : vector<1x1x24x24xf32> to vector<24x24xf32>
    %cst_122 = arith.constant dense<0.000000e+00> : vector<8x24xf32>
    %157 = tpu.matmul %154, %156, %cst_122 {dimension_numbers = #tpu.dot_dimension_numbers<[1], [0], [0], [1], [0, 0, 1, 1], [], []>} : vector<8x24xf32>, vector<24x24xf32>, vector<8x24xf32> -> vector<8x24xf32>
    %158 = arith.addf %151, %157 : vector<8x24xf32>
    %cst_123 = arith.constant dense<0.000000e+00> : vector<24xf32>
    %159 = vector.multi_reduction <add>, %158, %cst_123 [0] : vector<8x24xf32> to vector<24xf32>
    %160 = vector.shape_cast %159 : vector<24xf32> to vector<1x24xf32>
    %cst_124 = arith.constant dense<0.000000e+00> : vector<1x24xf32>
    %161 = tpu.matmul %160, %2, %cst_124 {dimension_numbers = #tpu.dot_dimension_numbers<[1], [0], [0], [1], [0, 0, 1, 1], [], []>} : vector<1x24xf32>, vector<24x24xf32>, vector<1x24xf32> -> vector<1x24xf32>
    %cst_125 = arith.constant 0.0416666679 : f32
    %162 = vector.broadcast %cst_125 : f32 to vector<1x24xf32>
    %163 = arith.mulf %161, %162 : vector<1x24xf32>
    %164 = vector.broadcast %163 : vector<1x24xf32> to vector<8x24xf32>
    %165 = arith.subf %158, %164 : vector<8x24xf32>
    %166 = arith.mulf %165, %165 : vector<8x24xf32>
    %cst_126 = arith.constant dense<0.000000e+00> : vector<24xf32>
    %167 = vector.multi_reduction <add>, %166, %cst_126 [0] : vector<8x24xf32> to vector<24xf32>
    %168 = vector.shape_cast %167 : vector<24xf32> to vector<1x24xf32>
    %cst_127 = arith.constant dense<0.000000e+00> : vector<1x24xf32>
    %169 = tpu.matmul %168, %2, %cst_127 {dimension_numbers = #tpu.dot_dimension_numbers<[1], [0], [0], [1], [0, 0, 1, 1], [], []>} : vector<1x24xf32>, vector<24x24xf32>, vector<1x24xf32> -> vector<1x24xf32>
    %cst_128 = arith.constant 0.0416666679 : f32
    %170 = vector.broadcast %cst_128 : f32 to vector<1x24xf32>
    %171 = arith.mulf %169, %170 : vector<1x24xf32>
    %cst_129 = arith.constant 9.99999974E-6 : f32
    %172 = vector.broadcast %cst_129 : f32 to vector<1x24xf32>
    %173 = arith.addf %171, %172 : vector<1x24xf32>
    %174 = math.rsqrt %173 : vector<1x24xf32>
    %175 = vector.broadcast %174 : vector<1x24xf32> to vector<8x24xf32>
    %176 = arith.mulf %165, %175 : vector<8x24xf32>
    %177 = vector.broadcast %0 : vector<1x24xf32> to vector<8x24xf32>
    %178 = arith.mulf %176, %177 : vector<8x24xf32>
    %179 = vector.broadcast %1 : vector<1x24xf32> to vector<8x24xf32>
    %180 = arith.addf %178, %179 : vector<8x24xf32>
    %c5 = arith.constant 5 : index
    %c0_130 = arith.constant 0 : index
    %c0_131 = arith.constant 0 : index
    %c0_132 = arith.constant 0 : index
    %181 = vector.load %arg1[%c5, %c0_130, %c0_131, %c0_132] : memref<15x2x8x24xf32, #tpu.memory_space<vmem>>, vector<1x1x8x24xf32>
    %182 = vector.shape_cast %181 : vector<1x1x8x24xf32> to vector<8x24xf32>
    %183 = arith.mulf %182, %180 : vector<8x24xf32>
    %c5_133 = arith.constant 5 : index
    %c0_134 = arith.constant 0 : index
    %c0_135 = arith.constant 0 : index
    %c0_136 = arith.constant 0 : index
    %184 = vector.load %arg3[%c5_133, %c0_134, %c0_135, %c0_136] : memref<14x2x24x24xf32, #tpu.memory_space<vmem>>, vector<1x1x24x24xf32>
    %185 = vector.shape_cast %184 : vector<1x1x24x24xf32> to vector<24x24xf32>
    %cst_137 = arith.constant dense<0.000000e+00> : vector<8x24xf32>
    %186 = tpu.matmul %183, %185, %cst_137 {dimension_numbers = #tpu.dot_dimension_numbers<[1], [0], [0], [1], [0, 0, 1, 1], [], []>} : vector<8x24xf32>, vector<24x24xf32>, vector<8x24xf32> -> vector<8x24xf32>
    %c5_138 = arith.constant 5 : index
    %c1_139 = arith.constant 1 : index
    %c0_140 = arith.constant 0 : index
    %c0_141 = arith.constant 0 : index
    %187 = vector.load %arg1[%c5_138, %c1_139, %c0_140, %c0_141] : memref<15x2x8x24xf32, #tpu.memory_space<vmem>>, vector<1x1x8x24xf32>
    %188 = vector.shape_cast %187 : vector<1x1x8x24xf32> to vector<8x24xf32>
    %189 = arith.mulf %188, %180 : vector<8x24xf32>
    %c5_142 = arith.constant 5 : index
    %c1_143 = arith.constant 1 : index
    %c0_144 = arith.constant 0 : index
    %c0_145 = arith.constant 0 : index
    %190 = vector.load %arg3[%c5_142, %c1_143, %c0_144, %c0_145] : memref<14x2x24x24xf32, #tpu.memory_space<vmem>>, vector<1x1x24x24xf32>
    %191 = vector.shape_cast %190 : vector<1x1x24x24xf32> to vector<24x24xf32>
    %cst_146 = arith.constant dense<0.000000e+00> : vector<8x24xf32>
    %192 = tpu.matmul %189, %191, %cst_146 {dimension_numbers = #tpu.dot_dimension_numbers<[1], [0], [0], [1], [0, 0, 1, 1], [], []>} : vector<8x24xf32>, vector<24x24xf32>, vector<8x24xf32> -> vector<8x24xf32>
    %193 = arith.addf %186, %192 : vector<8x24xf32>
    %cst_147 = arith.constant dense<0.000000e+00> : vector<24xf32>
    %194 = vector.multi_reduction <add>, %193, %cst_147 [0] : vector<8x24xf32> to vector<24xf32>
    %195 = vector.shape_cast %194 : vector<24xf32> to vector<1x24xf32>
    %cst_148 = arith.constant dense<0.000000e+00> : vector<1x24xf32>
    %196 = tpu.matmul %195, %2, %cst_148 {dimension_numbers = #tpu.dot_dimension_numbers<[1], [0], [0], [1], [0, 0, 1, 1], [], []>} : vector<1x24xf32>, vector<24x24xf32>, vector<1x24xf32> -> vector<1x24xf32>
    %cst_149 = arith.constant 0.0416666679 : f32
    %197 = vector.broadcast %cst_149 : f32 to vector<1x24xf32>
    %198 = arith.mulf %196, %197 : vector<1x24xf32>
    %199 = vector.broadcast %198 : vector<1x24xf32> to vector<8x24xf32>
    %200 = arith.subf %193, %199 : vector<8x24xf32>
    %201 = arith.mulf %200, %200 : vector<8x24xf32>
    %cst_150 = arith.constant dense<0.000000e+00> : vector<24xf32>
    %202 = vector.multi_reduction <add>, %201, %cst_150 [0] : vector<8x24xf32> to vector<24xf32>
    %203 = vector.shape_cast %202 : vector<24xf32> to vector<1x24xf32>
    %cst_151 = arith.constant dense<0.000000e+00> : vector<1x24xf32>
    %204 = tpu.matmul %203, %2, %cst_151 {dimension_numbers = #tpu.dot_dimension_numbers<[1], [0], [0], [1], [0, 0, 1, 1], [], []>} : vector<1x24xf32>, vector<24x24xf32>, vector<1x24xf32> -> vector<1x24xf32>
    %cst_152 = arith.constant 0.0416666679 : f32
    %205 = vector.broadcast %cst_152 : f32 to vector<1x24xf32>
    %206 = arith.mulf %204, %205 : vector<1x24xf32>
    %cst_153 = arith.constant 9.99999974E-6 : f32
    %207 = vector.broadcast %cst_153 : f32 to vector<1x24xf32>
    %208 = arith.addf %206, %207 : vector<1x24xf32>
    %209 = math.rsqrt %208 : vector<1x24xf32>
    %210 = vector.broadcast %209 : vector<1x24xf32> to vector<8x24xf32>
    %211 = arith.mulf %200, %210 : vector<8x24xf32>
    %212 = vector.broadcast %0 : vector<1x24xf32> to vector<8x24xf32>
    %213 = arith.mulf %211, %212 : vector<8x24xf32>
    %214 = vector.broadcast %1 : vector<1x24xf32> to vector<8x24xf32>
    %215 = arith.addf %213, %214 : vector<8x24xf32>
    %c6 = arith.constant 6 : index
    %c0_154 = arith.constant 0 : index
    %c0_155 = arith.constant 0 : index
    %c0_156 = arith.constant 0 : index
    %216 = vector.load %arg1[%c6, %c0_154, %c0_155, %c0_156] : memref<15x2x8x24xf32, #tpu.memory_space<vmem>>, vector<1x1x8x24xf32>
    %217 = vector.shape_cast %216 : vector<1x1x8x24xf32> to vector<8x24xf32>
    %218 = arith.mulf %217, %215 : vector<8x24xf32>
    %c6_157 = arith.constant 6 : index
    %c0_158 = arith.constant 0 : index
    %c0_159 = arith.constant 0 : index
    %c0_160 = arith.constant 0 : index
    %219 = vector.load %arg3[%c6_157, %c0_158, %c0_159, %c0_160] : memref<14x2x24x24xf32, #tpu.memory_space<vmem>>, vector<1x1x24x24xf32>
    %220 = vector.shape_cast %219 : vector<1x1x24x24xf32> to vector<24x24xf32>
    %cst_161 = arith.constant dense<0.000000e+00> : vector<8x24xf32>
    %221 = tpu.matmul %218, %220, %cst_161 {dimension_numbers = #tpu.dot_dimension_numbers<[1], [0], [0], [1], [0, 0, 1, 1], [], []>} : vector<8x24xf32>, vector<24x24xf32>, vector<8x24xf32> -> vector<8x24xf32>
    %c6_162 = arith.constant 6 : index
    %c1_163 = arith.constant 1 : index
    %c0_164 = arith.constant 0 : index
    %c0_165 = arith.constant 0 : index
    %222 = vector.load %arg1[%c6_162, %c1_163, %c0_164, %c0_165] : memref<15x2x8x24xf32, #tpu.memory_space<vmem>>, vector<1x1x8x24xf32>
    %223 = vector.shape_cast %222 : vector<1x1x8x24xf32> to vector<8x24xf32>
    %224 = arith.mulf %223, %215 : vector<8x24xf32>
    %c6_166 = arith.constant 6 : index
    %c1_167 = arith.constant 1 : index
    %c0_168 = arith.constant 0 : index
    %c0_169 = arith.constant 0 : index
    %225 = vector.load %arg3[%c6_166, %c1_167, %c0_168, %c0_169] : memref<14x2x24x24xf32, #tpu.memory_space<vmem>>, vector<1x1x24x24xf32>
    %226 = vector.shape_cast %225 : vector<1x1x24x24xf32> to vector<24x24xf32>
    %cst_170 = arith.constant dense<0.000000e+00> : vector<8x24xf32>
    %227 = tpu.matmul %224, %226, %cst_170 {dimension_numbers = #tpu.dot_dimension_numbers<[1], [0], [0], [1], [0, 0, 1, 1], [], []>} : vector<8x24xf32>, vector<24x24xf32>, vector<8x24xf32> -> vector<8x24xf32>
    %228 = arith.addf %221, %227 : vector<8x24xf32>
    %cst_171 = arith.constant dense<0.000000e+00> : vector<24xf32>
    %229 = vector.multi_reduction <add>, %228, %cst_171 [0] : vector<8x24xf32> to vector<24xf32>
    %230 = vector.shape_cast %229 : vector<24xf32> to vector<1x24xf32>
    %cst_172 = arith.constant dense<0.000000e+00> : vector<1x24xf32>
    %231 = tpu.matmul %230, %2, %cst_172 {dimension_numbers = #tpu.dot_dimension_numbers<[1], [0], [0], [1], [0, 0, 1, 1], [], []>} : vector<1x24xf32>, vector<24x24xf32>, vector<1x24xf32> -> vector<1x24xf32>
    %cst_173 = arith.constant 0.0416666679 : f32
    %232 = vector.broadcast %cst_173 : f32 to vector<1x24xf32>
    %233 = arith.mulf %231, %232 : vector<1x24xf32>
    %234 = vector.broadcast %233 : vector<1x24xf32> to vector<8x24xf32>
    %235 = arith.subf %228, %234 : vector<8x24xf32>
    %236 = arith.mulf %235, %235 : vector<8x24xf32>
    %cst_174 = arith.constant dense<0.000000e+00> : vector<24xf32>
    %237 = vector.multi_reduction <add>, %236, %cst_174 [0] : vector<8x24xf32> to vector<24xf32>
    %238 = vector.shape_cast %237 : vector<24xf32> to vector<1x24xf32>
    %cst_175 = arith.constant dense<0.000000e+00> : vector<1x24xf32>
    %239 = tpu.matmul %238, %2, %cst_175 {dimension_numbers = #tpu.dot_dimension_numbers<[1], [0], [0], [1], [0, 0, 1, 1], [], []>} : vector<1x24xf32>, vector<24x24xf32>, vector<1x24xf32> -> vector<1x24xf32>
    %cst_176 = arith.constant 0.0416666679 : f32
    %240 = vector.broadcast %cst_176 : f32 to vector<1x24xf32>
    %241 = arith.mulf %239, %240 : vector<1x24xf32>
    %cst_177 = arith.constant 9.99999974E-6 : f32
    %242 = vector.broadcast %cst_177 : f32 to vector<1x24xf32>
    %243 = arith.addf %241, %242 : vector<1x24xf32>
    %244 = math.rsqrt %243 : vector<1x24xf32>
    %245 = vector.broadcast %244 : vector<1x24xf32> to vector<8x24xf32>
    %246 = arith.mulf %235, %245 : vector<8x24xf32>
    %247 = vector.broadcast %0 : vector<1x24xf32> to vector<8x24xf32>
    %248 = arith.mulf %246, %247 : vector<8x24xf32>
    %249 = vector.broadcast %1 : vector<1x24xf32> to vector<8x24xf32>
    %250 = arith.addf %248, %249 : vector<8x24xf32>
    %c7 = arith.constant 7 : index
    %c0_178 = arith.constant 0 : index
    %c0_179 = arith.constant 0 : index
    %c0_180 = arith.constant 0 : index
    %251 = vector.load %arg1[%c7, %c0_178, %c0_179, %c0_180] : memref<15x2x8x24xf32, #tpu.memory_space<vmem>>, vector<1x1x8x24xf32>
    %252 = vector.shape_cast %251 : vector<1x1x8x24xf32> to vector<8x24xf32>
    %253 = arith.mulf %252, %250 : vector<8x24xf32>
    %c7_181 = arith.constant 7 : index
    %c0_182 = arith.constant 0 : index
    %c0_183 = arith.constant 0 : index
    %c0_184 = arith.constant 0 : index
    %254 = vector.load %arg3[%c7_181, %c0_182, %c0_183, %c0_184] : memref<14x2x24x24xf32, #tpu.memory_space<vmem>>, vector<1x1x24x24xf32>
    %255 = vector.shape_cast %254 : vector<1x1x24x24xf32> to vector<24x24xf32>
    %cst_185 = arith.constant dense<0.000000e+00> : vector<8x24xf32>
    %256 = tpu.matmul %253, %255, %cst_185 {dimension_numbers = #tpu.dot_dimension_numbers<[1], [0], [0], [1], [0, 0, 1, 1], [], []>} : vector<8x24xf32>, vector<24x24xf32>, vector<8x24xf32> -> vector<8x24xf32>
    %c7_186 = arith.constant 7 : index
    %c1_187 = arith.constant 1 : index
    %c0_188 = arith.constant 0 : index
    %c0_189 = arith.constant 0 : index
    %257 = vector.load %arg1[%c7_186, %c1_187, %c0_188, %c0_189] : memref<15x2x8x24xf32, #tpu.memory_space<vmem>>, vector<1x1x8x24xf32>
    %258 = vector.shape_cast %257 : vector<1x1x8x24xf32> to vector<8x24xf32>
    %259 = arith.mulf %258, %250 : vector<8x24xf32>
    %c7_190 = arith.constant 7 : index
    %c1_191 = arith.constant 1 : index
    %c0_192 = arith.constant 0 : index
    %c0_193 = arith.constant 0 : index
    %260 = vector.load %arg3[%c7_190, %c1_191, %c0_192, %c0_193] : memref<14x2x24x24xf32, #tpu.memory_space<vmem>>, vector<1x1x24x24xf32>
    %261 = vector.shape_cast %260 : vector<1x1x24x24xf32> to vector<24x24xf32>
    %cst_194 = arith.constant dense<0.000000e+00> : vector<8x24xf32>
    %262 = tpu.matmul %259, %261, %cst_194 {dimension_numbers = #tpu.dot_dimension_numbers<[1], [0], [0], [1], [0, 0, 1, 1], [], []>} : vector<8x24xf32>, vector<24x24xf32>, vector<8x24xf32> -> vector<8x24xf32>
    %263 = arith.addf %256, %262 : vector<8x24xf32>
    %cst_195 = arith.constant dense<0.000000e+00> : vector<24xf32>
    %264 = vector.multi_reduction <add>, %263, %cst_195 [0] : vector<8x24xf32> to vector<24xf32>
    %265 = vector.shape_cast %264 : vector<24xf32> to vector<1x24xf32>
    %cst_196 = arith.constant dense<0.000000e+00> : vector<1x24xf32>
    %266 = tpu.matmul %265, %2, %cst_196 {dimension_numbers = #tpu.dot_dimension_numbers<[1], [0], [0], [1], [0, 0, 1, 1], [], []>} : vector<1x24xf32>, vector<24x24xf32>, vector<1x24xf32> -> vector<1x24xf32>
    %cst_197 = arith.constant 0.0416666679 : f32
    %267 = vector.broadcast %cst_197 : f32 to vector<1x24xf32>
    %268 = arith.mulf %266, %267 : vector<1x24xf32>
    %269 = vector.broadcast %268 : vector<1x24xf32> to vector<8x24xf32>
    %270 = arith.subf %263, %269 : vector<8x24xf32>
    %271 = arith.mulf %270, %270 : vector<8x24xf32>
    %cst_198 = arith.constant dense<0.000000e+00> : vector<24xf32>
    %272 = vector.multi_reduction <add>, %271, %cst_198 [0] : vector<8x24xf32> to vector<24xf32>
    %273 = vector.shape_cast %272 : vector<24xf32> to vector<1x24xf32>
    %cst_199 = arith.constant dense<0.000000e+00> : vector<1x24xf32>
    %274 = tpu.matmul %273, %2, %cst_199 {dimension_numbers = #tpu.dot_dimension_numbers<[1], [0], [0], [1], [0, 0, 1, 1], [], []>} : vector<1x24xf32>, vector<24x24xf32>, vector<1x24xf32> -> vector<1x24xf32>
    %cst_200 = arith.constant 0.0416666679 : f32
    %275 = vector.broadcast %cst_200 : f32 to vector<1x24xf32>
    %276 = arith.mulf %274, %275 : vector<1x24xf32>
    %cst_201 = arith.constant 9.99999974E-6 : f32
    %277 = vector.broadcast %cst_201 : f32 to vector<1x24xf32>
    %278 = arith.addf %276, %277 : vector<1x24xf32>
    %279 = math.rsqrt %278 : vector<1x24xf32>
    %280 = vector.broadcast %279 : vector<1x24xf32> to vector<8x24xf32>
    %281 = arith.mulf %270, %280 : vector<8x24xf32>
    %282 = vector.broadcast %0 : vector<1x24xf32> to vector<8x24xf32>
    %283 = arith.mulf %281, %282 : vector<8x24xf32>
    %284 = vector.broadcast %1 : vector<1x24xf32> to vector<8x24xf32>
    %285 = arith.addf %283, %284 : vector<8x24xf32>
    %c8 = arith.constant 8 : index
    %c0_202 = arith.constant 0 : index
    %c0_203 = arith.constant 0 : index
    %c0_204 = arith.constant 0 : index
    %286 = vector.load %arg1[%c8, %c0_202, %c0_203, %c0_204] : memref<15x2x8x24xf32, #tpu.memory_space<vmem>>, vector<1x1x8x24xf32>
    %287 = vector.shape_cast %286 : vector<1x1x8x24xf32> to vector<8x24xf32>
    %288 = arith.mulf %287, %285 : vector<8x24xf32>
    %c8_205 = arith.constant 8 : index
    %c0_206 = arith.constant 0 : index
    %c0_207 = arith.constant 0 : index
    %c0_208 = arith.constant 0 : index
    %289 = vector.load %arg3[%c8_205, %c0_206, %c0_207, %c0_208] : memref<14x2x24x24xf32, #tpu.memory_space<vmem>>, vector<1x1x24x24xf32>
    %290 = vector.shape_cast %289 : vector<1x1x24x24xf32> to vector<24x24xf32>
    %cst_209 = arith.constant dense<0.000000e+00> : vector<8x24xf32>
    %291 = tpu.matmul %288, %290, %cst_209 {dimension_numbers = #tpu.dot_dimension_numbers<[1], [0], [0], [1], [0, 0, 1, 1], [], []>} : vector<8x24xf32>, vector<24x24xf32>, vector<8x24xf32> -> vector<8x24xf32>
    %c8_210 = arith.constant 8 : index
    %c1_211 = arith.constant 1 : index
    %c0_212 = arith.constant 0 : index
    %c0_213 = arith.constant 0 : index
    %292 = vector.load %arg1[%c8_210, %c1_211, %c0_212, %c0_213] : memref<15x2x8x24xf32, #tpu.memory_space<vmem>>, vector<1x1x8x24xf32>
    %293 = vector.shape_cast %292 : vector<1x1x8x24xf32> to vector<8x24xf32>
    %294 = arith.mulf %293, %285 : vector<8x24xf32>
    %c8_214 = arith.constant 8 : index
    %c1_215 = arith.constant 1 : index
    %c0_216 = arith.constant 0 : index
    %c0_217 = arith.constant 0 : index
    %295 = vector.load %arg3[%c8_214, %c1_215, %c0_216, %c0_217] : memref<14x2x24x24xf32, #tpu.memory_space<vmem>>, vector<1x1x24x24xf32>
    %296 = vector.shape_cast %295 : vector<1x1x24x24xf32> to vector<24x24xf32>
    %cst_218 = arith.constant dense<0.000000e+00> : vector<8x24xf32>
    %297 = tpu.matmul %294, %296, %cst_218 {dimension_numbers = #tpu.dot_dimension_numbers<[1], [0], [0], [1], [0, 0, 1, 1], [], []>} : vector<8x24xf32>, vector<24x24xf32>, vector<8x24xf32> -> vector<8x24xf32>
    %298 = arith.addf %291, %297 : vector<8x24xf32>
    %cst_219 = arith.constant dense<0.000000e+00> : vector<24xf32>
    %299 = vector.multi_reduction <add>, %298, %cst_219 [0] : vector<8x24xf32> to vector<24xf32>
    %300 = vector.shape_cast %299 : vector<24xf32> to vector<1x24xf32>
    %cst_220 = arith.constant dense<0.000000e+00> : vector<1x24xf32>
    %301 = tpu.matmul %300, %2, %cst_220 {dimension_numbers = #tpu.dot_dimension_numbers<[1], [0], [0], [1], [0, 0, 1, 1], [], []>} : vector<1x24xf32>, vector<24x24xf32>, vector<1x24xf32> -> vector<1x24xf32>
    %cst_221 = arith.constant 0.0416666679 : f32
    %302 = vector.broadcast %cst_221 : f32 to vector<1x24xf32>
    %303 = arith.mulf %301, %302 : vector<1x24xf32>
    %304 = vector.broadcast %303 : vector<1x24xf32> to vector<8x24xf32>
    %305 = arith.subf %298, %304 : vector<8x24xf32>
    %306 = arith.mulf %305, %305 : vector<8x24xf32>
    %cst_222 = arith.constant dense<0.000000e+00> : vector<24xf32>
    %307 = vector.multi_reduction <add>, %306, %cst_222 [0] : vector<8x24xf32> to vector<24xf32>
    %308 = vector.shape_cast %307 : vector<24xf32> to vector<1x24xf32>
    %cst_223 = arith.constant dense<0.000000e+00> : vector<1x24xf32>
    %309 = tpu.matmul %308, %2, %cst_223 {dimension_numbers = #tpu.dot_dimension_numbers<[1], [0], [0], [1], [0, 0, 1, 1], [], []>} : vector<1x24xf32>, vector<24x24xf32>, vector<1x24xf32> -> vector<1x24xf32>
    %cst_224 = arith.constant 0.0416666679 : f32
    %310 = vector.broadcast %cst_224 : f32 to vector<1x24xf32>
    %311 = arith.mulf %309, %310 : vector<1x24xf32>
    %cst_225 = arith.constant 9.99999974E-6 : f32
    %312 = vector.broadcast %cst_225 : f32 to vector<1x24xf32>
    %313 = arith.addf %311, %312 : vector<1x24xf32>
    %314 = math.rsqrt %313 : vector<1x24xf32>
    %315 = vector.broadcast %314 : vector<1x24xf32> to vector<8x24xf32>
    %316 = arith.mulf %305, %315 : vector<8x24xf32>
    %317 = vector.broadcast %0 : vector<1x24xf32> to vector<8x24xf32>
    %318 = arith.mulf %316, %317 : vector<8x24xf32>
    %319 = vector.broadcast %1 : vector<1x24xf32> to vector<8x24xf32>
    %320 = arith.addf %318, %319 : vector<8x24xf32>
    %c9 = arith.constant 9 : index
    %c0_226 = arith.constant 0 : index
    %c0_227 = arith.constant 0 : index
    %c0_228 = arith.constant 0 : index
    %321 = vector.load %arg1[%c9, %c0_226, %c0_227, %c0_228] : memref<15x2x8x24xf32, #tpu.memory_space<vmem>>, vector<1x1x8x24xf32>
    %322 = vector.shape_cast %321 : vector<1x1x8x24xf32> to vector<8x24xf32>
    %323 = arith.mulf %322, %320 : vector<8x24xf32>
    %c9_229 = arith.constant 9 : index
    %c0_230 = arith.constant 0 : index
    %c0_231 = arith.constant 0 : index
    %c0_232 = arith.constant 0 : index
    %324 = vector.load %arg3[%c9_229, %c0_230, %c0_231, %c0_232] : memref<14x2x24x24xf32, #tpu.memory_space<vmem>>, vector<1x1x24x24xf32>
    %325 = vector.shape_cast %324 : vector<1x1x24x24xf32> to vector<24x24xf32>
    %cst_233 = arith.constant dense<0.000000e+00> : vector<8x24xf32>
    %326 = tpu.matmul %323, %325, %cst_233 {dimension_numbers = #tpu.dot_dimension_numbers<[1], [0], [0], [1], [0, 0, 1, 1], [], []>} : vector<8x24xf32>, vector<24x24xf32>, vector<8x24xf32> -> vector<8x24xf32>
    %c9_234 = arith.constant 9 : index
    %c1_235 = arith.constant 1 : index
    %c0_236 = arith.constant 0 : index
    %c0_237 = arith.constant 0 : index
    %327 = vector.load %arg1[%c9_234, %c1_235, %c0_236, %c0_237] : memref<15x2x8x24xf32, #tpu.memory_space<vmem>>, vector<1x1x8x24xf32>
    %328 = vector.shape_cast %327 : vector<1x1x8x24xf32> to vector<8x24xf32>
    %329 = arith.mulf %328, %320 : vector<8x24xf32>
    %c9_238 = arith.constant 9 : index
    %c1_239 = arith.constant 1 : index
    %c0_240 = arith.constant 0 : index
    %c0_241 = arith.constant 0 : index
    %330 = vector.load %arg3[%c9_238, %c1_239, %c0_240, %c0_241] : memref<14x2x24x24xf32, #tpu.memory_space<vmem>>, vector<1x1x24x24xf32>
    %331 = vector.shape_cast %330 : vector<1x1x24x24xf32> to vector<24x24xf32>
    %cst_242 = arith.constant dense<0.000000e+00> : vector<8x24xf32>
    %332 = tpu.matmul %329, %331, %cst_242 {dimension_numbers = #tpu.dot_dimension_numbers<[1], [0], [0], [1], [0, 0, 1, 1], [], []>} : vector<8x24xf32>, vector<24x24xf32>, vector<8x24xf32> -> vector<8x24xf32>
    %333 = arith.addf %326, %332 : vector<8x24xf32>
    %cst_243 = arith.constant dense<0.000000e+00> : vector<24xf32>
    %334 = vector.multi_reduction <add>, %333, %cst_243 [0] : vector<8x24xf32> to vector<24xf32>
    %335 = vector.shape_cast %334 : vector<24xf32> to vector<1x24xf32>
    %cst_244 = arith.constant dense<0.000000e+00> : vector<1x24xf32>
    %336 = tpu.matmul %335, %2, %cst_244 {dimension_numbers = #tpu.dot_dimension_numbers<[1], [0], [0], [1], [0, 0, 1, 1], [], []>} : vector<1x24xf32>, vector<24x24xf32>, vector<1x24xf32> -> vector<1x24xf32>
    %cst_245 = arith.constant 0.0416666679 : f32
    %337 = vector.broadcast %cst_245 : f32 to vector<1x24xf32>
    %338 = arith.mulf %336, %337 : vector<1x24xf32>
    %339 = vector.broadcast %338 : vector<1x24xf32> to vector<8x24xf32>
    %340 = arith.subf %333, %339 : vector<8x24xf32>
    %341 = arith.mulf %340, %340 : vector<8x24xf32>
    %cst_246 = arith.constant dense<0.000000e+00> : vector<24xf32>
    %342 = vector.multi_reduction <add>, %341, %cst_246 [0] : vector<8x24xf32> to vector<24xf32>
    %343 = vector.shape_cast %342 : vector<24xf32> to vector<1x24xf32>
    %cst_247 = arith.constant dense<0.000000e+00> : vector<1x24xf32>
    %344 = tpu.matmul %343, %2, %cst_247 {dimension_numbers = #tpu.dot_dimension_numbers<[1], [0], [0], [1], [0, 0, 1, 1], [], []>} : vector<1x24xf32>, vector<24x24xf32>, vector<1x24xf32> -> vector<1x24xf32>
    %cst_248 = arith.constant 0.0416666679 : f32
    %345 = vector.broadcast %cst_248 : f32 to vector<1x24xf32>
    %346 = arith.mulf %344, %345 : vector<1x24xf32>
    %cst_249 = arith.constant 9.99999974E-6 : f32
    %347 = vector.broadcast %cst_249 : f32 to vector<1x24xf32>
    %348 = arith.addf %346, %347 : vector<1x24xf32>
    %349 = math.rsqrt %348 : vector<1x24xf32>
    %350 = vector.broadcast %349 : vector<1x24xf32> to vector<8x24xf32>
    %351 = arith.mulf %340, %350 : vector<8x24xf32>
    %352 = vector.broadcast %0 : vector<1x24xf32> to vector<8x24xf32>
    %353 = arith.mulf %351, %352 : vector<8x24xf32>
    %354 = vector.broadcast %1 : vector<1x24xf32> to vector<8x24xf32>
    %355 = arith.addf %353, %354 : vector<8x24xf32>
    %c10 = arith.constant 10 : index
    %c0_250 = arith.constant 0 : index
    %c0_251 = arith.constant 0 : index
    %c0_252 = arith.constant 0 : index
    %356 = vector.load %arg1[%c10, %c0_250, %c0_251, %c0_252] : memref<15x2x8x24xf32, #tpu.memory_space<vmem>>, vector<1x1x8x24xf32>
    %357 = vector.shape_cast %356 : vector<1x1x8x24xf32> to vector<8x24xf32>
    %358 = arith.mulf %357, %355 : vector<8x24xf32>
    %c10_253 = arith.constant 10 : index
    %c0_254 = arith.constant 0 : index
    %c0_255 = arith.constant 0 : index
    %c0_256 = arith.constant 0 : index
    %359 = vector.load %arg3[%c10_253, %c0_254, %c0_255, %c0_256] : memref<14x2x24x24xf32, #tpu.memory_space<vmem>>, vector<1x1x24x24xf32>
    %360 = vector.shape_cast %359 : vector<1x1x24x24xf32> to vector<24x24xf32>
    %cst_257 = arith.constant dense<0.000000e+00> : vector<8x24xf32>
    %361 = tpu.matmul %358, %360, %cst_257 {dimension_numbers = #tpu.dot_dimension_numbers<[1], [0], [0], [1], [0, 0, 1, 1], [], []>} : vector<8x24xf32>, vector<24x24xf32>, vector<8x24xf32> -> vector<8x24xf32>
    %c10_258 = arith.constant 10 : index
    %c1_259 = arith.constant 1 : index
    %c0_260 = arith.constant 0 : index
    %c0_261 = arith.constant 0 : index
    %362 = vector.load %arg1[%c10_258, %c1_259, %c0_260, %c0_261] : memref<15x2x8x24xf32, #tpu.memory_space<vmem>>, vector<1x1x8x24xf32>
    %363 = vector.shape_cast %362 : vector<1x1x8x24xf32> to vector<8x24xf32>
    %364 = arith.mulf %363, %355 : vector<8x24xf32>
    %c10_262 = arith.constant 10 : index
    %c1_263 = arith.constant 1 : index
    %c0_264 = arith.constant 0 : index
    %c0_265 = arith.constant 0 : index
    %365 = vector.load %arg3[%c10_262, %c1_263, %c0_264, %c0_265] : memref<14x2x24x24xf32, #tpu.memory_space<vmem>>, vector<1x1x24x24xf32>
    %366 = vector.shape_cast %365 : vector<1x1x24x24xf32> to vector<24x24xf32>
    %cst_266 = arith.constant dense<0.000000e+00> : vector<8x24xf32>
    %367 = tpu.matmul %364, %366, %cst_266 {dimension_numbers = #tpu.dot_dimension_numbers<[1], [0], [0], [1], [0, 0, 1, 1], [], []>} : vector<8x24xf32>, vector<24x24xf32>, vector<8x24xf32> -> vector<8x24xf32>
    %368 = arith.addf %361, %367 : vector<8x24xf32>
    %cst_267 = arith.constant dense<0.000000e+00> : vector<24xf32>
    %369 = vector.multi_reduction <add>, %368, %cst_267 [0] : vector<8x24xf32> to vector<24xf32>
    %370 = vector.shape_cast %369 : vector<24xf32> to vector<1x24xf32>
    %cst_268 = arith.constant dense<0.000000e+00> : vector<1x24xf32>
    %371 = tpu.matmul %370, %2, %cst_268 {dimension_numbers = #tpu.dot_dimension_numbers<[1], [0], [0], [1], [0, 0, 1, 1], [], []>} : vector<1x24xf32>, vector<24x24xf32>, vector<1x24xf32> -> vector<1x24xf32>
    %cst_269 = arith.constant 0.0416666679 : f32
    %372 = vector.broadcast %cst_269 : f32 to vector<1x24xf32>
    %373 = arith.mulf %371, %372 : vector<1x24xf32>
    %374 = vector.broadcast %373 : vector<1x24xf32> to vector<8x24xf32>
    %375 = arith.subf %368, %374 : vector<8x24xf32>
    %376 = arith.mulf %375, %375 : vector<8x24xf32>
    %cst_270 = arith.constant dense<0.000000e+00> : vector<24xf32>
    %377 = vector.multi_reduction <add>, %376, %cst_270 [0] : vector<8x24xf32> to vector<24xf32>
    %378 = vector.shape_cast %377 : vector<24xf32> to vector<1x24xf32>
    %cst_271 = arith.constant dense<0.000000e+00> : vector<1x24xf32>
    %379 = tpu.matmul %378, %2, %cst_271 {dimension_numbers = #tpu.dot_dimension_numbers<[1], [0], [0], [1], [0, 0, 1, 1], [], []>} : vector<1x24xf32>, vector<24x24xf32>, vector<1x24xf32> -> vector<1x24xf32>
    %cst_272 = arith.constant 0.0416666679 : f32
    %380 = vector.broadcast %cst_272 : f32 to vector<1x24xf32>
    %381 = arith.mulf %379, %380 : vector<1x24xf32>
    %cst_273 = arith.constant 9.99999974E-6 : f32
    %382 = vector.broadcast %cst_273 : f32 to vector<1x24xf32>
    %383 = arith.addf %381, %382 : vector<1x24xf32>
    %384 = math.rsqrt %383 : vector<1x24xf32>
    %385 = vector.broadcast %384 : vector<1x24xf32> to vector<8x24xf32>
    %386 = arith.mulf %375, %385 : vector<8x24xf32>
    %387 = vector.broadcast %0 : vector<1x24xf32> to vector<8x24xf32>
    %388 = arith.mulf %386, %387 : vector<8x24xf32>
    %389 = vector.broadcast %1 : vector<1x24xf32> to vector<8x24xf32>
    %390 = arith.addf %388, %389 : vector<8x24xf32>
    %c11 = arith.constant 11 : index
    %c0_274 = arith.constant 0 : index
    %c0_275 = arith.constant 0 : index
    %c0_276 = arith.constant 0 : index
    %391 = vector.load %arg1[%c11, %c0_274, %c0_275, %c0_276] : memref<15x2x8x24xf32, #tpu.memory_space<vmem>>, vector<1x1x8x24xf32>
    %392 = vector.shape_cast %391 : vector<1x1x8x24xf32> to vector<8x24xf32>
    %393 = arith.mulf %392, %390 : vector<8x24xf32>
    %c11_277 = arith.constant 11 : index
    %c0_278 = arith.constant 0 : index
    %c0_279 = arith.constant 0 : index
    %c0_280 = arith.constant 0 : index
    %394 = vector.load %arg3[%c11_277, %c0_278, %c0_279, %c0_280] : memref<14x2x24x24xf32, #tpu.memory_space<vmem>>, vector<1x1x24x24xf32>
    %395 = vector.shape_cast %394 : vector<1x1x24x24xf32> to vector<24x24xf32>
    %cst_281 = arith.constant dense<0.000000e+00> : vector<8x24xf32>
    %396 = tpu.matmul %393, %395, %cst_281 {dimension_numbers = #tpu.dot_dimension_numbers<[1], [0], [0], [1], [0, 0, 1, 1], [], []>} : vector<8x24xf32>, vector<24x24xf32>, vector<8x24xf32> -> vector<8x24xf32>
    %c11_282 = arith.constant 11 : index
    %c1_283 = arith.constant 1 : index
    %c0_284 = arith.constant 0 : index
    %c0_285 = arith.constant 0 : index
    %397 = vector.load %arg1[%c11_282, %c1_283, %c0_284, %c0_285] : memref<15x2x8x24xf32, #tpu.memory_space<vmem>>, vector<1x1x8x24xf32>
    %398 = vector.shape_cast %397 : vector<1x1x8x24xf32> to vector<8x24xf32>
    %399 = arith.mulf %398, %390 : vector<8x24xf32>
    %c11_286 = arith.constant 11 : index
    %c1_287 = arith.constant 1 : index
    %c0_288 = arith.constant 0 : index
    %c0_289 = arith.constant 0 : index
    %400 = vector.load %arg3[%c11_286, %c1_287, %c0_288, %c0_289] : memref<14x2x24x24xf32, #tpu.memory_space<vmem>>, vector<1x1x24x24xf32>
    %401 = vector.shape_cast %400 : vector<1x1x24x24xf32> to vector<24x24xf32>
    %cst_290 = arith.constant dense<0.000000e+00> : vector<8x24xf32>
    %402 = tpu.matmul %399, %401, %cst_290 {dimension_numbers = #tpu.dot_dimension_numbers<[1], [0], [0], [1], [0, 0, 1, 1], [], []>} : vector<8x24xf32>, vector<24x24xf32>, vector<8x24xf32> -> vector<8x24xf32>
    %403 = arith.addf %396, %402 : vector<8x24xf32>
    %cst_291 = arith.constant dense<0.000000e+00> : vector<24xf32>
    %404 = vector.multi_reduction <add>, %403, %cst_291 [0] : vector<8x24xf32> to vector<24xf32>
    %405 = vector.shape_cast %404 : vector<24xf32> to vector<1x24xf32>
    %cst_292 = arith.constant dense<0.000000e+00> : vector<1x24xf32>
    %406 = tpu.matmul %405, %2, %cst_292 {dimension_numbers = #tpu.dot_dimension_numbers<[1], [0], [0], [1], [0, 0, 1, 1], [], []>} : vector<1x24xf32>, vector<24x24xf32>, vector<1x24xf32> -> vector<1x24xf32>
    %cst_293 = arith.constant 0.0416666679 : f32
    %407 = vector.broadcast %cst_293 : f32 to vector<1x24xf32>
    %408 = arith.mulf %406, %407 : vector<1x24xf32>
    %409 = vector.broadcast %408 : vector<1x24xf32> to vector<8x24xf32>
    %410 = arith.subf %403, %409 : vector<8x24xf32>
    %411 = arith.mulf %410, %410 : vector<8x24xf32>
    %cst_294 = arith.constant dense<0.000000e+00> : vector<24xf32>
    %412 = vector.multi_reduction <add>, %411, %cst_294 [0] : vector<8x24xf32> to vector<24xf32>
    %413 = vector.shape_cast %412 : vector<24xf32> to vector<1x24xf32>
    %cst_295 = arith.constant dense<0.000000e+00> : vector<1x24xf32>
    %414 = tpu.matmul %413, %2, %cst_295 {dimension_numbers = #tpu.dot_dimension_numbers<[1], [0], [0], [1], [0, 0, 1, 1], [], []>} : vector<1x24xf32>, vector<24x24xf32>, vector<1x24xf32> -> vector<1x24xf32>
    %cst_296 = arith.constant 0.0416666679 : f32
    %415 = vector.broadcast %cst_296 : f32 to vector<1x24xf32>
    %416 = arith.mulf %414, %415 : vector<1x24xf32>
    %cst_297 = arith.constant 9.99999974E-6 : f32
    %417 = vector.broadcast %cst_297 : f32 to vector<1x24xf32>
    %418 = arith.addf %416, %417 : vector<1x24xf32>
    %419 = math.rsqrt %418 : vector<1x24xf32>
    %420 = vector.broadcast %419 : vector<1x24xf32> to vector<8x24xf32>
    %421 = arith.mulf %410, %420 : vector<8x24xf32>
    %422 = vector.broadcast %0 : vector<1x24xf32> to vector<8x24xf32>
    %423 = arith.mulf %421, %422 : vector<8x24xf32>
    %424 = vector.broadcast %1 : vector<1x24xf32> to vector<8x24xf32>
    %425 = arith.addf %423, %424 : vector<8x24xf32>
    %c12 = arith.constant 12 : index
    %c0_298 = arith.constant 0 : index
    %c0_299 = arith.constant 0 : index
    %c0_300 = arith.constant 0 : index
    %426 = vector.load %arg1[%c12, %c0_298, %c0_299, %c0_300] : memref<15x2x8x24xf32, #tpu.memory_space<vmem>>, vector<1x1x8x24xf32>
    %427 = vector.shape_cast %426 : vector<1x1x8x24xf32> to vector<8x24xf32>
    %428 = arith.mulf %427, %425 : vector<8x24xf32>
    %c12_301 = arith.constant 12 : index
    %c0_302 = arith.constant 0 : index
    %c0_303 = arith.constant 0 : index
    %c0_304 = arith.constant 0 : index
    %429 = vector.load %arg3[%c12_301, %c0_302, %c0_303, %c0_304] : memref<14x2x24x24xf32, #tpu.memory_space<vmem>>, vector<1x1x24x24xf32>
    %430 = vector.shape_cast %429 : vector<1x1x24x24xf32> to vector<24x24xf32>
    %cst_305 = arith.constant dense<0.000000e+00> : vector<8x24xf32>
    %431 = tpu.matmul %428, %430, %cst_305 {dimension_numbers = #tpu.dot_dimension_numbers<[1], [0], [0], [1], [0, 0, 1, 1], [], []>} : vector<8x24xf32>, vector<24x24xf32>, vector<8x24xf32> -> vector<8x24xf32>
    %c12_306 = arith.constant 12 : index
    %c1_307 = arith.constant 1 : index
    %c0_308 = arith.constant 0 : index
    %c0_309 = arith.constant 0 : index
    %432 = vector.load %arg1[%c12_306, %c1_307, %c0_308, %c0_309] : memref<15x2x8x24xf32, #tpu.memory_space<vmem>>, vector<1x1x8x24xf32>
    %433 = vector.shape_cast %432 : vector<1x1x8x24xf32> to vector<8x24xf32>
    %434 = arith.mulf %433, %425 : vector<8x24xf32>
    %c12_310 = arith.constant 12 : index
    %c1_311 = arith.constant 1 : index
    %c0_312 = arith.constant 0 : index
    %c0_313 = arith.constant 0 : index
    %435 = vector.load %arg3[%c12_310, %c1_311, %c0_312, %c0_313] : memref<14x2x24x24xf32, #tpu.memory_space<vmem>>, vector<1x1x24x24xf32>
    %436 = vector.shape_cast %435 : vector<1x1x24x24xf32> to vector<24x24xf32>
    %cst_314 = arith.constant dense<0.000000e+00> : vector<8x24xf32>
    %437 = tpu.matmul %434, %436, %cst_314 {dimension_numbers = #tpu.dot_dimension_numbers<[1], [0], [0], [1], [0, 0, 1, 1], [], []>} : vector<8x24xf32>, vector<24x24xf32>, vector<8x24xf32> -> vector<8x24xf32>
    %438 = arith.addf %431, %437 : vector<8x24xf32>
    %cst_315 = arith.constant dense<0.000000e+00> : vector<24xf32>
    %439 = vector.multi_reduction <add>, %438, %cst_315 [0] : vector<8x24xf32> to vector<24xf32>
    %440 = vector.shape_cast %439 : vector<24xf32> to vector<1x24xf32>
    %cst_316 = arith.constant dense<0.000000e+00> : vector<1x24xf32>
    %441 = tpu.matmul %440, %2, %cst_316 {dimension_numbers = #tpu.dot_dimension_numbers<[1], [0], [0], [1], [0, 0, 1, 1], [], []>} : vector<1x24xf32>, vector<24x24xf32>, vector<1x24xf32> -> vector<1x24xf32>
    %cst_317 = arith.constant 0.0416666679 : f32
    %442 = vector.broadcast %cst_317 : f32 to vector<1x24xf32>
    %443 = arith.mulf %441, %442 : vector<1x24xf32>
    %444 = vector.broadcast %443 : vector<1x24xf32> to vector<8x24xf32>
    %445 = arith.subf %438, %444 : vector<8x24xf32>
    %446 = arith.mulf %445, %445 : vector<8x24xf32>
    %cst_318 = arith.constant dense<0.000000e+00> : vector<24xf32>
    %447 = vector.multi_reduction <add>, %446, %cst_318 [0] : vector<8x24xf32> to vector<24xf32>
    %448 = vector.shape_cast %447 : vector<24xf32> to vector<1x24xf32>
    %cst_319 = arith.constant dense<0.000000e+00> : vector<1x24xf32>
    %449 = tpu.matmul %448, %2, %cst_319 {dimension_numbers = #tpu.dot_dimension_numbers<[1], [0], [0], [1], [0, 0, 1, 1], [], []>} : vector<1x24xf32>, vector<24x24xf32>, vector<1x24xf32> -> vector<1x24xf32>
    %cst_320 = arith.constant 0.0416666679 : f32
    %450 = vector.broadcast %cst_320 : f32 to vector<1x24xf32>
    %451 = arith.mulf %449, %450 : vector<1x24xf32>
    %cst_321 = arith.constant 9.99999974E-6 : f32
    %452 = vector.broadcast %cst_321 : f32 to vector<1x24xf32>
    %453 = arith.addf %451, %452 : vector<1x24xf32>
    %454 = math.rsqrt %453 : vector<1x24xf32>
    %455 = vector.broadcast %454 : vector<1x24xf32> to vector<8x24xf32>
    %456 = arith.mulf %445, %455 : vector<8x24xf32>
    %457 = vector.broadcast %0 : vector<1x24xf32> to vector<8x24xf32>
    %458 = arith.mulf %456, %457 : vector<8x24xf32>
    %459 = vector.broadcast %1 : vector<1x24xf32> to vector<8x24xf32>
    %460 = arith.addf %458, %459 : vector<8x24xf32>
    %c13 = arith.constant 13 : index
    %c0_322 = arith.constant 0 : index
    %c0_323 = arith.constant 0 : index
    %c0_324 = arith.constant 0 : index
    %461 = vector.load %arg1[%c13, %c0_322, %c0_323, %c0_324] : memref<15x2x8x24xf32, #tpu.memory_space<vmem>>, vector<1x1x8x24xf32>
    %462 = vector.shape_cast %461 : vector<1x1x8x24xf32> to vector<8x24xf32>
    %463 = arith.mulf %462, %460 : vector<8x24xf32>
    %c13_325 = arith.constant 13 : index
    %c0_326 = arith.constant 0 : index
    %c0_327 = arith.constant 0 : index
    %c0_328 = arith.constant 0 : index
    %464 = vector.load %arg3[%c13_325, %c0_326, %c0_327, %c0_328] : memref<14x2x24x24xf32, #tpu.memory_space<vmem>>, vector<1x1x24x24xf32>
    %465 = vector.shape_cast %464 : vector<1x1x24x24xf32> to vector<24x24xf32>
    %cst_329 = arith.constant dense<0.000000e+00> : vector<8x24xf32>
    %466 = tpu.matmul %463, %465, %cst_329 {dimension_numbers = #tpu.dot_dimension_numbers<[1], [0], [0], [1], [0, 0, 1, 1], [], []>} : vector<8x24xf32>, vector<24x24xf32>, vector<8x24xf32> -> vector<8x24xf32>
    %c13_330 = arith.constant 13 : index
    %c1_331 = arith.constant 1 : index
    %c0_332 = arith.constant 0 : index
    %c0_333 = arith.constant 0 : index
    %467 = vector.load %arg1[%c13_330, %c1_331, %c0_332, %c0_333] : memref<15x2x8x24xf32, #tpu.memory_space<vmem>>, vector<1x1x8x24xf32>
    %468 = vector.shape_cast %467 : vector<1x1x8x24xf32> to vector<8x24xf32>
    %469 = arith.mulf %468, %460 : vector<8x24xf32>
    %c13_334 = arith.constant 13 : index
    %c1_335 = arith.constant 1 : index
    %c0_336 = arith.constant 0 : index
    %c0_337 = arith.constant 0 : index
    %470 = vector.load %arg3[%c13_334, %c1_335, %c0_336, %c0_337] : memref<14x2x24x24xf32, #tpu.memory_space<vmem>>, vector<1x1x24x24xf32>
    %471 = vector.shape_cast %470 : vector<1x1x24x24xf32> to vector<24x24xf32>
    %cst_338 = arith.constant dense<0.000000e+00> : vector<8x24xf32>
    %472 = tpu.matmul %469, %471, %cst_338 {dimension_numbers = #tpu.dot_dimension_numbers<[1], [0], [0], [1], [0, 0, 1, 1], [], []>} : vector<8x24xf32>, vector<24x24xf32>, vector<8x24xf32> -> vector<8x24xf32>
    %473 = arith.addf %466, %472 : vector<8x24xf32>
    %cst_339 = arith.constant dense<0.000000e+00> : vector<24xf32>
    %474 = vector.multi_reduction <add>, %473, %cst_339 [0] : vector<8x24xf32> to vector<24xf32>
    %475 = vector.shape_cast %474 : vector<24xf32> to vector<1x24xf32>
    %cst_340 = arith.constant dense<0.000000e+00> : vector<1x24xf32>
    %476 = tpu.matmul %475, %2, %cst_340 {dimension_numbers = #tpu.dot_dimension_numbers<[1], [0], [0], [1], [0, 0, 1, 1], [], []>} : vector<1x24xf32>, vector<24x24xf32>, vector<1x24xf32> -> vector<1x24xf32>
    %cst_341 = arith.constant 0.0416666679 : f32
    %477 = vector.broadcast %cst_341 : f32 to vector<1x24xf32>
    %478 = arith.mulf %476, %477 : vector<1x24xf32>
    %479 = vector.broadcast %478 : vector<1x24xf32> to vector<8x24xf32>
    %480 = arith.subf %473, %479 : vector<8x24xf32>
    %481 = arith.mulf %480, %480 : vector<8x24xf32>
    %cst_342 = arith.constant dense<0.000000e+00> : vector<24xf32>
    %482 = vector.multi_reduction <add>, %481, %cst_342 [0] : vector<8x24xf32> to vector<24xf32>
    %483 = vector.shape_cast %482 : vector<24xf32> to vector<1x24xf32>
    %cst_343 = arith.constant dense<0.000000e+00> : vector<1x24xf32>
    %484 = tpu.matmul %483, %2, %cst_343 {dimension_numbers = #tpu.dot_dimension_numbers<[1], [0], [0], [1], [0, 0, 1, 1], [], []>} : vector<1x24xf32>, vector<24x24xf32>, vector<1x24xf32> -> vector<1x24xf32>
    %cst_344 = arith.constant 0.0416666679 : f32
    %485 = vector.broadcast %cst_344 : f32 to vector<1x24xf32>
    %486 = arith.mulf %484, %485 : vector<1x24xf32>
    %cst_345 = arith.constant 9.99999974E-6 : f32
    %487 = vector.broadcast %cst_345 : f32 to vector<1x24xf32>
    %488 = arith.addf %486, %487 : vector<1x24xf32>
    %489 = math.rsqrt %488 : vector<1x24xf32>
    %490 = vector.broadcast %489 : vector<1x24xf32> to vector<8x24xf32>
    %491 = arith.mulf %480, %490 : vector<8x24xf32>
    %492 = vector.broadcast %0 : vector<1x24xf32> to vector<8x24xf32>
    %493 = arith.mulf %491, %492 : vector<8x24xf32>
    %494 = vector.broadcast %1 : vector<1x24xf32> to vector<8x24xf32>
    %495 = arith.addf %493, %494 : vector<8x24xf32>
    %c14 = arith.constant 14 : index
    %c0_346 = arith.constant 0 : index
    %c0_347 = arith.constant 0 : index
    %c0_348 = arith.constant 0 : index
    %496 = vector.load %arg1[%c14, %c0_346, %c0_347, %c0_348] : memref<15x2x8x24xf32, #tpu.memory_space<vmem>>, vector<1x1x8x24xf32>
    %497 = vector.shape_cast %496 : vector<1x1x8x24xf32> to vector<8x24xf32>
    %498 = arith.mulf %497, %495 : vector<8x24xf32>
    %c0_349 = arith.constant 0 : index
    %c0_350 = arith.constant 0 : index
    %c0_351 = arith.constant 0 : index
    %499 = vector.load %arg4[%c0_349, %c0_350, %c0_351] : memref<2x24x6xf32, #tpu.memory_space<vmem>>, vector<1x24x6xf32>
    %500 = vector.shape_cast %499 : vector<1x24x6xf32> to vector<24x6xf32>
    %cst_352 = arith.constant dense<0.000000e+00> : vector<8x6xf32>
    %501 = tpu.matmul %498, %500, %cst_352 {dimension_numbers = #tpu.dot_dimension_numbers<[1], [0], [0], [1], [0, 0, 1, 1], [], []>} : vector<8x24xf32>, vector<24x6xf32>, vector<8x6xf32> -> vector<8x6xf32>
    %c14_353 = arith.constant 14 : index
    %c1_354 = arith.constant 1 : index
    %c0_355 = arith.constant 0 : index
    %c0_356 = arith.constant 0 : index
    %502 = vector.load %arg1[%c14_353, %c1_354, %c0_355, %c0_356] : memref<15x2x8x24xf32, #tpu.memory_space<vmem>>, vector<1x1x8x24xf32>
    %503 = vector.shape_cast %502 : vector<1x1x8x24xf32> to vector<8x24xf32>
    %504 = arith.mulf %503, %495 : vector<8x24xf32>
    %c1_357 = arith.constant 1 : index
    %c0_358 = arith.constant 0 : index
    %c0_359 = arith.constant 0 : index
    %505 = vector.load %arg4[%c1_357, %c0_358, %c0_359] : memref<2x24x6xf32, #tpu.memory_space<vmem>>, vector<1x24x6xf32>
    %506 = vector.shape_cast %505 : vector<1x24x6xf32> to vector<24x6xf32>
    %cst_360 = arith.constant dense<0.000000e+00> : vector<8x6xf32>
    %507 = tpu.matmul %504, %506, %cst_360 {dimension_numbers = #tpu.dot_dimension_numbers<[1], [0], [0], [1], [0, 0, 1, 1], [], []>} : vector<8x24xf32>, vector<24x6xf32>, vector<8x6xf32> -> vector<8x6xf32>
    %508 = arith.addf %501, %507 : vector<8x6xf32>
    %c0_361 = arith.constant 0 : index
    %c0_362 = arith.constant 0 : index
    %509 = vector.load %arg7[%c0_361, %c0_362] : memref<8x6xf32, #tpu.memory_space<vmem>>, vector<8x6xf32>
    tpu.vector_store %arg7[%c0_361, %c0_362], %508 {strides = array<i32>} : memref<8x6xf32, #tpu.memory_space<vmem>>, vector<8x6xf32>,
    return
  }
}

</mosaic_0001>

<bundles_post_ra>
// kernel: tile.28
= control target key start
LH: loop header
LB: loop body
LE: loop exit
PB: predicated region body
PF: predicated region fallthrough
CT: control target
= control target key end

     0   :  { %s202_s0 = inlined_call_operand.vmem [shape: f32[8,8], index: 0, kind: input, shape index: {}]   ;;  %s203_s1 = inlined_call_operand.vmem [shape: f32[3,8,3,8], index: 1, kind: output, shape index: {}]  }
   0x1   :  { %v4_v0 = vld [vmem:[%s202_s0] ss:$0 sm:$0xff]  ;;  %v68_v1 = vld [vmem:[%s202_s0 + $0x1] ss:$0 sm:$0xff]  ;;  %v72_v2 = vld [vmem:[%s202_s0 + $0x2] ss:$0 sm:$0xff] }
   0x2   :  { %5 = vst [vmem:[%s203_s1] sm:$0xf] %v4_v0  ;;  %66 = vst [vmem:[%s203_s1 + $0x20] sm:$0xf] %v4_v0  ;;  %v76_v3 = vld [vmem:[%s202_s0 + $0x3] ss:$0 sm:$0xff] }
   0x3   :  { %67 = vst [vmem:[%s203_s1 + $0x40] sm:$0xf] %v4_v0  ;;  %69 = vst [vmem:[%s203_s1 + $0x4] sm:$0xf] %v68_v1  ;;  %v80_v4 = vld [vmem:[%s202_s0 + $0x4] ss:$0 sm:$0xff] }
   0x4   :  { %70 = vst [vmem:[%s203_s1 + $0x24] sm:$0xf] %v68_v1  ;;  %71 = vst [vmem:[%s203_s1 + $0x44] sm:$0xf] %v68_v1  ;;  %v84_v5 = vld [vmem:[%s202_s0 + $0x5] ss:$0 sm:$0xff] }
   0x5   :  { %73 = vst [vmem:[%s203_s1 + $0x8] sm:$0xf] %v72_v2  ;;  %74 = vst [vmem:[%s203_s1 + $0x28] sm:$0xf] %v72_v2  ;;  %v88_v6 = vld [vmem:[%s202_s0 + $0x6] ss:$0 sm:$0xff] }
   0x6   :  { %75 = vst [vmem:[%s203_s1 + $0x48] sm:$0xf] %v72_v2  ;;  %77 = vst [vmem:[%s203_s1 + $0xc] sm:$0xf] %v76_v3  ;;  %v92_v7 = vld [vmem:[%s202_s0 + $0x7] ss:$0 sm:$0xff] }
   0x7   :  { %78 = vst [vmem:[%s203_s1 + $0x2c] sm:$0xf] %v76_v3  ;;  %79 = vst [vmem:[%s203_s1 + $0x4c] sm:$0xf] %v76_v3 }
   0x8   :  { %81 = vst [vmem:[%s203_s1 + $0x10] sm:$0xf] %v80_v4  ;;  %82 = vst [vmem:[%s203_s1 + $0x30] sm:$0xf] %v80_v4 }
   0x9   :  { %83 = vst [vmem:[%s203_s1 + $0x50] sm:$0xf] %v80_v4  ;;  %85 = vst [vmem:[%s203_s1 + $0x14] sm:$0xf] %v84_v5 }
   0xa   :  { %86 = vst [vmem:[%s203_s1 + $0x34] sm:$0xf] %v84_v5  ;;  %87 = vst [vmem:[%s203_s1 + $0x54] sm:$0xf] %v84_v5 }
   0xb   :  { %89 = vst [vmem:[%s203_s1 + $0x18] sm:$0xf] %v88_v6  ;;  %90 = vst [vmem:[%s203_s1 + $0x38] sm:$0xf] %v88_v6 }
   0xc   :  { %91 = vst [vmem:[%s203_s1 + $0x58] sm:$0xf] %v88_v6  ;;  %93 = vst [vmem:[%s203_s1 + $0x1c] sm:$0xf] %v92_v7 }
   0xd   :  { %94 = vst [vmem:[%s203_s1 + $0x3c] sm:$0xf] %v92_v7  ;;  %95 = vst [vmem:[%s203_s1 + $0x5c] sm:$0xf] %v92_v7 }

// kernel: tile.18
= control target key start
LH: loop header
LB: loop body
LE: loop exit
PB: predicated region body
PF: predicated region fallthrough
CT: control target
= control target key end

     0   :  { %s22_s0 = inlined_call_operand.vmem [shape: f32[8], index: 0, kind: input, shape index: {}]   ;;  %s23_s1 = inlined_call_operand.vmem [shape: f32[3,8], index: 1, kind: output, shape index: {}]  }
   0x1   :  { %v4_v0 = vld [vmem:[%s22_s0] ss:$0 sm:$0xff] }
   0x2   :  { %5 = vst [vmem:[%s23_s1] sm:$0xf] %v4_v0 }

// kernel: tile.23
= control target key start
LH: loop header
LB: loop body
LE: loop exit
PB: predicated region body
PF: predicated region fallthrough
CT: control target
= control target key end

     0   :  { %vm8_vm0 = vcmask 64512   ;;  %s33_s8 = smov 8   ;;  %vm14_vm1 = vcmask 195712   ;;  %vm20_vm2 = vcmask 130112   ;;  %s50_s0 = inlined_call_operand.vmem [shape: f32[3,8], index: 0, kind: input, shape index: {}]   ;;  %s51_s1 = inlined_call_operand.vmem [shape: f32[1,24], index: 1, kind: output, shape index: {}]  }
   0x1   :  { %v5_v0 = vld [vmem:[%s50_s0] sm:$0xf]  ;;  %s32_s0 = smov 16  }
   0x2   :  { %6 = vst [vmem:[#allocation1] sm:$0xf] %v5_v0 }
   0x9   :  { %v11_v1 = vld [vmem:[#allocation1 + $0x2] sm:$0x1]   ;;  %v7_v2 = vld [vmem:[#allocation1] sm:$0x1]   ;;  %v17_v3 = vld [vmem:[#allocation1 + $0x1] sm:$0x1]  }
   0xa   :  { %12 = vrot.lane.b32.xlu0 %v11_v1, %s32_s0  ;;  %9 = vst.msk [vmem:[#allocation0] sm:$0x1] %vm8_vm0, %v7_v2  }
   0xe   :  { %18 = vrot.lane.b32.xlu0 %v17_v3, %s33_s8 }
  0x7c   :  { %v13_v4 = vpop.permute.xlu0 %12  }
  0x7d   :  { %15 = vst.msk [vmem:[#allocation0] sm:$0x1] %vm14_vm1, %v13_v4  }
  0x80   :  { %v19_v5 = vpop.permute.xlu0 %18  }
  0x81   :  { %21 = vst.msk [vmem:[#allocation0] sm:$0x1] %vm20_vm2, %v19_v5  }
  0x88   :  { %v26_v6 = vld [vmem:[#allocation0] sm:$0x1] }
  0x89   :  { %29 = vst [vmem:[%s51_s1] sm:$0x1] %v26_v6 }

// kernel: ttbn_forward.1
= control target key start
LH: loop header
LB: loop body
LE: loop exit
PB: predicated region body
PF: predicated region fallthrough
CT: control target
= control target key end

     0   :  { %vm37_vm0 = vcmask 1041408   ;;  %vm33_vm1 = vcmask 15360   ;;  %v5972_v0 = vmov 0.0   ;;  %vm5973_vm2 = vmmov 0   ;;  %s6954_s2 = inlined_call_operand.vmem [shape: f32[2,24], index: 2, kind: input, shape index: {}]   ;;  %s6955_s0 = inlined_call_operand.vmem [shape: f32[8,2], index: 0, kind: input, shape index: {}]   ;;  %s6956_s3 = inlined_call_operand.vmem [shape: f32[14,2,24,24], index: 3, kind: input, shape index: {}]   ;;  %s6957_s1 = inlined_call_operand.vmem [shape: f32[15,2,8,24], index: 1, kind: input, shape index: {}]   ;;  %s6958_s6 = inlined_call_operand.vmem [shape: f32[24,24], index: 6, kind: input, shape index: {}]   ;;  %s6959_s5 = inlined_call_operand.vmem [shape: f32[2,24], index: 5, kind: input, shape index: {}]   ;;  %s6960_s4 = inlined_call_operand.vmem [shape: f32[2,24,6], index: 4, kind: input, shape index: {}]   ;;  %s6961_s7 = inlined_call_operand.vmem [shape: f32[8,6], index: 7, kind: output, shape index: {}]  }
   0x1   :  { %5410 = vmatprep.subr.mxu0 %v5972_v0  ;;  %v32_v1 = vld [vmem:[%s6954_s2] sm:$0x3]  ;;  %5412 = vmatprep.mubr.msk.f32.mxu0 %vm5973_vm2, %v5972_v0  ;;  %v5006_v3 = vld [vmem:[%s6956_s3 + $0x28] sm:$0xff]  ;;  %v115_v4 = vld [vmem:[%s6956_s3 + $0x10] sm:$0xff]  ;;  %vm123_vm3 = vcmask 195584   ;;  %v351_v30 = vlaneseq  ;;  %vm4995_vm4 = vcmask 48128  }
   0x2   :  { %v31_v2 = vld [vmem:[%s6955_s0] sm:$0xff]  ;;  %5411 = vmatpush3.msk.msra.mxu0 %vm37_vm0, %v32_v1  ;;  %5415 = vmatprep.subr.mxu1 %v5972_v0  ;;  %v114_v6 = vld [vmem:[%s6956_s3 + $0x8] sm:$0xff]  ;;  %v5004_v7 = vld [vmem:[%s6956_s3 + $0x18] sm:$0xff] }
   0x3   :  { %5413 = vmatmul.mubr.msk.f32.vlgmr.msra.gmra.mxu0 %vm33_vm1, %v31_v2  ;;  %5424 = vmatprep.subr.mxu0 %v5972_v0  ;;  %v5005_v5 = vld [vmem:[%s6956_s3 + $0x20] sm:$0xff]  ;;  %v5003_v10 = vld [vmem:[%s6957_s1 + $0x8] sm:$0xff]  ;;  %v6068_v15 = vld [vmem:[%s6958_s6 + $0x10] sm:$0xff]  ;;  %v352_v31 = vshrl.u32 %v351_v30, 7 }
   0x4   :  { %5416 = vmatpush3.msra.mxu1 %v5006_v3  ;;  %5425 = vmatpush3.msra.mxu0 %v115_v4  ;;  %v113_v8 = vld [vmem:[%s6956_s3] sm:$0xff]  ;;  %v6076_v16 = vld [vmem:[%s6958_s6 + $0x8] sm:$0xff]  ;;  %v5020_v46 = vld [vmem:[%s6956_s3 + $0x58] sm:$0xff] }
   0x5   :  { %5417 = vmatprep.subr.mxu1 %v5972_v0  ;;  %5426 = vmatprep.subr.mxu0 %v5972_v0  ;;  %v111_v9 = vld [vmem:[%s6957_s1] sm:$0xff]  ;;  %v6096_v32 = vsub.s32 0, %v352_v31  ;;  %v5019_v48 = vld [vmem:[%s6956_s3 + $0x50] sm:$0xff]  ;;  %v5015_v49 = vld [vmem:[%s6956_s3 + $0x38] sm:$0xff] }
   0x6   :  { %5421 = vmatprep.mubr.msk.f32.mxu1 %vm5973_vm2, %v5972_v0  ;;  %5430 = vmatprep.mubr.msk.f32.mxu0 %vm5973_vm2, %v5972_v0  ;;  %v6085_v17 = vld [vmem:[%s6958_s6] sm:$0xff]  ;;  %v5018_v50 = vld [vmem:[%s6956_s3 + $0x48] sm:$0xff]  ;;  %v5014_v51 = vld [vmem:[%s6956_s3 + $0x30] sm:$0xff] }
   0x7   :  { %5418 = vmatpush3.msra.mxu1 %v5005_v5  ;;  %5427 = vmatpush3.msra.mxu0 %v114_v6  ;;  %v5016_v47 = vld [vmem:[%s6956_s3 + $0x40] sm:$0xff]  ;;  %v5017_v62 = vld [vmem:[%s6957_s1 + $0x18] sm:$0xff]  ;;  %v5013_v63 = vld [vmem:[%s6957_s1 + $0x10] sm:$0xff] }
   0x8   :  { %5419 = vmatprep.subr.mxu1 %v5972_v0  ;;  %5428 = vmatprep.subr.mxu0 %v5972_v0  ;;  %v6131_v58 = vld [vmem:[%s6959_s5] ss:$0 sm:$0xff]  ;;  %v6136_v60 = vld [vmem:[%s6959_s5 + $0x1] ss:$0 sm:$0xff] }
   0x9   :  { %5420 = vmatpush3.msra.mxu1 %v5004_v7  ;;  %5429 = vmatpush3.msra.mxu0 %v113_v8 }
   0xa   :  { %5433 = vmatprep.subr.mxu1 %v5972_v0  ;;  %5442 = vmatprep.subr.mxu0 %v5972_v0 }
  0xc3   :  { %v107_v11 = vpop.f32.mrf.mxu0 }
  0xc4   :  { %v112_v12 = vmul.f32 %v111_v9, %v107_v11  ;;  %v118_v13 = vmul.f32 %v5003_v10, %v107_v11 }
  0xc5   :  { %v5414_v14 = vpop.f32.mrf.mxu0 }
  0xc6   :  { %5422 = vmatmul.mubr.msk.f32.vlgmr.msra.gmra.mxu1 %vm123_vm3, %v118_v13  ;;  %5431 = vmatmul.mubr.msk.f32.vlgmr.msra.gmra.mxu0 %vm123_vm3, %v112_v12 }
  0xc7   :  { %5439 = vmatprep.mubr.msk.f32.mxu1 %vm5973_vm2, %v5972_v0  ;;  %5448 = vmatprep.mubr.msk.f32.mxu0 %vm5973_vm2, %v5972_v0 }
  0xc8   :  { %5434 = vmatpush3.msra.mxu1 %v6068_v15  ;;  %5443 = vmatpush3.msra.mxu0 %v6068_v15 }
  0xc9   :  { %5435 = vmatprep.subr.mxu1 %v5972_v0  ;;  %5444 = vmatprep.subr.mxu0 %v5972_v0 }
  0xca   :  { %5436 = vmatpush3.msra.mxu1 %v6076_v16  ;;  %5445 = vmatpush3.msra.mxu0 %v6076_v16 }
  0xcb   :  { %5437 = vmatprep.subr.mxu1 %v5972_v0  ;;  %5446 = vmatprep.subr.mxu0 %v5972_v0 }
  0xcc   :  { %5438 = vmatpush3.msra.mxu1 %v6085_v17  ;;  %5447 = vmatpush3.msra.mxu0 %v6085_v17 }
  0xcd   :  { %5451 = vmatprep.subr.mxu1 %v5972_v0  ;;  %5460 = vmatprep.subr.mxu0 %v5972_v0 }
 0x186   :  { %v193_v18 = vpop.f32.mrf.mxu1  ;;  %v266_v19 = vpop.f32.mrf.mxu0 }
 0x187   :  { %v267_v20 = vadd.f32 %v266_v19, %v193_v18 }
 0x188   :  { %v5423_v21 = vpop.f32.mrf.mxu1  ;;  %v5432_v22 = vpop.f32.mrf.mxu0 }
 0x189   :  { %v270_v23 = vsel %vm123_vm3, %v267_v20, 0.0 }
 0x18a   :  { %v271_v24 = vrot.slane %v270_v23, 4 }
 0x18c   :  { %v272_v25 = vadd.f32 %v271_v24, %v270_v23 }
 0x18e   :  { %v273_v26 = vrot.slane %v272_v25, 2 }
 0x190   :  { %v274_v27 = vadd.f32 %v273_v26, %v272_v25 }
 0x192   :  { %v275_v28 = vrot.slane %v274_v27, 1 }
 0x194   :  { %v276_v29 = vadd.f32 %v275_v28, %v274_v27 }
 0x196   :  { %5440 = vmatmul.mubr.msk.f32.vlgmr.msra.gmra.mxu1 %vm123_vm3, %v276_v29 }
 0x197   :  { %5457 = vmatprep.mubr.msk.f32.mxu1 %vm5973_vm2, %v5972_v0  ;;  %5452 = vmatpush3.msra.mxu1 %v5020_v46 }
 0x198   :  { %5453 = vmatprep.subr.mxu1 %v5972_v0 }
 0x199   :  { %5454 = vmatpush3.msra.mxu1 %v5019_v48  ;;  %v5025_v48 = vld [vmem:[%s6957_s1 + $0x20] sm:$0xff] }
 0x19a   :  { %5455 = vmatprep.subr.mxu1 %v5972_v0 }
 0x19b   :  { %5456 = vmatpush3.msra.mxu1 %v5018_v50 }
 0x19c   :  { %5469 = vmatprep.subr.mxu1 %v5972_v0 }
 0x256   :  { %v346_v33 = vpop.f32.mrf.mxu1 }
 0x257   :  { %v350_v34 = vmul.f32 0.041666668, %v346_v33  ;;  %v5032_v33 = vld [vmem:[%s6956_s3 + $0x88] sm:$0xff] }
 0x258   :  { %v5441_v35 = vpop.f32.mrf.mxu1 }
 0x259   :  { %v354_v36 = vrot.slane %v350_v34, %v6096_v32  ;;  %v5028_v34 = vld [vmem:[%s6956_s3 + $0x70] sm:$0xff]  ;;  %v5031_v35 = vld [vmem:[%s6956_s3 + $0x80] sm:$0xff] }
 0x25b   :  { %v355_v37 = vsub.f32 %v267_v20, %v354_v36  ;;  %v5027_v36 = vld [vmem:[%s6956_s3 + $0x68] sm:$0xff] }
 0x25d   :  { %v356_v38 = vmul.f32 %v355_v37, %v355_v37 }
 0x25f   :  { %v357_v39 = vsel %vm123_vm3, %v356_v38, 0.0  ;;  %v5026_v38 = vld [vmem:[%s6956_s3 + $0x60] sm:$0xff] }
 0x260   :  { %v358_v40 = vrot.slane %v357_v39, 4 }
 0x262   :  { %v359_v41 = vadd.f32 %v358_v40, %v357_v39 }
 0x264   :  { %v360_v42 = vrot.slane %v359_v41, 2 }
 0x266   :  { %v361_v43 = vadd.f32 %v360_v42, %v359_v41 }
 0x268   :  { %v362_v44 = vrot.slane %v361_v43, 1 }
 0x26a   :  { %v363_v45 = vadd.f32 %v362_v44, %v361_v43 }
 0x26c   :  { %5449 = vmatmul.mubr.msk.f32.vlgmr.msra.gmra.mxu0 %vm123_vm3, %v363_v45 }
 0x26d   :  { %5466 = vmatprep.mubr.msk.f32.mxu0 %vm5973_vm2, %v5972_v0  ;;  %5461 = vmatpush3.msra.mxu0 %v5016_v47  ;;  %v5029_v47 = vld [vmem:[%s6957_s1 + $0x28] sm:$0xff] }
 0x26e   :  { %5462 = vmatprep.subr.mxu0 %v5972_v0 }
 0x26f   :  { %5463 = vmatpush3.msra.mxu0 %v5015_v49 }
 0x270   :  { %5464 = vmatprep.subr.mxu0 %v5972_v0 }
 0x271   :  { %5465 = vmatpush3.msra.mxu0 %v5014_v51 }
 0x272   :  { %5478 = vmatprep.subr.mxu0 %v5972_v0 }
 0x32c   :  { %v433_v52 = vpop.f32.mrf.mxu0 }
 0x32d   :  { %v437_v53 = vmul.f32 0.041666668, %v433_v52 }
 0x32e   :  { %v5450_v54 = vpop.f32.mrf.mxu0 }
 0x32f   :  { %v438_v55 = vadd.f32 1e-05, %v437_v53 }
 0x331   :  { %5939 = vrsqrt.f32 %v438_v55 }
 0x33e   :  { %v5940_v56 = vpop.eup %5939 }
 0x33f   :  { %v443_v57 = vrot.slane %v5940_v56, %v6096_v32 }
 0x341   :  { %v444_v59 = vmul.f32 %v443_v57, %v355_v37  ;;  %v5030_v37 = vld [vmem:[%s6956_s3 + $0x78] sm:$0xff] }
 0x343   :  { %v449_v61 = vmul.f32 %v6131_v58, %v444_v59 }
 0x345   :  { %v454_v1 = vadd.f32 %v6136_v60, %v449_v61 }
 0x347   :  { %v464_v2 = vmul.f32 %v5017_v62, %v454_v1  ;;  %v457_v3 = vmul.f32 %v5013_v63, %v454_v1 }
 0x349   :  { %5458 = vmatmul.mubr.msk.f32.vlgmr.msra.gmra.mxu1 %vm123_vm3, %v464_v2  ;;  %5467 = vmatmul.mubr.msk.f32.vlgmr.msra.gmra.mxu0 %vm123_vm3, %v457_v3 }
 0x34a   :  { %5470 = vmatpush3.msra.mxu1 %v6068_v15  ;;  %5475 = vmatprep.mubr.msk.f32.mxu1 %vm5973_vm2, %v5972_v0 }
 0x34b   :  { %5471 = vmatprep.subr.mxu1 %v5972_v0  ;;  %5479 = vmatpush3.msra.mxu0 %v6068_v15 }
 0x34c   :  { %5472 = vmatpush3.msra.mxu1 %v6076_v16  ;;  %5480 = vmatprep.subr.mxu0 %v5972_v0 }
 0x34d   :  { %5473 = vmatprep.subr.mxu1 %v5972_v0  ;;  %5481 = vmatpush3.msra.mxu0 %v6076_v16 }
 0x34e   :  { %5474 = vmatpush3.msra.mxu1 %v6085_v17  ;;  %5482 = vmatprep.subr.mxu0 %v5972_v0 }
 0x34f   :  { %5483 = vmatpush3.msra.mxu0 %v6085_v17  ;;  %5484 = vmatprep.mubr.msk.f32.mxu0 %vm5973_vm2, %v5972_v0 }
 0x350   :  { %5487 = vmatprep.subr.mxu1 %v5972_v0  ;;  %5496 = vmatprep.subr.mxu0 %v5972_v0 }
 0x409   :  { %v538_v4 = vpop.f32.mrf.mxu1  ;;  %v611_v5 = vpop.f32.mrf.mxu0 }
 0x40a   :  { %v612_v6 = vadd.f32 %v611_v5, %v538_v4 }
 0x40b   :  { %v5459_v7 = vpop.f32.mrf.mxu1  ;;  %v5468_v8 = vpop.f32.mrf.mxu0 }
 0x40c   :  { %v615_v9 = vsel %vm123_vm3, %v612_v6, 0.0 }
 0x40d   :  { %v616_v10 = vrot.slane %v615_v9, 4 }
 0x40f   :  { %v617_v11 = vadd.f32 %v616_v10, %v615_v9 }
 0x411   :  { %v618_v12 = vrot.slane %v617_v11, 2 }
 0x413   :  { %v619_v13 = vadd.f32 %v618_v12, %v617_v11 }
 0x415   :  { %v620_v14 = vrot.slane %v619_v13, 1 }
 0x417   :  { %v621_v18 = vadd.f32 %v620_v14, %v619_v13 }
 0x419   :  { %5476 = vmatmul.mubr.msk.f32.vlgmr.msra.gmra.mxu1 %vm123_vm3, %v621_v18 }
 0x41a   :  { %5493 = vmatprep.mubr.msk.f32.mxu1 %vm5973_vm2, %v5972_v0  ;;  %5488 = vmatpush3.msra.mxu1 %v5032_v33 }
 0x41b   :  { %5489 = vmatprep.subr.mxu1 %v5972_v0 }
 0x41c   :  { %5490 = vmatpush3.msra.mxu1 %v5031_v35  ;;  %v5037_v35 = vld [vmem:[%s6957_s1 + $0x30] sm:$0xff] }
 0x41d   :  { %5491 = vmatprep.subr.mxu1 %v5972_v0 }
 0x41e   :  { %5492 = vmatpush3.msra.mxu1 %v5030_v37 }
 0x41f   :  { %5505 = vmatprep.subr.mxu1 %v5972_v0 }
 0x4d9   :  { %v691_v19 = vpop.f32.mrf.mxu1 }
 0x4da   :  { %v695_v20 = vmul.f32 0.041666668, %v691_v19  ;;  %v5044_v19 = vld [vmem:[%s6956_s3 + $0xb8] sm:$0xff] }
 0x4db   :  { %v5477_v21 = vpop.f32.mrf.mxu1 }
 0x4dc   :  { %v699_v22 = vrot.slane %v695_v20, %v6096_v32  ;;  %v5040_v20 = vld [vmem:[%s6956_s3 + $0xa0] sm:$0xff]  ;;  %v5043_v21 = vld [vmem:[%s6956_s3 + $0xb0] sm:$0xff] }
 0x4de   :  { %v700_v23 = vsub.f32 %v612_v6, %v699_v22  ;;  %v5039_v22 = vld [vmem:[%s6956_s3 + $0x98] sm:$0xff] }
 0x4e0   :  { %v701_v24 = vmul.f32 %v700_v23, %v700_v23 }
 0x4e2   :  { %v702_v25 = vsel %vm123_vm3, %v701_v24, 0.0  ;;  %v5038_v24 = vld [vmem:[%s6956_s3 + $0x90] sm:$0xff] }
 0x4e3   :  { %v703_v26 = vrot.slane %v702_v25, 4 }
 0x4e5   :  { %v704_v27 = vadd.f32 %v703_v26, %v702_v25 }
 0x4e7   :  { %v705_v28 = vrot.slane %v704_v27, 2 }
 0x4e9   :  { %v706_v29 = vadd.f32 %v705_v28, %v704_v27 }
 0x4eb   :  { %v707_v30 = vrot.slane %v706_v29, 1 }
 0x4ed   :  { %v708_v31 = vadd.f32 %v707_v30, %v706_v29 }
 0x4ef   :  { %5485 = vmatmul.mubr.msk.f32.vlgmr.msra.gmra.mxu0 %vm123_vm3, %v708_v31 }
 0x4f0   :  { %5502 = vmatprep.mubr.msk.f32.mxu0 %vm5973_vm2, %v5972_v0  ;;  %5497 = vmatpush3.msra.mxu0 %v5028_v34  ;;  %v5041_v34 = vld [vmem:[%s6957_s1 + $0x38] sm:$0xff] }
 0x4f1   :  { %5498 = vmatprep.subr.mxu0 %v5972_v0 }
 0x4f2   :  { %5499 = vmatpush3.msra.mxu0 %v5027_v36 }
 0x4f3   :  { %5500 = vmatprep.subr.mxu0 %v5972_v0 }
 0x4f4   :  { %5501 = vmatpush3.msra.mxu0 %v5026_v38 }
 0x4f5   :  { %5514 = vmatprep.subr.mxu0 %v5972_v0 }
 0x5af   :  { %v778_v39 = vpop.f32.mrf.mxu0 }
 0x5b0   :  { %v782_v40 = vmul.f32 0.041666668, %v778_v39 }
 0x5b1   :  { %v5486_v41 = vpop.f32.mrf.mxu0 }
 0x5b2   :  { %v783_v42 = vadd.f32 1e-05, %v782_v40 }
 0x5b4   :  { %5941 = vrsqrt.f32 %v783_v42 }
 0x5c1   :  { %v5942_v43 = vpop.eup %5941 }
 0x5c2   :  { %v788_v44 = vrot.slane %v5942_v43, %v6096_v32 }
 0x5c4   :  { %v789_v45 = vmul.f32 %v788_v44, %v700_v23  ;;  %v5042_v23 = vld [vmem:[%s6956_s3 + $0xa8] sm:$0xff] }
 0x5c6   :  { %v790_v46 = vmul.f32 %v6131_v58, %v789_v45 }
 0x5c8   :  { %v791_v49 = vadd.f32 %v6136_v60, %v790_v46 }
 0x5ca   :  { %v801_v50 = vmul.f32 %v5029_v47, %v791_v49  ;;  %v794_v51 = vmul.f32 %v5025_v48, %v791_v49 }
 0x5cc   :  { %5494 = vmatmul.mubr.msk.f32.vlgmr.msra.gmra.mxu1 %vm123_vm3, %v801_v50  ;;  %5503 = vmatmul.mubr.msk.f32.vlgmr.msra.gmra.mxu0 %vm123_vm3, %v794_v51 }
 0x5cd   :  { %5506 = vmatpush3.msra.mxu1 %v6068_v15  ;;  %5511 = vmatprep.mubr.msk.f32.mxu1 %vm5973_vm2, %v5972_v0 }
 0x5ce   :  { %5507 = vmatprep.subr.mxu1 %v5972_v0  ;;  %5515 = vmatpush3.msra.mxu0 %v6068_v15 }
 0x5cf   :  { %5508 = vmatpush3.msra.mxu1 %v6076_v16  ;;  %5516 = vmatprep.subr.mxu0 %v5972_v0 }
 0x5d0   :  { %5509 = vmatprep.subr.mxu1 %v5972_v0  ;;  %5517 = vmatpush3.msra.mxu0 %v6076_v16 }
 0x5d1   :  { %5510 = vmatpush3.msra.mxu1 %v6085_v17  ;;  %5518 = vmatprep.subr.mxu0 %v5972_v0 }
 0x5d2   :  { %5519 = vmatpush3.msra.mxu0 %v6085_v17  ;;  %5520 = vmatprep.mubr.msk.f32.mxu0 %vm5973_vm2, %v5972_v0 }
 0x5d3   :  { %5523 = vmatprep.subr.mxu1 %v5972_v0  ;;  %5532 = vmatprep.subr.mxu0 %v5972_v0 }
 0x68c   :  { %v875_v52 = vpop.f32.mrf.mxu1  ;;  %v948_v53 = vpop.f32.mrf.mxu0 }
 0x68d   :  { %v949_v54 = vadd.f32 %v948_v53, %v875_v52 }
 0x68e   :  { %v5495_v55 = vpop.f32.mrf.mxu1  ;;  %v5504_v56 = vpop.f32.mrf.mxu0 }
 0x68f   :  { %v952_v57 = vsel %vm123_vm3, %v949_v54, 0.0 }
 0x690   :  { %v953_v59 = vrot.slane %v952_v57, 4 }
 0x692   :  { %v954_v61 = vadd.f32 %v953_v59, %v952_v57 }
 0x694   :  { %v955_v62 = vrot.slane %v954_v61, 2 }
 0x696   :  { %v956_v63 = vadd.f32 %v955_v62, %v954_v61 }
 0x698   :  { %v957_v1 = vrot.slane %v956_v63, 1 }
 0x69a   :  { %v958_v2 = vadd.f32 %v957_v1, %v956_v63 }
 0x69c   :  { %5512 = vmatmul.mubr.msk.f32.vlgmr.msra.gmra.mxu1 %vm123_vm3, %v958_v2 }
 0x69d   :  { %5529 = vmatprep.mubr.msk.f32.mxu1 %vm5973_vm2, %v5972_v0  ;;  %5524 = vmatpush3.msra.mxu1 %v5044_v19 }
 0x69e   :  { %5525 = vmatprep.subr.mxu1 %v5972_v0 }
 0x69f   :  { %5526 = vmatpush3.msra.mxu1 %v5043_v21  ;;  %v5049_v21 = vld [vmem:[%s6957_s1 + $0x40] sm:$0xff] }
 0x6a0   :  { %5527 = vmatprep.subr.mxu1 %v5972_v0 }
 0x6a1   :  { %5528 = vmatpush3.msra.mxu1 %v5042_v23 }
 0x6a2   :  { %5541 = vmatprep.subr.mxu1 %v5972_v0 }
 0x75c   :  { %v1028_v3 = vpop.f32.mrf.mxu1 }
 0x75d   :  { %v1032_v4 = vmul.f32 0.041666668, %v1028_v3  ;;  %v5056_v3 = vld [vmem:[%s6956_s3 + $0xe8] sm:$0xff] }
 0x75e   :  { %v5513_v5 = vpop.f32.mrf.mxu1 }
 0x75f   :  { %v1036_v6 = vrot.slane %v1032_v4, %v6096_v32  ;;  %v5052_v4 = vld [vmem:[%s6956_s3 + $0xd0] sm:$0xff]  ;;  %v5055_v5 = vld [vmem:[%s6956_s3 + $0xe0] sm:$0xff] }
 0x761   :  { %v1037_v7 = vsub.f32 %v949_v54, %v1036_v6  ;;  %v5051_v6 = vld [vmem:[%s6956_s3 + $0xc8] sm:$0xff] }
 0x763   :  { %v1038_v8 = vmul.f32 %v1037_v7, %v1037_v7 }
 0x765   :  { %v1039_v9 = vsel %vm123_vm3, %v1038_v8, 0.0  ;;  %v5050_v8 = vld [vmem:[%s6956_s3 + $0xc0] sm:$0xff] }
 0x766   :  { %v1040_v10 = vrot.slane %v1039_v9, 4 }
 0x768   :  { %v1041_v11 = vadd.f32 %v1040_v10, %v1039_v9 }
 0x76a   :  { %v1042_v12 = vrot.slane %v1041_v11, 2 }
 0x76c   :  { %v1043_v13 = vadd.f32 %v1042_v12, %v1041_v11 }
 0x76e   :  { %v1044_v14 = vrot.slane %v1043_v13, 1 }
 0x770   :  { %v1045_v18 = vadd.f32 %v1044_v14, %v1043_v13 }
 0x772   :  { %5521 = vmatmul.mubr.msk.f32.vlgmr.msra.gmra.mxu0 %vm123_vm3, %v1045_v18 }
 0x773   :  { %5538 = vmatprep.mubr.msk.f32.mxu0 %vm5973_vm2, %v5972_v0  ;;  %5533 = vmatpush3.msra.mxu0 %v5040_v20  ;;  %v5053_v20 = vld [vmem:[%s6957_s1 + $0x48] sm:$0xff] }
 0x774   :  { %5534 = vmatprep.subr.mxu0 %v5972_v0 }
 0x775   :  { %5535 = vmatpush3.msra.mxu0 %v5039_v22 }
 0x776   :  { %5536 = vmatprep.subr.mxu0 %v5972_v0 }
 0x777   :  { %5537 = vmatpush3.msra.mxu0 %v5038_v24 }
 0x778   :  { %5550 = vmatprep.subr.mxu0 %v5972_v0 }
 0x832   :  { %v1115_v25 = vpop.f32.mrf.mxu0 }
 0x833   :  { %v1119_v26 = vmul.f32 0.041666668, %v1115_v25 }
 0x834   :  { %v5522_v27 = vpop.f32.mrf.mxu0 }
 0x835   :  { %v1120_v28 = vadd.f32 1e-05, %v1119_v26 }
 0x837   :  { %5943 = vrsqrt.f32 %v1120_v28 }
 0x844   :  { %v5944_v29 = vpop.eup %5943 }
 0x845   :  { %v1125_v30 = vrot.slane %v5944_v29, %v6096_v32 }
 0x847   :  { %v1126_v31 = vmul.f32 %v1125_v30, %v1037_v7  ;;  %v5054_v7 = vld [vmem:[%s6956_s3 + $0xd8] sm:$0xff] }
 0x849   :  { %v1127_v33 = vmul.f32 %v6131_v58, %v1126_v31 }
 0x84b   :  { %v1128_v36 = vadd.f32 %v6136_v60, %v1127_v33 }
 0x84d   :  { %v1138_v37 = vmul.f32 %v5041_v34, %v1128_v36  ;;  %v1131_v38 = vmul.f32 %v5037_v35, %v1128_v36 }
 0x84f   :  { %5530 = vmatmul.mubr.msk.f32.vlgmr.msra.gmra.mxu1 %vm123_vm3, %v1138_v37  ;;  %5539 = vmatmul.mubr.msk.f32.vlgmr.msra.gmra.mxu0 %vm123_vm3, %v1131_v38 }
 0x850   :  { %5542 = vmatpush3.msra.mxu1 %v6068_v15  ;;  %5547 = vmatprep.mubr.msk.f32.mxu1 %vm5973_vm2, %v5972_v0 }
 0x851   :  { %5543 = vmatprep.subr.mxu1 %v5972_v0  ;;  %5551 = vmatpush3.msra.mxu0 %v6068_v15 }
 0x852   :  { %5544 = vmatpush3.msra.mxu1 %v6076_v16  ;;  %5552 = vmatprep.subr.mxu0 %v5972_v0 }
 0x853   :  { %5545 = vmatprep.subr.mxu1 %v5972_v0  ;;  %5553 = vmatpush3.msra.mxu0 %v6076_v16 }
 0x854   :  { %5546 = vmatpush3.msra.mxu1 %v6085_v17  ;;  %5554 = vmatprep.subr.mxu0 %v5972_v0 }
 0x855   :  { %5555 = vmatpush3.msra.mxu0 %v6085_v17  ;;  %5556 = vmatprep.mubr.msk.f32.mxu0 %vm5973_vm2, %v5972_v0 }
 0x856   :  { %5559 = vmatprep.subr.mxu1 %v5972_v0  ;;  %5568 = vmatprep.subr.mxu0 %v5972_v0 }
 0x90f   :  { %v1212_v39 = vpop.f32.mrf.mxu1  ;;  %v1285_v40 = vpop.f32.mrf.mxu0 }
 0x910   :  { %v1286_v41 = vadd.f32 %v1285_v40, %v1212_v39 }
 0x911   :  { %v5531_v42 = vpop.f32.mrf.mxu1  ;;  %v5540_v43 = vpop.f32.mrf.mxu0 }
 0x912   :  { %v1289_v44 = vsel %vm123_vm3, %v1286_v41, 0.0 }
 0x913   :  { %v1290_v45 = vrot.slane %v1289_v44, 4 }
 0x915   :  { %v1291_v46 = vadd.f32 %v1290_v45, %v1289_v44 }
 0x917   :  { %v1292_v47 = vrot.slane %v1291_v46, 2 }
 0x919   :  { %v1293_v48 = vadd.f32 %v1292_v47, %v1291_v46 }
 0x91b   :  { %v1294_v49 = vrot.slane %v1293_v48, 1 }
 0x91d   :  { %v1295_v50 = vadd.f32 %v1294_v49, %v1293_v48 }
 0x91f   :  { %5548 = vmatmul.mubr.msk.f32.vlgmr.msra.gmra.mxu1 %vm123_vm3, %v1295_v50 }
 0x920   :  { %5565 = vmatprep.mubr.msk.f32.mxu1 %vm5973_vm2, %v5972_v0  ;;  %5560 = vmatpush3.msra.mxu1 %v5056_v3 }
 0x921   :  { %5561 = vmatprep.subr.mxu1 %v5972_v0 }
 0x922   :  { %5562 = vmatpush3.msra.mxu1 %v5055_v5  ;;  %v5061_v5 = vld [vmem:[%s6957_s1 + $0x50] sm:$0xff] }
 0x923   :  { %5563 = vmatprep.subr.mxu1 %v5972_v0 }
 0x924   :  { %5564 = vmatpush3.msra.mxu1 %v5054_v7 }
 0x925   :  { %5577 = vmatprep.subr.mxu1 %v5972_v0 }
 0x9df   :  { %v1365_v51 = vpop.f32.mrf.mxu1 }
 0x9e0   :  { %v1369_v52 = vmul.f32 0.041666668, %v1365_v51  ;;  %v5068_v51 = vld [vmem:[%s6956_s3 + $0x118] sm:$0xff] }
 0x9e1   :  { %v5549_v53 = vpop.f32.mrf.mxu1 }
 0x9e2   :  { %v1373_v54 = vrot.slane %v1369_v52, %v6096_v32  ;;  %v5064_v52 = vld [vmem:[%s6956_s3 + $0x100] sm:$0xff]  ;;  %v5067_v53 = vld [vmem:[%s6956_s3 + $0x110] sm:$0xff] }
 0x9e4   :  { %v1374_v55 = vsub.f32 %v1286_v41, %v1373_v54  ;;  %v5063_v54 = vld [vmem:[%s6956_s3 + $0xf8] sm:$0xff] }
 0x9e6   :  { %v1375_v56 = vmul.f32 %v1374_v55, %v1374_v55 }
 0x9e8   :  { %v1376_v57 = vsel %vm123_vm3, %v1375_v56, 0.0  ;;  %v5062_v56 = vld [vmem:[%s6956_s3 + $0xf0] sm:$0xff] }
 0x9e9   :  { %v1377_v59 = vrot.slane %v1376_v57, 4 }
 0x9eb   :  { %v1378_v61 = vadd.f32 %v1377_v59, %v1376_v57 }
 0x9ed   :  { %v1379_v62 = vrot.slane %v1378_v61, 2 }
 0x9ef   :  { %v1380_v63 = vadd.f32 %v1379_v62, %v1378_v61 }
 0x9f1   :  { %v1381_v1 = vrot.slane %v1380_v63, 1 }
 0x9f3   :  { %v1382_v2 = vadd.f32 %v1381_v1, %v1380_v63 }
 0x9f5   :  { %5557 = vmatmul.mubr.msk.f32.vlgmr.msra.gmra.mxu0 %vm123_vm3, %v1382_v2 }
 0x9f6   :  { %5574 = vmatprep.mubr.msk.f32.mxu0 %vm5973_vm2, %v5972_v0  ;;  %5569 = vmatpush3.msra.mxu0 %v5052_v4  ;;  %v5065_v4 = vld [vmem:[%s6957_s1 + $0x58] sm:$0xff] }
 0x9f7   :  { %5570 = vmatprep.subr.mxu0 %v5972_v0 }
 0x9f8   :  { %5571 = vmatpush3.msra.mxu0 %v5051_v6 }
 0x9f9   :  { %5572 = vmatprep.subr.mxu0 %v5972_v0 }
 0x9fa   :  { %5573 = vmatpush3.msra.mxu0 %v5050_v8 }
 0x9fb   :  { %5586 = vmatprep.subr.mxu0 %v5972_v0 }
 0xab5   :  { %v1452_v9 = vpop.f32.mrf.mxu0 }
 0xab6   :  { %v1456_v10 = vmul.f32 0.041666668, %v1452_v9 }
 0xab7   :  { %v5558_v11 = vpop.f32.mrf.mxu0 }
 0xab8   :  { %v1457_v12 = vadd.f32 1e-05, %v1456_v10 }
 0xaba   :  { %5945 = vrsqrt.f32 %v1457_v12 }
 0xac7   :  { %v5946_v13 = vpop.eup %5945 }
 0xac8   :  { %v1462_v14 = vrot.slane %v5946_v13, %v6096_v32 }
 0xaca   :  { %v1463_v18 = vmul.f32 %v1462_v14, %v1374_v55  ;;  %v5066_v55 = vld [vmem:[%s6956_s3 + $0x108] sm:$0xff] }
 0xacc   :  { %v1464_v19 = vmul.f32 %v6131_v58, %v1463_v18 }
 0xace   :  { %v1465_v22 = vadd.f32 %v6136_v60, %v1464_v19 }
 0xad0   :  { %v1475_v23 = vmul.f32 %v5053_v20, %v1465_v22  ;;  %v1468_v24 = vmul.f32 %v5049_v21, %v1465_v22 }
 0xad2   :  { %5566 = vmatmul.mubr.msk.f32.vlgmr.msra.gmra.mxu1 %vm123_vm3, %v1475_v23  ;;  %5575 = vmatmul.mubr.msk.f32.vlgmr.msra.gmra.mxu0 %vm123_vm3, %v1468_v24 }
 0xad3   :  { %5578 = vmatpush3.msra.mxu1 %v6068_v15  ;;  %5583 = vmatprep.mubr.msk.f32.mxu1 %vm5973_vm2, %v5972_v0 }
 0xad4   :  { %5579 = vmatprep.subr.mxu1 %v5972_v0  ;;  %5587 = vmatpush3.msra.mxu0 %v6068_v15 }
 0xad5   :  { %5580 = vmatpush3.msra.mxu1 %v6076_v16  ;;  %5588 = vmatprep.subr.mxu0 %v5972_v0 }
 0xad6   :  { %5581 = vmatprep.subr.mxu1 %v5972_v0  ;;  %5589 = vmatpush3.msra.mxu0 %v6076_v16 }
 0xad7   :  { %5582 = vmatpush3.msra.mxu1 %v6085_v17  ;;  %5590 = vmatprep.subr.mxu0 %v5972_v0 }
 0xad8   :  { %5591 = vmatpush3.msra.mxu0 %v6085_v17  ;;  %5592 = vmatprep.mubr.msk.f32.mxu0 %vm5973_vm2, %v5972_v0 }
 0xad9   :  { %5595 = vmatprep.subr.mxu1 %v5972_v0  ;;  %5604 = vmatprep.subr.mxu0 %v5972_v0 }
 0xb92   :  { %v1549_v25 = vpop.f32.mrf.mxu1  ;;  %v1622_v26 = vpop.f32.mrf.mxu0 }
 0xb93   :  { %v1623_v27 = vadd.f32 %v1622_v26, %v1549_v25 }
 0xb94   :  { %v5567_v28 = vpop.f32.mrf.mxu1  ;;  %v5576_v29 = vpop.f32.mrf.mxu0 }
 0xb95   :  { %v1626_v30 = vsel %vm123_vm3, %v1623_v27, 0.0 }
 0xb96   :  { %v1627_v31 = vrot.slane %v1626_v30, 4 }
 0xb98   :  { %v1628_v33 = vadd.f32 %v1627_v31, %v1626_v30 }
 0xb9a   :  { %v1629_v34 = vrot.slane %v1628_v33, 2 }
 0xb9c   :  { %v1630_v35 = vadd.f32 %v1629_v34, %v1628_v33 }
 0xb9e   :  { %v1631_v36 = vrot.slane %v1630_v35, 1 }
 0xba0   :  { %v1632_v37 = vadd.f32 %v1631_v36, %v1630_v35 }
 0xba2   :  { %5584 = vmatmul.mubr.msk.f32.vlgmr.msra.gmra.mxu1 %vm123_vm3, %v1632_v37 }
 0xba3   :  { %5601 = vmatprep.mubr.msk.f32.mxu1 %vm5973_vm2, %v5972_v0  ;;  %5596 = vmatpush3.msra.mxu1 %v5068_v51 }
 0xba4   :  { %5597 = vmatprep.subr.mxu1 %v5972_v0 }
 0xba5   :  { %5598 = vmatpush3.msra.mxu1 %v5067_v53  ;;  %v5073_v53 = vld [vmem:[%s6957_s1 + $0x60] sm:$0xff] }
 0xba6   :  { %5599 = vmatprep.subr.mxu1 %v5972_v0 }
 0xba7   :  { %5600 = vmatpush3.msra.mxu1 %v5066_v55 }
 0xba8   :  { %5613 = vmatprep.subr.mxu1 %v5972_v0 }
 0xc62   :  { %v1702_v38 = vpop.f32.mrf.mxu1 }
 0xc63   :  { %v1706_v39 = vmul.f32 0.041666668, %v1702_v38  ;;  %v5080_v38 = vld [vmem:[%s6956_s3 + $0x148] sm:$0xff] }
 0xc64   :  { %v5585_v40 = vpop.f32.mrf.mxu1 }
 0xc65   :  { %v1710_v41 = vrot.slane %v1706_v39, %v6096_v32  ;;  %v5076_v39 = vld [vmem:[%s6956_s3 + $0x130] sm:$0xff]  ;;  %v5079_v40 = vld [vmem:[%s6956_s3 + $0x140] sm:$0xff] }
 0xc67   :  { %v1711_v42 = vsub.f32 %v1623_v27, %v1710_v41  ;;  %v5075_v41 = vld [vmem:[%s6956_s3 + $0x128] sm:$0xff] }
 0xc69   :  { %v1712_v43 = vmul.f32 %v1711_v42, %v1711_v42 }
 0xc6b   :  { %v1713_v44 = vsel %vm123_vm3, %v1712_v43, 0.0  ;;  %v5074_v43 = vld [vmem:[%s6956_s3 + $0x120] sm:$0xff] }
 0xc6c   :  { %v1714_v45 = vrot.slane %v1713_v44, 4 }
 0xc6e   :  { %v1715_v46 = vadd.f32 %v1714_v45, %v1713_v44 }
 0xc70   :  { %v1716_v47 = vrot.slane %v1715_v46, 2 }
 0xc72   :  { %v1717_v48 = vadd.f32 %v1716_v47, %v1715_v46 }
 0xc74   :  { %v1718_v49 = vrot.slane %v1717_v48, 1 }
 0xc76   :  { %v1719_v50 = vadd.f32 %v1718_v49, %v1717_v48 }
 0xc78   :  { %5593 = vmatmul.mubr.msk.f32.vlgmr.msra.gmra.mxu0 %vm123_vm3, %v1719_v50 }
 0xc79   :  { %5610 = vmatprep.mubr.msk.f32.mxu0 %vm5973_vm2, %v5972_v0  ;;  %5605 = vmatpush3.msra.mxu0 %v5064_v52  ;;  %v5077_v52 = vld [vmem:[%s6957_s1 + $0x68] sm:$0xff] }
 0xc7a   :  { %5606 = vmatprep.subr.mxu0 %v5972_v0 }
 0xc7b   :  { %5607 = vmatpush3.msra.mxu0 %v5063_v54 }
 0xc7c   :  { %5608 = vmatprep.subr.mxu0 %v5972_v0 }
 0xc7d   :  { %5609 = vmatpush3.msra.mxu0 %v5062_v56 }
 0xc7e   :  { %5622 = vmatprep.subr.mxu0 %v5972_v0 }
 0xd38   :  { %v1789_v57 = vpop.f32.mrf.mxu0 }
 0xd39   :  { %v1793_v59 = vmul.f32 0.041666668, %v1789_v57 }
 0xd3a   :  { %v5594_v61 = vpop.f32.mrf.mxu0 }
 0xd3b   :  { %v1794_v62 = vadd.f32 1e-05, %v1793_v59 }
 0xd3d   :  { %5947 = vrsqrt.f32 %v1794_v62 }
 0xd4a   :  { %v5948_v63 = vpop.eup %5947 }
 0xd4b   :  { %v1799_v1 = vrot.slane %v5948_v63, %v6096_v32 }
 0xd4d   :  { %v1800_v2 = vmul.f32 %v1799_v1, %v1711_v42  ;;  %v5078_v42 = vld [vmem:[%s6956_s3 + $0x138] sm:$0xff] }
 0xd4f   :  { %v1801_v3 = vmul.f32 %v6131_v58, %v1800_v2 }
 0xd51   :  { %v1802_v6 = vadd.f32 %v6136_v60, %v1801_v3 }
 0xd53   :  { %v1812_v7 = vmul.f32 %v5065_v4, %v1802_v6  ;;  %v1805_v8 = vmul.f32 %v5061_v5, %v1802_v6 }
 0xd55   :  { %5602 = vmatmul.mubr.msk.f32.vlgmr.msra.gmra.mxu1 %vm123_vm3, %v1812_v7  ;;  %5611 = vmatmul.mubr.msk.f32.vlgmr.msra.gmra.mxu0 %vm123_vm3, %v1805_v8 }
 0xd56   :  { %5614 = vmatpush3.msra.mxu1 %v6068_v15  ;;  %5619 = vmatprep.mubr.msk.f32.mxu1 %vm5973_vm2, %v5972_v0 }
 0xd57   :  { %5615 = vmatprep.subr.mxu1 %v5972_v0  ;;  %5623 = vmatpush3.msra.mxu0 %v6068_v15 }
 0xd58   :  { %5616 = vmatpush3.msra.mxu1 %v6076_v16  ;;  %5624 = vmatprep.subr.mxu0 %v5972_v0 }
 0xd59   :  { %5617 = vmatprep.subr.mxu1 %v5972_v0  ;;  %5625 = vmatpush3.msra.mxu0 %v6076_v16 }
 0xd5a   :  { %5618 = vmatpush3.msra.mxu1 %v6085_v17  ;;  %5626 = vmatprep.subr.mxu0 %v5972_v0 }
 0xd5b   :  { %5627 = vmatpush3.msra.mxu0 %v6085_v17  ;;  %5628 = vmatprep.mubr.msk.f32.mxu0 %vm5973_vm2, %v5972_v0 }
 0xd5c   :  { %5631 = vmatprep.subr.mxu1 %v5972_v0  ;;  %5640 = vmatprep.subr.mxu0 %v5972_v0 }
 0xe15   :  { %v1886_v9 = vpop.f32.mrf.mxu1  ;;  %v1959_v10 = vpop.f32.mrf.mxu0 }
 0xe16   :  { %v1960_v11 = vadd.f32 %v1959_v10, %v1886_v9 }
 0xe17   :  { %v5603_v12 = vpop.f32.mrf.mxu1  ;;  %v5612_v13 = vpop.f32.mrf.mxu0 }
 0xe18   :  { %v1963_v14 = vsel %vm123_vm3, %v1960_v11, 0.0 }
 0xe19   :  { %v1964_v18 = vrot.slane %v1963_v14, 4 }
 0xe1b   :  { %v1965_v19 = vadd.f32 %v1964_v18, %v1963_v14 }
 0xe1d   :  { %v1966_v20 = vrot.slane %v1965_v19, 2 }
 0xe1f   :  { %v1967_v21 = vadd.f32 %v1966_v20, %v1965_v19 }
 0xe21   :  { %v1968_v22 = vrot.slane %v1967_v21, 1 }
 0xe23   :  { %v1969_v23 = vadd.f32 %v1968_v22, %v1967_v21  ;;  %v5092_v21 = vld [vmem:[%s6956_s3 + $0x178] sm:$0xff]  ;;  %v5088_v22 = vld [vmem:[%s6956_s3 + $0x160] sm:$0xff] }
 0xe25   :  { %5620 = vmatmul.mubr.msk.f32.vlgmr.msra.gmra.mxu1 %vm123_vm3, %v1969_v23  ;;  %v5091_v23 = vld [vmem:[%s6956_s3 + $0x170] sm:$0xff] }
 0xe26   :  { %5637 = vmatprep.mubr.msk.f32.mxu1 %vm5973_vm2, %v5972_v0  ;;  %5632 = vmatpush3.msra.mxu1 %v5080_v38 }
 0xe27   :  { %5633 = vmatprep.subr.mxu1 %v5972_v0 }
 0xe28   :  { %5634 = vmatpush3.msra.mxu1 %v5079_v40 }
 0xe29   :  { %5635 = vmatprep.subr.mxu1 %v5972_v0 }
 0xe2a   :  { %5636 = vmatpush3.msra.mxu1 %v5078_v42 }
 0xe2b   :  { %5649 = vmatprep.subr.mxu1 %v5972_v0 }
 0xee5   :  { %v2039_v24 = vpop.f32.mrf.mxu1 }
 0xee6   :  { %v2043_v25 = vmul.f32 0.041666668, %v2039_v24  ;;  %v5087_v24 = vld [vmem:[%s6956_s3 + $0x158] sm:$0xff] }
 0xee7   :  { %v5621_v26 = vpop.f32.mrf.mxu1 }
 0xee8   :  { %v2047_v27 = vrot.slane %v2043_v25, %v6096_v32  ;;  %v5090_v25 = vld [vmem:[%s6956_s3 + $0x168] sm:$0xff]  ;;  %v5086_v26 = vld [vmem:[%s6956_s3 + $0x150] sm:$0xff] }
 0xeea   :  { %v2048_v28 = vsub.f32 %v1960_v11, %v2047_v27 }
 0xeec   :  { %v2049_v29 = vmul.f32 %v2048_v28, %v2048_v28 }
 0xeee   :  { %v2050_v30 = vsel %vm123_vm3, %v2049_v29, 0.0 }
 0xeef   :  { %v2051_v31 = vrot.slane %v2050_v30, 4 }
 0xef1   :  { %v2052_v33 = vadd.f32 %v2051_v31, %v2050_v30 }
 0xef3   :  { %v2053_v34 = vrot.slane %v2052_v33, 2 }
 0xef5   :  { %v2054_v35 = vadd.f32 %v2053_v34, %v2052_v33 }
 0xef7   :  { %v2055_v36 = vrot.slane %v2054_v35, 1 }
 0xef9   :  { %v2056_v37 = vadd.f32 %v2055_v36, %v2054_v35  ;;  %v5089_v36 = vld [vmem:[%s6957_s1 + $0x78] sm:$0xff] }
 0xefb   :  { %5629 = vmatmul.mubr.msk.f32.vlgmr.msra.gmra.mxu0 %vm123_vm3, %v2056_v37  ;;  %v5085_v37 = vld [vmem:[%s6957_s1 + $0x70] sm:$0xff] }
 0xefc   :  { %5646 = vmatprep.mubr.msk.f32.mxu0 %vm5973_vm2, %v5972_v0  ;;  %5641 = vmatpush3.msra.mxu0 %v5076_v39 }
 0xefd   :  { %5642 = vmatprep.subr.mxu0 %v5972_v0 }
 0xefe   :  { %5643 = vmatpush3.msra.mxu0 %v5075_v41  ;;  %v6530_v41 = vld [vmem:[%s6958_s6] sm:$0xff] }
 0xeff   :  { %5644 = vmatprep.subr.mxu0 %v5972_v0 }
 0xf00   :  { %5645 = vmatpush3.msra.mxu0 %v5074_v43 }
 0xf01   :  { %5658 = vmatprep.subr.mxu0 %v5972_v0 }
 0xfbb   :  { %v2126_v44 = vpop.f32.mrf.mxu0 }
 0xfbc   :  { %v2130_v45 = vmul.f32 0.041666668, %v2126_v44 }
 0xfbd   :  { %v5630_v46 = vpop.f32.mrf.mxu0 }
 0xfbe   :  { %v2131_v47 = vadd.f32 1e-05, %v2130_v45 }
 0xfc0   :  { %5949 = vrsqrt.f32 %v2131_v47 }
 0xfcd   :  { %v5950_v48 = vpop.eup %5949 }
 0xfce   :  { %v2136_v49 = vrot.slane %v5950_v48, %v6096_v32 }
 0xfd0   :  { %v2137_v50 = vmul.f32 %v2136_v49, %v2048_v28 }
 0xfd2   :  { %v2138_v51 = vmul.f32 %v6131_v58, %v2137_v50 }
 0xfd4   :  { %v2139_v54 = vadd.f32 %v6136_v60, %v2138_v51 }
 0xfd6   :  { %v2149_v55 = vmul.f32 %v5077_v52, %v2139_v54  ;;  %v2142_v56 = vmul.f32 %v5073_v53, %v2139_v54 }
 0xfd8   :  { %5638 = vmatmul.mubr.msk.f32.vlgmr.msra.gmra.mxu1 %vm123_vm3, %v2149_v55  ;;  %5647 = vmatmul.mubr.msk.f32.vlgmr.msra.gmra.mxu0 %vm123_vm3, %v2142_v56 }
 0xfd9   :  { %5650 = vmatpush3.msra.mxu1 %v6068_v15  ;;  %5655 = vmatprep.mubr.msk.f32.mxu1 %vm5973_vm2, %v5972_v0 }
 0xfda   :  { %5651 = vmatprep.subr.mxu1 %v5972_v0  ;;  %5659 = vmatpush3.msra.mxu0 %v6068_v15 }
 0xfdb   :  { %5652 = vmatpush3.msra.mxu1 %v6076_v16  ;;  %5660 = vmatprep.subr.mxu0 %v5972_v0 }
 0xfdc   :  { %5653 = vmatprep.subr.mxu1 %v5972_v0  ;;  %5661 = vmatpush3.msra.mxu0 %v6076_v16 }
 0xfdd   :  { %5654 = vmatpush3.msra.mxu1 %v6085_v17  ;;  %5662 = vmatprep.subr.mxu0 %v5972_v0 }
 0xfde   :  { %5663 = vmatpush3.msra.mxu0 %v6085_v17  ;;  %5664 = vmatprep.mubr.msk.f32.mxu0 %vm5973_vm2, %v5972_v0 }
 0xfdf   :  { %5667 = vmatprep.subr.mxu1 %v5972_v0  ;;  %5676 = vmatprep.subr.mxu0 %v5972_v0 }
0x1098   :  { %v2223_v15 = vpop.f32.mrf.mxu1  ;;  %v2296_v57 = vpop.f32.mrf.mxu0 }
0x1099   :  { %v2297_v59 = vadd.f32 %v2296_v57, %v2223_v15 }
0x109a   :  { %v5639_v61 = vpop.f32.mrf.mxu1  ;;  %v5648_v62 = vpop.f32.mrf.mxu0 }
0x109b   :  { %v2300_v16 = vsel %vm123_vm3, %v2297_v59, 0.0 }
0x109c   :  { %v2301_v63 = vrot.slane %v2300_v16, 4 }
0x109e   :  { %v2302_v1 = vadd.f32 %v2301_v63, %v2300_v16 }
0x10a0   :  { %v2303_v2 = vrot.slane %v2302_v1, 2 }
0x10a2   :  { %v2304_v3 = vadd.f32 %v2303_v2, %v2302_v1 }
0x10a4   :  { %v2305_v4 = vrot.slane %v2304_v3, 1 }
0x10a6   :  { %v2306_v17 = vadd.f32 %v2305_v4, %v2304_v3  ;;  %v5104_v4 = vld [vmem:[%s6956_s3 + $0x1a8] sm:$0xff] }
0x10a8   :  { %5656 = vmatmul.mubr.msk.f32.vlgmr.msra.gmra.mxu1 %vm123_vm3, %v2306_v17  ;;  %v5100_v17 = vld [vmem:[%s6956_s3 + $0x190] sm:$0xff] }
0x10a9   :  { %5673 = vmatprep.mubr.msk.f32.mxu1 %vm5973_vm2, %v5972_v0  ;;  %5668 = vmatpush3.msra.mxu1 %v5092_v21  ;;  %v5101_v21 = vld [vmem:[%s6957_s1 + $0x88] sm:$0xff] }
0x10aa   :  { %5669 = vmatprep.subr.mxu1 %v5972_v0 }
0x10ab   :  { %5670 = vmatpush3.msra.mxu1 %v5091_v23  ;;  %v6588_v23 = vld [vmem:[%s6959_s5 + $0x1] ss:$0 sm:$0xff] }
0x10ac   :  { %5671 = vmatprep.subr.mxu1 %v5972_v0 }
0x10ad   :  { %5672 = vmatpush3.msra.mxu1 %v5090_v25 }
0x10ae   :  { %5685 = vmatprep.subr.mxu1 %v5972_v0 }
0x1168   :  { %v2376_v5 = vpop.f32.mrf.mxu1 }
0x1169   :  { %v2380_v6 = vmul.f32 0.041666668, %v2376_v5  ;;  %v5103_v5 = vld [vmem:[%s6956_s3 + $0x1a0] sm:$0xff] }
0x116a   :  { %v5657_v7 = vpop.f32.mrf.mxu1 }
0x116b   :  { %v2384_v8 = vrot.slane %v2380_v6, %v6096_v32  ;;  %v5099_v6 = vld [vmem:[%s6956_s3 + $0x188] sm:$0xff]  ;;  %v5102_v7 = vld [vmem:[%s6956_s3 + $0x198] sm:$0xff] }
0x116d   :  { %v2385_v9 = vsub.f32 %v2297_v59, %v2384_v8  ;;  %v5098_v8 = vld [vmem:[%s6956_s3 + $0x180] sm:$0xff] }
0x116f   :  { %v2386_v10 = vmul.f32 %v2385_v9, %v2385_v9 }
0x1171   :  { %v2387_v11 = vsel %vm123_vm3, %v2386_v10, 0.0 }
0x1172   :  { %v2388_v12 = vrot.slane %v2387_v11, 4 }
0x1174   :  { %v2389_v13 = vadd.f32 %v2388_v12, %v2387_v11 }
0x1176   :  { %v2390_v14 = vrot.slane %v2389_v13, 2 }
0x1178   :  { %v2391_v18 = vadd.f32 %v2390_v14, %v2389_v13 }
0x117a   :  { %v2392_v19 = vrot.slane %v2391_v18, 1 }
0x117c   :  { %v2393_v20 = vadd.f32 %v2392_v19, %v2391_v18  ;;  %v6576_v19 = vld [vmem:[%s6959_s5] ss:$0 sm:$0xff] }
0x117e   :  { %5665 = vmatmul.mubr.msk.f32.vlgmr.msra.gmra.mxu0 %vm123_vm3, %v2393_v20 }
0x117f   :  { %5682 = vmatprep.mubr.msk.f32.mxu0 %vm5973_vm2, %v5972_v0  ;;  %5677 = vmatpush3.msra.mxu0 %v5088_v22  ;;  %v5097_v22 = vld [vmem:[%s6957_s1 + $0x80] sm:$0xff] }
0x1180   :  { %5678 = vmatprep.subr.mxu0 %v5972_v0 }
0x1181   :  { %5679 = vmatpush3.msra.mxu0 %v5087_v24 }
0x1182   :  { %5680 = vmatprep.subr.mxu0 %v5972_v0 }
0x1183   :  { %5681 = vmatpush3.msra.mxu0 %v5086_v26 }
0x1184   :  { %5694 = vmatprep.subr.mxu0 %v5972_v0 }
0x123e   :  { %v2463_v27 = vpop.f32.mrf.mxu0 }
0x123f   :  { %v2467_v28 = vmul.f32 0.041666668, %v2463_v27 }
0x1240   :  { %v5666_v29 = vpop.f32.mrf.mxu0 }
0x1241   :  { %v2468_v30 = vadd.f32 1e-05, %v2467_v28 }
0x1243   :  { %5951 = vrsqrt.f32 %v2468_v30 }
0x1250   :  { %v5952_v31 = vpop.eup %5951 }
0x1251   :  { %v2473_v33 = vrot.slane %v5952_v31, %v6096_v32 }
0x1253   :  { %v2474_v34 = vmul.f32 %v2473_v33, %v2385_v9 }
0x1255   :  { %v2475_v35 = vmul.f32 %v6131_v58, %v2474_v34  ;;  %v6511_v58 = vld [vmem:[%s6958_s6 + $0x10] sm:$0xff] }
0x1257   :  { %v2476_v38 = vadd.f32 %v6136_v60, %v2475_v35  ;;  %v6521_v60 = vld [vmem:[%s6958_s6 + $0x8] sm:$0xff] }
0x1259   :  { %v2486_v39 = vmul.f32 %v5089_v36, %v2476_v38  ;;  %v2479_v40 = vmul.f32 %v5085_v37, %v2476_v38 }
0x125b   :  { %5674 = vmatmul.mubr.msk.f32.vlgmr.msra.gmra.mxu1 %vm123_vm3, %v2486_v39  ;;  %5683 = vmatmul.mubr.msk.f32.vlgmr.msra.gmra.mxu0 %vm123_vm3, %v2479_v40 }
0x125c   :  { %5686 = vmatpush3.msra.mxu1 %v6511_v58  ;;  %5691 = vmatprep.mubr.msk.f32.mxu1 %vm5973_vm2, %v5972_v0 }
0x125d   :  { %5687 = vmatprep.subr.mxu1 %v5972_v0  ;;  %5695 = vmatpush3.msra.mxu0 %v6511_v58 }
0x125e   :  { %5688 = vmatpush3.msra.mxu1 %v6521_v60  ;;  %5696 = vmatprep.subr.mxu0 %v5972_v0 }
0x125f   :  { %5689 = vmatprep.subr.mxu1 %v5972_v0  ;;  %5697 = vmatpush3.msra.mxu0 %v6521_v60 }
0x1260   :  { %5690 = vmatpush3.msra.mxu1 %v6530_v41  ;;  %5698 = vmatprep.subr.mxu0 %v5972_v0 }
0x1261   :  { %5699 = vmatpush3.msra.mxu0 %v6530_v41  ;;  %5700 = vmatprep.mubr.msk.f32.mxu0 %vm5973_vm2, %v5972_v0 }
0x1262   :  { %5703 = vmatprep.subr.mxu1 %v5972_v0  ;;  %5712 = vmatprep.subr.mxu0 %v5972_v0 }
0x131b   :  { %v2560_v42 = vpop.f32.mrf.mxu1  ;;  %v2633_v43 = vpop.f32.mrf.mxu0 }
0x131c   :  { %v2634_v44 = vadd.f32 %v2633_v43, %v2560_v42 }
0x131d   :  { %v5675_v45 = vpop.f32.mrf.mxu1  ;;  %v5684_v46 = vpop.f32.mrf.mxu0 }
0x131e   :  { %v2637_v47 = vsel %vm123_vm3, %v2634_v44, 0.0 }
0x131f   :  { %v2638_v48 = vrot.slane %v2637_v47, 4 }
0x1321   :  { %v2639_v49 = vadd.f32 %v2638_v48, %v2637_v47 }
0x1323   :  { %v2640_v50 = vrot.slane %v2639_v49, 2 }
0x1325   :  { %v2641_v51 = vadd.f32 %v2640_v50, %v2639_v49 }
0x1327   :  { %v2642_v52 = vrot.slane %v2641_v51, 1 }
0x1329   :  { %v2643_v53 = vadd.f32 %v2642_v52, %v2641_v51 }
0x132b   :  { %5692 = vmatmul.mubr.msk.f32.vlgmr.msra.gmra.mxu1 %vm123_vm3, %v2643_v53 }
0x132c   :  { %5709 = vmatprep.mubr.msk.f32.mxu1 %vm5973_vm2, %v5972_v0  ;;  %5704 = vmatpush3.msra.mxu1 %v5104_v4 }
0x132d   :  { %5705 = vmatprep.subr.mxu1 %v5972_v0 }
0x132e   :  { %5706 = vmatpush3.msra.mxu1 %v5103_v5  ;;  %v5109_v5 = vld [vmem:[%s6957_s1 + $0x90] sm:$0xff] }
0x132f   :  { %5707 = vmatprep.subr.mxu1 %v5972_v0 }
0x1330   :  { %5708 = vmatpush3.msra.mxu1 %v5102_v7 }
0x1331   :  { %5721 = vmatprep.subr.mxu1 %v5972_v0 }
0x13eb   :  { %v2713_v54 = vpop.f32.mrf.mxu1 }
0x13ec   :  { %v2717_v55 = vmul.f32 0.041666668, %v2713_v54  ;;  %v5116_v54 = vld [vmem:[%s6956_s3 + $0x1d8] sm:$0xff] }
0x13ed   :  { %v5693_v56 = vpop.f32.mrf.mxu1 }
0x13ee   :  { %v2721_v15 = vrot.slane %v2717_v55, %v6096_v32  ;;  %v5112_v55 = vld [vmem:[%s6956_s3 + $0x1c0] sm:$0xff]  ;;  %v5115_v56 = vld [vmem:[%s6956_s3 + $0x1d0] sm:$0xff] }
0x13f0   :  { %v2722_v57 = vsub.f32 %v2634_v44, %v2721_v15  ;;  %v5111_v15 = vld [vmem:[%s6956_s3 + $0x1b8] sm:$0xff] }
0x13f2   :  { %v2723_v59 = vmul.f32 %v2722_v57, %v2722_v57 }
0x13f4   :  { %v2724_v61 = vsel %vm123_vm3, %v2723_v59, 0.0  ;;  %v5110_v59 = vld [vmem:[%s6956_s3 + $0x1b0] sm:$0xff] }
0x13f5   :  { %v2725_v62 = vrot.slane %v2724_v61, 4 }
0x13f7   :  { %v2726_v16 = vadd.f32 %v2725_v62, %v2724_v61 }
0x13f9   :  { %v2727_v63 = vrot.slane %v2726_v16, 2 }
0x13fb   :  { %v2728_v1 = vadd.f32 %v2727_v63, %v2726_v16 }
0x13fd   :  { %v2729_v2 = vrot.slane %v2728_v1, 1 }
0x13ff   :  { %v2730_v3 = vadd.f32 %v2729_v2, %v2728_v1 }
0x1401   :  { %5701 = vmatmul.mubr.msk.f32.vlgmr.msra.gmra.mxu0 %vm123_vm3, %v2730_v3 }
0x1402   :  { %5718 = vmatprep.mubr.msk.f32.mxu0 %vm5973_vm2, %v5972_v0  ;;  %5713 = vmatpush3.msra.mxu0 %v5100_v17  ;;  %v5113_v17 = vld [vmem:[%s6957_s1 + $0x98] sm:$0xff] }
0x1403   :  { %5714 = vmatprep.subr.mxu0 %v5972_v0 }
0x1404   :  { %5715 = vmatpush3.msra.mxu0 %v5099_v6 }
0x1405   :  { %5716 = vmatprep.subr.mxu0 %v5972_v0 }
0x1406   :  { %5717 = vmatpush3.msra.mxu0 %v5098_v8 }
0x1407   :  { %5730 = vmatprep.subr.mxu0 %v5972_v0 }
0x14c1   :  { %v2800_v9 = vpop.f32.mrf.mxu0 }
0x14c2   :  { %v2804_v10 = vmul.f32 0.041666668, %v2800_v9 }
0x14c3   :  { %v5702_v11 = vpop.f32.mrf.mxu0 }
0x14c4   :  { %v2805_v12 = vadd.f32 1e-05, %v2804_v10 }
0x14c6   :  { %5953 = vrsqrt.f32 %v2805_v12 }
0x14d3   :  { %v5954_v13 = vpop.eup %5953 }
0x14d4   :  { %v2810_v14 = vrot.slane %v5954_v13, %v6096_v32 }
0x14d6   :  { %v2811_v18 = vmul.f32 %v2810_v14, %v2722_v57  ;;  %v5114_v57 = vld [vmem:[%s6956_s3 + $0x1c8] sm:$0xff] }
0x14d8   :  { %v2812_v20 = vmul.f32 %v6576_v19, %v2811_v18 }
0x14da   :  { %v2813_v24 = vadd.f32 %v6588_v23, %v2812_v20 }
0x14dc   :  { %v2823_v25 = vmul.f32 %v5101_v21, %v2813_v24  ;;  %v2816_v26 = vmul.f32 %v5097_v22, %v2813_v24 }
0x14de   :  { %5710 = vmatmul.mubr.msk.f32.vlgmr.msra.gmra.mxu1 %vm123_vm3, %v2823_v25  ;;  %5719 = vmatmul.mubr.msk.f32.vlgmr.msra.gmra.mxu0 %vm123_vm3, %v2816_v26 }
0x14df   :  { %5722 = vmatpush3.msra.mxu1 %v6511_v58  ;;  %5727 = vmatprep.mubr.msk.f32.mxu1 %vm5973_vm2, %v5972_v0 }
0x14e0   :  { %5723 = vmatprep.subr.mxu1 %v5972_v0  ;;  %5731 = vmatpush3.msra.mxu0 %v6511_v58 }
0x14e1   :  { %5724 = vmatpush3.msra.mxu1 %v6521_v60  ;;  %5732 = vmatprep.subr.mxu0 %v5972_v0 }
0x14e2   :  { %5725 = vmatprep.subr.mxu1 %v5972_v0  ;;  %5733 = vmatpush3.msra.mxu0 %v6521_v60 }
0x14e3   :  { %5726 = vmatpush3.msra.mxu1 %v6530_v41  ;;  %5734 = vmatprep.subr.mxu0 %v5972_v0 }
0x14e4   :  { %5735 = vmatpush3.msra.mxu0 %v6530_v41  ;;  %5736 = vmatprep.mubr.msk.f32.mxu0 %vm5973_vm2, %v5972_v0 }
0x14e5   :  { %5739 = vmatprep.subr.mxu1 %v5972_v0  ;;  %5748 = vmatprep.subr.mxu0 %v5972_v0 }
0x159e   :  { %v2897_v27 = vpop.f32.mrf.mxu1  ;;  %v2970_v28 = vpop.f32.mrf.mxu0 }
0x159f   :  { %v2971_v29 = vadd.f32 %v2970_v28, %v2897_v27 }
0x15a0   :  { %v5711_v30 = vpop.f32.mrf.mxu1  ;;  %v5720_v31 = vpop.f32.mrf.mxu0 }
0x15a1   :  { %v2974_v33 = vsel %vm123_vm3, %v2971_v29, 0.0 }
0x15a2   :  { %v2975_v34 = vrot.slane %v2974_v33, 4 }
0x15a4   :  { %v2976_v35 = vadd.f32 %v2975_v34, %v2974_v33 }
0x15a6   :  { %v2977_v36 = vrot.slane %v2976_v35, 2 }
0x15a8   :  { %v2978_v37 = vadd.f32 %v2977_v36, %v2976_v35 }
0x15aa   :  { %v2979_v38 = vrot.slane %v2978_v37, 1 }
0x15ac   :  { %v2980_v39 = vadd.f32 %v2979_v38, %v2978_v37 }
0x15ae   :  { %5728 = vmatmul.mubr.msk.f32.vlgmr.msra.gmra.mxu1 %vm123_vm3, %v2980_v39 }
0x15af   :  { %5745 = vmatprep.mubr.msk.f32.mxu1 %vm5973_vm2, %v5972_v0  ;;  %5740 = vmatpush3.msra.mxu1 %v5116_v54 }
0x15b0   :  { %5741 = vmatprep.subr.mxu1 %v5972_v0 }
0x15b1   :  { %5742 = vmatpush3.msra.mxu1 %v5115_v56  ;;  %v5121_v56 = vld [vmem:[%s6957_s1 + $0xa0] sm:$0xff] }
0x15b2   :  { %5743 = vmatprep.subr.mxu1 %v5972_v0 }
0x15b3   :  { %5744 = vmatpush3.msra.mxu1 %v5114_v57 }
0x15b4   :  { %5757 = vmatprep.subr.mxu1 %v5972_v0 }
0x166e   :  { %v3050_v40 = vpop.f32.mrf.mxu1 }
0x166f   :  { %v3054_v42 = vmul.f32 0.041666668, %v3050_v40  ;;  %v5128_v40 = vld [vmem:[%s6956_s3 + $0x208] sm:$0xff] }
0x1670   :  { %v5729_v43 = vpop.f32.mrf.mxu1 }
0x1671   :  { %v3058_v44 = vrot.slane %v3054_v42, %v6096_v32  ;;  %v5124_v42 = vld [vmem:[%s6956_s3 + $0x1f0] sm:$0xff]  ;;  %v5127_v43 = vld [vmem:[%s6956_s3 + $0x200] sm:$0xff] }
0x1673   :  { %v3059_v45 = vsub.f32 %v2971_v29, %v3058_v44  ;;  %v5123_v44 = vld [vmem:[%s6956_s3 + $0x1e8] sm:$0xff] }
0x1675   :  { %v3060_v46 = vmul.f32 %v3059_v45, %v3059_v45 }
0x1677   :  { %v3061_v47 = vsel %vm123_vm3, %v3060_v46, 0.0  ;;  %v5122_v46 = vld [vmem:[%s6956_s3 + $0x1e0] sm:$0xff] }
0x1678   :  { %v3062_v48 = vrot.slane %v3061_v47, 4 }
0x167a   :  { %v3063_v49 = vadd.f32 %v3062_v48, %v3061_v47 }
0x167c   :  { %v3064_v50 = vrot.slane %v3063_v49, 2 }
0x167e   :  { %v3065_v51 = vadd.f32 %v3064_v50, %v3063_v49 }
0x1680   :  { %v3066_v52 = vrot.slane %v3065_v51, 1 }
0x1682   :  { %v3067_v53 = vadd.f32 %v3066_v52, %v3065_v51 }
0x1684   :  { %5737 = vmatmul.mubr.msk.f32.vlgmr.msra.gmra.mxu0 %vm123_vm3, %v3067_v53 }
0x1685   :  { %5754 = vmatprep.mubr.msk.f32.mxu0 %vm5973_vm2, %v5972_v0  ;;  %5749 = vmatpush3.msra.mxu0 %v5112_v55  ;;  %v5125_v55 = vld [vmem:[%s6957_s1 + $0xa8] sm:$0xff] }
0x1686   :  { %5750 = vmatprep.subr.mxu0 %v5972_v0 }
0x1687   :  { %5751 = vmatpush3.msra.mxu0 %v5111_v15 }
0x1688   :  { %5752 = vmatprep.subr.mxu0 %v5972_v0 }
0x1689   :  { %5753 = vmatpush3.msra.mxu0 %v5110_v59 }
0x168a   :  { %5766 = vmatprep.subr.mxu0 %v5972_v0 }
0x1744   :  { %v3137_v61 = vpop.f32.mrf.mxu0 }
0x1745   :  { %v3141_v62 = vmul.f32 0.041666668, %v3137_v61 }
0x1746   :  { %v5738_v16 = vpop.f32.mrf.mxu0 }
0x1747   :  { %v3142_v63 = vadd.f32 1e-05, %v3141_v62 }
0x1749   :  { %5955 = vrsqrt.f32 %v3142_v63 }
0x1756   :  { %v5956_v1 = vpop.eup %5955 }
0x1757   :  { %v3147_v2 = vrot.slane %v5956_v1, %v6096_v32 }
0x1759   :  { %v3148_v3 = vmul.f32 %v3147_v2, %v3059_v45  ;;  %v5126_v45 = vld [vmem:[%s6956_s3 + $0x1f8] sm:$0xff] }
0x175b   :  { %v3149_v4 = vmul.f32 %v6576_v19, %v3148_v3 }
0x175d   :  { %v3150_v6 = vadd.f32 %v6588_v23, %v3149_v4 }
0x175f   :  { %v3160_v7 = vmul.f32 %v5113_v17, %v3150_v6  ;;  %v3153_v8 = vmul.f32 %v5109_v5, %v3150_v6 }
0x1761   :  { %5746 = vmatmul.mubr.msk.f32.vlgmr.msra.gmra.mxu1 %vm123_vm3, %v3160_v7  ;;  %5755 = vmatmul.mubr.msk.f32.vlgmr.msra.gmra.mxu0 %vm123_vm3, %v3153_v8 }
0x1762   :  { %5758 = vmatpush3.msra.mxu1 %v6511_v58  ;;  %5763 = vmatprep.mubr.msk.f32.mxu1 %vm5973_vm2, %v5972_v0 }
0x1763   :  { %5759 = vmatprep.subr.mxu1 %v5972_v0  ;;  %5767 = vmatpush3.msra.mxu0 %v6511_v58 }
0x1764   :  { %5760 = vmatpush3.msra.mxu1 %v6521_v60  ;;  %5768 = vmatprep.subr.mxu0 %v5972_v0 }
0x1765   :  { %5761 = vmatprep.subr.mxu1 %v5972_v0  ;;  %5769 = vmatpush3.msra.mxu0 %v6521_v60 }
0x1766   :  { %5762 = vmatpush3.msra.mxu1 %v6530_v41  ;;  %5770 = vmatprep.subr.mxu0 %v5972_v0 }
0x1767   :  { %5771 = vmatpush3.msra.mxu0 %v6530_v41  ;;  %5772 = vmatprep.mubr.msk.f32.mxu0 %vm5973_vm2, %v5972_v0 }
0x1768   :  { %5775 = vmatprep.subr.mxu1 %v5972_v0  ;;  %5784 = vmatprep.subr.mxu0 %v5972_v0 }
0x1821   :  { %v3234_v9 = vpop.f32.mrf.mxu1  ;;  %v3307_v10 = vpop.f32.mrf.mxu0 }
0x1822   :  { %v3308_v11 = vadd.f32 %v3307_v10, %v3234_v9 }
0x1823   :  { %v5747_v12 = vpop.f32.mrf.mxu1  ;;  %v5756_v13 = vpop.f32.mrf.mxu0 }
0x1824   :  { %v3311_v14 = vsel %vm123_vm3, %v3308_v11, 0.0 }
0x1825   :  { %v3312_v18 = vrot.slane %v3311_v14, 4 }
0x1827   :  { %v3313_v20 = vadd.f32 %v3312_v18, %v3311_v14 }
0x1829   :  { %v3314_v21 = vrot.slane %v3313_v20, 2 }
0x182b   :  { %v3315_v22 = vadd.f32 %v3314_v21, %v3313_v20 }
0x182d   :  { %v3316_v24 = vrot.slane %v3315_v22, 1 }
0x182f   :  { %v3317_v25 = vadd.f32 %v3316_v24, %v3315_v22 }
0x1831   :  { %5764 = vmatmul.mubr.msk.f32.vlgmr.msra.gmra.mxu1 %vm123_vm3, %v3317_v25 }
0x1832   :  { %5781 = vmatprep.mubr.msk.f32.mxu1 %vm5973_vm2, %v5972_v0  ;;  %5776 = vmatpush3.msra.mxu1 %v5128_v40 }
0x1833   :  { %5777 = vmatprep.subr.mxu1 %v5972_v0 }
0x1834   :  { %5778 = vmatpush3.msra.mxu1 %v5127_v43  ;;  %v5133_v43 = vld [vmem:[%s6957_s1 + $0xb0] sm:$0xff] }
0x1835   :  { %5779 = vmatprep.subr.mxu1 %v5972_v0 }
0x1836   :  { %5780 = vmatpush3.msra.mxu1 %v5126_v45 }
0x1837   :  { %5793 = vmatprep.subr.mxu1 %v5972_v0 }
0x18f1   :  { %v3387_v26 = vpop.f32.mrf.mxu1 }
0x18f2   :  { %v3391_v27 = vmul.f32 0.041666668, %v3387_v26  ;;  %v5140_v26 = vld [vmem:[%s6956_s3 + $0x238] sm:$0xff] }
0x18f3   :  { %v5765_v28 = vpop.f32.mrf.mxu1 }
0x18f4   :  { %v3395_v29 = vrot.slane %v3391_v27, %v6096_v32  ;;  %v5136_v27 = vld [vmem:[%s6956_s3 + $0x220] sm:$0xff]  ;;  %v5139_v28 = vld [vmem:[%s6956_s3 + $0x230] sm:$0xff] }
0x18f6   :  { %v3396_v30 = vsub.f32 %v3308_v11, %v3395_v29  ;;  %v5135_v29 = vld [vmem:[%s6956_s3 + $0x218] sm:$0xff] }
0x18f8   :  { %v3397_v31 = vmul.f32 %v3396_v30, %v3396_v30 }
0x18fa   :  { %v3398_v33 = vsel %vm123_vm3, %v3397_v31, 0.0  ;;  %v5134_v31 = vld [vmem:[%s6956_s3 + $0x210] sm:$0xff] }
0x18fb   :  { %v3399_v34 = vrot.slane %v3398_v33, 4 }
0x18fd   :  { %v3400_v35 = vadd.f32 %v3399_v34, %v3398_v33 }
0x18ff   :  { %v3401_v36 = vrot.slane %v3400_v35, 2 }
0x1901   :  { %v3402_v37 = vadd.f32 %v3401_v36, %v3400_v35 }
0x1903   :  { %v3403_v38 = vrot.slane %v3402_v37, 1 }
0x1905   :  { %v3404_v39 = vadd.f32 %v3403_v38, %v3402_v37 }
0x1907   :  { %5773 = vmatmul.mubr.msk.f32.vlgmr.msra.gmra.mxu0 %vm123_vm3, %v3404_v39 }
0x1908   :  { %5790 = vmatprep.mubr.msk.f32.mxu0 %vm5973_vm2, %v5972_v0  ;;  %5785 = vmatpush3.msra.mxu0 %v5124_v42  ;;  %v5137_v42 = vld [vmem:[%s6957_s1 + $0xb8] sm:$0xff] }
0x1909   :  { %5786 = vmatprep.subr.mxu0 %v5972_v0 }
0x190a   :  { %5787 = vmatpush3.msra.mxu0 %v5123_v44 }
0x190b   :  { %5788 = vmatprep.subr.mxu0 %v5972_v0 }
0x190c   :  { %5789 = vmatpush3.msra.mxu0 %v5122_v46 }
0x190d   :  { %5802 = vmatprep.subr.mxu0 %v5972_v0 }
0x19c7   :  { %v3474_v47 = vpop.f32.mrf.mxu0 }
0x19c8   :  { %v3478_v48 = vmul.f32 0.041666668, %v3474_v47 }
0x19c9   :  { %v5774_v49 = vpop.f32.mrf.mxu0 }
0x19ca   :  { %v3479_v50 = vadd.f32 1e-05, %v3478_v48 }
0x19cc   :  { %5957 = vrsqrt.f32 %v3479_v50 }
0x19d9   :  { %v5958_v51 = vpop.eup %5957 }
0x19da   :  { %v3484_v52 = vrot.slane %v5958_v51, %v6096_v32 }
0x19dc   :  { %v3485_v53 = vmul.f32 %v3484_v52, %v3396_v30  ;;  %v5138_v30 = vld [vmem:[%s6956_s3 + $0x228] sm:$0xff] }
0x19de   :  { %v3486_v54 = vmul.f32 %v6576_v19, %v3485_v53 }
0x19e0   :  { %v3487_v15 = vadd.f32 %v6588_v23, %v3486_v54 }
0x19e2   :  { %v3497_v57 = vmul.f32 %v5125_v55, %v3487_v15  ;;  %v3490_v59 = vmul.f32 %v5121_v56, %v3487_v15 }
0x19e4   :  { %5782 = vmatmul.mubr.msk.f32.vlgmr.msra.gmra.mxu1 %vm123_vm3, %v3497_v57  ;;  %5791 = vmatmul.mubr.msk.f32.vlgmr.msra.gmra.mxu0 %vm123_vm3, %v3490_v59 }
0x19e5   :  { %5794 = vmatpush3.msra.mxu1 %v6511_v58  ;;  %5799 = vmatprep.mubr.msk.f32.mxu1 %vm5973_vm2, %v5972_v0 }
0x19e6   :  { %5795 = vmatprep.subr.mxu1 %v5972_v0  ;;  %5803 = vmatpush3.msra.mxu0 %v6511_v58 }
0x19e7   :  { %5796 = vmatpush3.msra.mxu1 %v6521_v60  ;;  %5804 = vmatprep.subr.mxu0 %v5972_v0 }
0x19e8   :  { %5797 = vmatprep.subr.mxu1 %v5972_v0  ;;  %5805 = vmatpush3.msra.mxu0 %v6521_v60 }
0x19e9   :  { %5798 = vmatpush3.msra.mxu1 %v6530_v41  ;;  %5806 = vmatprep.subr.mxu0 %v5972_v0 }
0x19ea   :  { %5807 = vmatpush3.msra.mxu0 %v6530_v41  ;;  %5808 = vmatprep.mubr.msk.f32.mxu0 %vm5973_vm2, %v5972_v0 }
0x19eb   :  { %5811 = vmatprep.subr.mxu1 %v5972_v0  ;;  %5820 = vmatprep.subr.mxu0 %v5972_v0 }
0x1aa4   :  { %v3571_v61 = vpop.f32.mrf.mxu1  ;;  %v3644_v62 = vpop.f32.mrf.mxu0 }
0x1aa5   :  { %v3645_v16 = vadd.f32 %v3644_v62, %v3571_v61 }
0x1aa6   :  { %v5783_v63 = vpop.f32.mrf.mxu1  ;;  %v5792_v1 = vpop.f32.mrf.mxu0 }
0x1aa7   :  { %v3648_v2 = vsel %vm123_vm3, %v3645_v16, 0.0 }
0x1aa8   :  { %v3649_v3 = vrot.slane %v3648_v2, 4 }
0x1aaa   :  { %v3650_v4 = vadd.f32 %v3649_v3, %v3648_v2 }
0x1aac   :  { %v3651_v17 = vrot.slane %v3650_v4, 2 }
0x1aae   :  { %v3652_v5 = vadd.f32 %v3651_v17, %v3650_v4 }
0x1ab0   :  { %v3653_v6 = vrot.slane %v3652_v5, 1 }
0x1ab2   :  { %v3654_v7 = vadd.f32 %v3653_v6, %v3652_v5 }
0x1ab4   :  { %5800 = vmatmul.mubr.msk.f32.vlgmr.msra.gmra.mxu1 %vm123_vm3, %v3654_v7 }
0x1ab5   :  { %5817 = vmatprep.mubr.msk.f32.mxu1 %vm5973_vm2, %v5972_v0  ;;  %5812 = vmatpush3.msra.mxu1 %v5140_v26 }
0x1ab6   :  { %5813 = vmatprep.subr.mxu1 %v5972_v0 }
0x1ab7   :  { %5814 = vmatpush3.msra.mxu1 %v5139_v28  ;;  %v5145_v28 = vld [vmem:[%s6957_s1 + $0xc0] sm:$0xff] }
0x1ab8   :  { %5815 = vmatprep.subr.mxu1 %v5972_v0 }
0x1ab9   :  { %5816 = vmatpush3.msra.mxu1 %v5138_v30 }
0x1aba   :  { %5829 = vmatprep.subr.mxu1 %v5972_v0 }
0x1b74   :  { %v3724_v8 = vpop.f32.mrf.mxu1 }
0x1b75   :  { %v3728_v9 = vmul.f32 0.041666668, %v3724_v8  ;;  %v5152_v8 = vld [vmem:[%s6956_s3 + $0x268] sm:$0xff] }
0x1b76   :  { %v5801_v10 = vpop.f32.mrf.mxu1 }
0x1b77   :  { %v3732_v11 = vrot.slane %v3728_v9, %v6096_v32  ;;  %v5148_v9 = vld [vmem:[%s6956_s3 + $0x250] sm:$0xff]  ;;  %v5151_v10 = vld [vmem:[%s6956_s3 + $0x260] sm:$0xff] }
0x1b79   :  { %v3733_v12 = vsub.f32 %v3645_v16, %v3732_v11  ;;  %v5147_v11 = vld [vmem:[%s6956_s3 + $0x248] sm:$0xff] }
0x1b7b   :  { %v3734_v13 = vmul.f32 %v3733_v12, %v3733_v12 }
0x1b7d   :  { %v3735_v14 = vsel %vm123_vm3, %v3734_v13, 0.0  ;;  %v5146_v13 = vld [vmem:[%s6956_s3 + $0x240] sm:$0xff] }
0x1b7e   :  { %v3736_v18 = vrot.slane %v3735_v14, 4 }
0x1b80   :  { %v3737_v20 = vadd.f32 %v3736_v18, %v3735_v14 }
0x1b82   :  { %v3738_v21 = vrot.slane %v3737_v20, 2 }
0x1b84   :  { %v3739_v22 = vadd.f32 %v3738_v21, %v3737_v20 }
0x1b86   :  { %v3740_v24 = vrot.slane %v3739_v22, 1 }
0x1b88   :  { %v3741_v25 = vadd.f32 %v3740_v24, %v3739_v22 }
0x1b8a   :  { %5809 = vmatmul.mubr.msk.f32.vlgmr.msra.gmra.mxu0 %vm123_vm3, %v3741_v25 }
0x1b8b   :  { %5826 = vmatprep.mubr.msk.f32.mxu0 %vm5973_vm2, %v5972_v0  ;;  %5821 = vmatpush3.msra.mxu0 %v5136_v27  ;;  %v5149_v27 = vld [vmem:[%s6957_s1 + $0xc8] sm:$0xff] }
0x1b8c   :  { %5822 = vmatprep.subr.mxu0 %v5972_v0 }
0x1b8d   :  { %5823 = vmatpush3.msra.mxu0 %v5135_v29 }
0x1b8e   :  { %5824 = vmatprep.subr.mxu0 %v5972_v0 }
0x1b8f   :  { %5825 = vmatpush3.msra.mxu0 %v5134_v31 }
0x1b90   :  { %5838 = vmatprep.subr.mxu0 %v5972_v0 }
0x1c4a   :  { %v3811_v33 = vpop.f32.mrf.mxu0 }
0x1c4b   :  { %v3815_v34 = vmul.f32 0.041666668, %v3811_v33 }
0x1c4c   :  { %v5810_v35 = vpop.f32.mrf.mxu0 }
0x1c4d   :  { %v3816_v36 = vadd.f32 1e-05, %v3815_v34 }
0x1c4f   :  { %5959 = vrsqrt.f32 %v3816_v36 }
0x1c5c   :  { %v5960_v37 = vpop.eup %5959 }
0x1c5d   :  { %v3821_v38 = vrot.slane %v5960_v37, %v6096_v32 }
0x1c5f   :  { %v3822_v39 = vmul.f32 %v3821_v38, %v3733_v12  ;;  %v5150_v12 = vld [vmem:[%s6956_s3 + $0x258] sm:$0xff] }
0x1c61   :  { %v3823_v40 = vmul.f32 %v6576_v19, %v3822_v39 }
0x1c63   :  { %v3824_v44 = vadd.f32 %v6588_v23, %v3823_v40 }
0x1c65   :  { %v3834_v45 = vmul.f32 %v5137_v42, %v3824_v44  ;;  %v3827_v46 = vmul.f32 %v5133_v43, %v3824_v44 }
0x1c67   :  { %5818 = vmatmul.mubr.msk.f32.vlgmr.msra.gmra.mxu1 %vm123_vm3, %v3834_v45  ;;  %5827 = vmatmul.mubr.msk.f32.vlgmr.msra.gmra.mxu0 %vm123_vm3, %v3827_v46 }
0x1c68   :  { %5830 = vmatpush3.msra.mxu1 %v6511_v58  ;;  %5835 = vmatprep.mubr.msk.f32.mxu1 %vm5973_vm2, %v5972_v0 }
0x1c69   :  { %5831 = vmatprep.subr.mxu1 %v5972_v0  ;;  %5839 = vmatpush3.msra.mxu0 %v6511_v58 }
0x1c6a   :  { %5832 = vmatpush3.msra.mxu1 %v6521_v60  ;;  %5840 = vmatprep.subr.mxu0 %v5972_v0 }
0x1c6b   :  { %5833 = vmatprep.subr.mxu1 %v5972_v0  ;;  %5841 = vmatpush3.msra.mxu0 %v6521_v60 }
0x1c6c   :  { %5834 = vmatpush3.msra.mxu1 %v6530_v41  ;;  %5842 = vmatprep.subr.mxu0 %v5972_v0 }
0x1c6d   :  { %5843 = vmatpush3.msra.mxu0 %v6530_v41  ;;  %5844 = vmatprep.mubr.msk.f32.mxu0 %vm5973_vm2, %v5972_v0 }
0x1c6e   :  { %5847 = vmatprep.subr.mxu1 %v5972_v0  ;;  %5856 = vmatprep.subr.mxu0 %v5972_v0 }
0x1d27   :  { %v3908_v47 = vpop.f32.mrf.mxu1  ;;  %v3981_v48 = vpop.f32.mrf.mxu0 }
0x1d28   :  { %v3982_v49 = vadd.f32 %v3981_v48, %v3908_v47 }
0x1d29   :  { %v5819_v50 = vpop.f32.mrf.mxu1  ;;  %v5828_v51 = vpop.f32.mrf.mxu0 }
0x1d2a   :  { %v3985_v52 = vsel %vm123_vm3, %v3982_v49, 0.0 }
0x1d2b   :  { %v3986_v53 = vrot.slane %v3985_v52, 4 }
0x1d2d   :  { %v3987_v54 = vadd.f32 %v3986_v53, %v3985_v52 }
0x1d2f   :  { %v3988_v55 = vrot.slane %v3987_v54, 2 }
0x1d31   :  { %v3989_v56 = vadd.f32 %v3988_v55, %v3987_v54 }
0x1d33   :  { %v3990_v15 = vrot.slane %v3989_v56, 1 }
0x1d35   :  { %v3991_v57 = vadd.f32 %v3990_v15, %v3989_v56 }
0x1d37   :  { %5836 = vmatmul.mubr.msk.f32.vlgmr.msra.gmra.mxu1 %vm123_vm3, %v3991_v57 }
0x1d38   :  { %5853 = vmatprep.mubr.msk.f32.mxu1 %vm5973_vm2, %v5972_v0  ;;  %5848 = vmatpush3.msra.mxu1 %v5152_v8 }
0x1d39   :  { %5849 = vmatprep.subr.mxu1 %v5972_v0 }
0x1d3a   :  { %5850 = vmatpush3.msra.mxu1 %v5151_v10  ;;  %v5157_v10 = vld [vmem:[%s6957_s1 + $0xd0] sm:$0xff] }
0x1d3b   :  { %5851 = vmatprep.subr.mxu1 %v5972_v0 }
0x1d3c   :  { %5852 = vmatpush3.msra.mxu1 %v5150_v12 }
0x1d3d   :  { %5865 = vmatprep.subr.mxu1 %v5972_v0 }
0x1df7   :  { %v4061_v59 = vpop.f32.mrf.mxu1 }
0x1df8   :  { %v4065_v61 = vmul.f32 0.041666668, %v4061_v59  ;;  %v5164_v59 = vld [vmem:[%s6956_s3 + $0x298] sm:$0xff] }
0x1df9   :  { %v5837_v62 = vpop.f32.mrf.mxu1 }
0x1dfa   :  { %v4069_v16 = vrot.slane %v4065_v61, %v6096_v32  ;;  %v5160_v61 = vld [vmem:[%s6956_s3 + $0x280] sm:$0xff]  ;;  %v5163_v62 = vld [vmem:[%s6956_s3 + $0x290] sm:$0xff] }
0x1dfc   :  { %v4070_v63 = vsub.f32 %v3982_v49, %v4069_v16  ;;  %v5159_v16 = vld [vmem:[%s6956_s3 + $0x278] sm:$0xff] }
0x1dfe   :  { %v4071_v1 = vmul.f32 %v4070_v63, %v4070_v63 }
0x1e00   :  { %v4072_v2 = vsel %vm123_vm3, %v4071_v1, 0.0  ;;  %v5158_v1 = vld [vmem:[%s6956_s3 + $0x270] sm:$0xff] }
0x1e01   :  { %v4073_v3 = vrot.slane %v4072_v2, 4 }
0x1e03   :  { %v4074_v4 = vadd.f32 %v4073_v3, %v4072_v2 }
0x1e05   :  { %v4075_v17 = vrot.slane %v4074_v4, 2 }
0x1e07   :  { %v4076_v5 = vadd.f32 %v4075_v17, %v4074_v4 }
0x1e09   :  { %v4077_v6 = vrot.slane %v4076_v5, 1 }
0x1e0b   :  { %v4078_v7 = vadd.f32 %v4077_v6, %v4076_v5 }
0x1e0d   :  { %5845 = vmatmul.mubr.msk.f32.vlgmr.msra.gmra.mxu0 %vm123_vm3, %v4078_v7 }
0x1e0e   :  { %5862 = vmatprep.mubr.msk.f32.mxu0 %vm5973_vm2, %v5972_v0  ;;  %5857 = vmatpush3.msra.mxu0 %v5148_v9  ;;  %v5161_v9 = vld [vmem:[%s6957_s1 + $0xd8] sm:$0xff] }
0x1e0f   :  { %5858 = vmatprep.subr.mxu0 %v5972_v0 }
0x1e10   :  { %5859 = vmatpush3.msra.mxu0 %v5147_v11 }
0x1e11   :  { %5860 = vmatprep.subr.mxu0 %v5972_v0 }
0x1e12   :  { %5861 = vmatpush3.msra.mxu0 %v5146_v13 }
0x1e13   :  { %5874 = vmatprep.subr.mxu0 %v5972_v0 }
0x1ecd   :  { %v4148_v14 = vpop.f32.mrf.mxu0 }
0x1ece   :  { %v4152_v18 = vmul.f32 0.041666668, %v4148_v14 }
0x1ecf   :  { %v5846_v20 = vpop.f32.mrf.mxu0 }
0x1ed0   :  { %v4153_v21 = vadd.f32 1e-05, %v4152_v18 }
0x1ed2   :  { %5961 = vrsqrt.f32 %v4153_v21 }
0x1edf   :  { %v5962_v22 = vpop.eup %5961 }
0x1ee0   :  { %v4158_v24 = vrot.slane %v5962_v22, %v6096_v32 }
0x1ee2   :  { %v4159_v25 = vmul.f32 %v4158_v24, %v4070_v63  ;;  %v5162_v63 = vld [vmem:[%s6956_s3 + $0x288] sm:$0xff] }
0x1ee4   :  { %v4160_v26 = vmul.f32 %v6576_v19, %v4159_v25 }
0x1ee6   :  { %v4161_v29 = vadd.f32 %v6588_v23, %v4160_v26 }
0x1ee8   :  { %v4171_v30 = vmul.f32 %v5149_v27, %v4161_v29  ;;  %v4164_v31 = vmul.f32 %v5145_v28, %v4161_v29 }
0x1eea   :  { %5854 = vmatmul.mubr.msk.f32.vlgmr.msra.gmra.mxu1 %vm123_vm3, %v4171_v30  ;;  %5863 = vmatmul.mubr.msk.f32.vlgmr.msra.gmra.mxu0 %vm123_vm3, %v4164_v31 }
0x1eeb   :  { %5866 = vmatpush3.msra.mxu1 %v6511_v58  ;;  %5871 = vmatprep.mubr.msk.f32.mxu1 %vm5973_vm2, %v5972_v0 }
0x1eec   :  { %5867 = vmatprep.subr.mxu1 %v5972_v0  ;;  %5875 = vmatpush3.msra.mxu0 %v6511_v58 }
0x1eed   :  { %5868 = vmatpush3.msra.mxu1 %v6521_v60  ;;  %5876 = vmatprep.subr.mxu0 %v5972_v0 }
0x1eee   :  { %5869 = vmatprep.subr.mxu1 %v5972_v0  ;;  %5877 = vmatpush3.msra.mxu0 %v6521_v60 }
0x1eef   :  { %5870 = vmatpush3.msra.mxu1 %v6530_v41  ;;  %5878 = vmatprep.subr.mxu0 %v5972_v0 }
0x1ef0   :  { %5879 = vmatpush3.msra.mxu0 %v6530_v41  ;;  %5880 = vmatprep.mubr.msk.f32.mxu0 %vm5973_vm2, %v5972_v0 }
0x1ef1   :  { %5883 = vmatprep.subr.mxu1 %v5972_v0  ;;  %5892 = vmatprep.subr.mxu0 %v5972_v0 }
0x1faa   :  { %v4245_v33 = vpop.f32.mrf.mxu1  ;;  %v4318_v34 = vpop.f32.mrf.mxu0 }
0x1fab   :  { %v4319_v35 = vadd.f32 %v4318_v34, %v4245_v33 }
0x1fac   :  { %v5855_v36 = vpop.f32.mrf.mxu1  ;;  %v5864_v37 = vpop.f32.mrf.mxu0 }
0x1fad   :  { %v4322_v38 = vsel %vm123_vm3, %v4319_v35, 0.0 }
0x1fae   :  { %v4323_v39 = vrot.slane %v4322_v38, 4 }
0x1fb0   :  { %v4324_v40 = vadd.f32 %v4323_v39, %v4322_v38 }
0x1fb2   :  { %v4325_v42 = vrot.slane %v4324_v40, 2 }
0x1fb4   :  { %v4326_v43 = vadd.f32 %v4325_v42, %v4324_v40 }
0x1fb6   :  { %v4327_v44 = vrot.slane %v4326_v43, 1 }
0x1fb8   :  { %v4328_v45 = vadd.f32 %v4327_v44, %v4326_v43  ;;  %v5173_v43 = vld [vmem:[%s6960_s4 + $0x28] sm:$0xff]  ;;  %v4841_v44 = vld [vmem:[%s6960_s4 + $0x10] sm:$0xff] }
0x1fba   :  { %5872 = vmatmul.mubr.msk.f32.vlgmr.msra.gmra.mxu1 %vm123_vm3, %v4328_v45  ;;  %v5172_v45 = vld [vmem:[%s6960_s4 + $0x20] sm:$0xff] }
0x1fbb   :  { %5889 = vmatprep.mubr.msk.f32.mxu1 %vm5973_vm2, %v5972_v0  ;;  %5884 = vmatpush3.msra.mxu1 %v5164_v59 }
0x1fbc   :  { %5885 = vmatprep.subr.mxu1 %v5972_v0 }
0x1fbd   :  { %5886 = vmatpush3.msra.mxu1 %v5163_v62 }
0x1fbe   :  { %5887 = vmatprep.subr.mxu1 %v5972_v0 }
0x1fbf   :  { %5888 = vmatpush3.msra.mxu1 %v5162_v63 }
0x1fc0   :  { %5901 = vmatprep.subr.mxu1 %v5972_v0 }
0x207a   :  { %v4398_v46 = vpop.f32.mrf.mxu1 }
0x207b   :  { %v4402_v47 = vmul.f32 0.041666668, %v4398_v46  ;;  %v4840_v46 = vld [vmem:[%s6960_s4 + $0x8] sm:$0xff] }
0x207c   :  { %v5873_v48 = vpop.f32.mrf.mxu1 }
0x207d   :  { %v4406_v49 = vrot.slane %v4402_v47, %v6096_v32  ;;  %v5171_v47 = vld [vmem:[%s6960_s4 + $0x18] sm:$0xff]  ;;  %v4839_v48 = vld [vmem:[%s6960_s4] sm:$0xff] }
0x207f   :  { %v4407_v50 = vsub.f32 %v4319_v35, %v4406_v49 }
0x2081   :  { %v4408_v51 = vmul.f32 %v4407_v50, %v4407_v50 }
0x2083   :  { %v4409_v52 = vsel %vm123_vm3, %v4408_v51, 0.0 }
0x2084   :  { %v4410_v53 = vrot.slane %v4409_v52, 4 }
0x2086   :  { %v4411_v54 = vadd.f32 %v4410_v53, %v4409_v52 }
0x2088   :  { %v4412_v55 = vrot.slane %v4411_v54, 2 }
0x208a   :  { %v4413_v56 = vadd.f32 %v4412_v55, %v4411_v54 }
0x208c   :  { %v4414_v15 = vrot.slane %v4413_v56, 1 }
0x208e   :  { %v4415_v57 = vadd.f32 %v4414_v15, %v4413_v56  ;;  %v5170_v15 = vld [vmem:[%s6957_s1 + $0xe8] sm:$0xff] }
0x2090   :  { %5881 = vmatmul.mubr.msk.f32.vlgmr.msra.gmra.mxu0 %vm123_vm3, %v4415_v57 }
0x2091   :  { %5898 = vmatprep.mubr.msk.f32.mxu0 %vm5973_vm2, %v5972_v0  ;;  %5893 = vmatpush3.msra.mxu0 %v5160_v61 }
0x2092   :  { %5894 = vmatprep.subr.mxu0 %v5972_v0 }
0x2093   :  { %5895 = vmatpush3.msra.mxu0 %v5159_v16 }
0x2094   :  { %5896 = vmatprep.subr.mxu0 %v5972_v0 }
0x2095   :  { %5897 = vmatpush3.msra.mxu0 %v5158_v1 }
0x2096   :  { %5910 = vmatprep.subr.mxu0 %v5972_v0 }
0x2150   :  { %v4485_v2 = vpop.f32.mrf.mxu0 }
0x2151   :  { %v4489_v3 = vmul.f32 0.041666668, %v4485_v2 }
0x2152   :  { %v5882_v4 = vpop.f32.mrf.mxu0 }
0x2153   :  { %v4490_v17 = vadd.f32 1e-05, %v4489_v3 }
0x2155   :  { %5963 = vrsqrt.f32 %v4490_v17 }
0x2162   :  { %v5964_v5 = vpop.eup %5963 }
0x2163   :  { %v4495_v6 = vrot.slane %v5964_v5, %v6096_v32 }
0x2165   :  { %v4496_v7 = vmul.f32 %v4495_v6, %v4407_v50 }
0x2167   :  { %v4497_v8 = vmul.f32 %v6576_v19, %v4496_v7 }
0x2169   :  { %v4498_v11 = vadd.f32 %v6588_v23, %v4497_v8 }
0x216b   :  { %v4508_v12 = vmul.f32 %v5161_v9, %v4498_v11  ;;  %v4501_v13 = vmul.f32 %v5157_v10, %v4498_v11 }
0x216d   :  { %5890 = vmatmul.mubr.msk.f32.vlgmr.msra.gmra.mxu1 %vm123_vm3, %v4508_v12  ;;  %5899 = vmatmul.mubr.msk.f32.vlgmr.msra.gmra.mxu0 %vm123_vm3, %v4501_v13 }
0x216e   :  { %5902 = vmatpush3.msra.mxu1 %v6511_v58  ;;  %5907 = vmatprep.mubr.msk.f32.mxu1 %vm5973_vm2, %v5972_v0 }
0x216f   :  { %5903 = vmatprep.subr.mxu1 %v5972_v0  ;;  %5911 = vmatpush3.msra.mxu0 %v6511_v58 }
0x2170   :  { %5904 = vmatpush3.msra.mxu1 %v6521_v60  ;;  %5912 = vmatprep.subr.mxu0 %v5972_v0 }
0x2171   :  { %5905 = vmatprep.subr.mxu1 %v5972_v0  ;;  %5913 = vmatpush3.msra.mxu0 %v6521_v60 }
0x2172   :  { %5906 = vmatpush3.msra.mxu1 %v6530_v41  ;;  %5914 = vmatprep.subr.mxu0 %v5972_v0 }
0x2173   :  { %5915 = vmatpush3.msra.mxu0 %v6530_v41  ;;  %5916 = vmatprep.mubr.msk.f32.mxu0 %vm5973_vm2, %v5972_v0 }
0x2174   :  { %5919 = vmatprep.subr.mxu1 %v5972_v0  ;;  %5928 = vmatprep.subr.mxu0 %v5972_v0 }
0x222d   :  { %v4582_v58 = vpop.f32.mrf.mxu1  ;;  %v4655_v14 = vpop.f32.mrf.mxu0 }
0x222e   :  { %v4656_v18 = vadd.f32 %v4655_v14, %v4582_v58 }
0x222f   :  { %v5891_v20 = vpop.f32.mrf.mxu1  ;;  %v5900_v21 = vpop.f32.mrf.mxu0 }
0x2230   :  { %v4659_v60 = vsel %vm123_vm3, %v4656_v18, 0.0 }
0x2231   :  { %v4660_v22 = vrot.slane %v4659_v60, 4 }
0x2233   :  { %v4661_v24 = vadd.f32 %v4660_v22, %v4659_v60 }
0x2235   :  { %v4662_v25 = vrot.slane %v4661_v24, 2 }
0x2237   :  { %v4663_v26 = vadd.f32 %v4662_v25, %v4661_v24 }
0x2239   :  { %v4664_v27 = vrot.slane %v4663_v26, 1 }
0x223b   :  { %v4665_v41 = vadd.f32 %v4664_v27, %v4663_v26 }
0x223d   :  { %5908 = vmatmul.mubr.msk.f32.vlgmr.msra.gmra.mxu1 %vm123_vm3, %v4665_v41 }
0x223e   :  { %5925 = vmatprep.mubr.msk.f32.mxu1 %vm5973_vm2, %v5972_v0  ;;  %5920 = vmatpush3.msra.mxu1 %v5173_v43 }
0x223f   :  { %5921 = vmatprep.subr.mxu1 %v5972_v0 }
0x2240   :  { %5922 = vmatpush3.msra.mxu1 %v5172_v45 }
0x2241   :  { %5923 = vmatprep.subr.mxu1 %v5972_v0 }
0x2242   :  { %5924 = vmatpush3.msra.mxu1 %v5171_v47 }
0x22fd   :  { %v4735_v28 = vpop.f32.mrf.mxu1 }
0x22fe   :  { %v4739_v29 = vmul.f32 0.041666668, %v4735_v28 }
0x22ff   :  { %v5909_v30 = vpop.f32.mrf.mxu1 }
0x2300   :  { %v4743_v31 = vrot.slane %v4739_v29, %v6096_v32 }
0x2302   :  { %v4744_v33 = vsub.f32 %v4656_v18, %v4743_v31 }
0x2304   :  { %v4745_v34 = vmul.f32 %v4744_v33, %v4744_v33 }
0x2306   :  { %v4746_v35 = vsel %vm123_vm3, %v4745_v34, 0.0 }
0x2307   :  { %v4747_v36 = vrot.slane %v4746_v35, 4 }
0x2309   :  { %v4748_v37 = vadd.f32 %v4747_v36, %v4746_v35 }
0x230b   :  { %v4749_v38 = vrot.slane %v4748_v37, 2 }
0x230d   :  { %v4750_v39 = vadd.f32 %v4749_v38, %v4748_v37 }
0x230f   :  { %v4751_v40 = vrot.slane %v4750_v39, 1 }
0x2311   :  { %v4752_v42 = vadd.f32 %v4751_v40, %v4750_v39 }
0x2313   :  { %5917 = vmatmul.mubr.msk.f32.vlgmr.msra.gmra.mxu0 %vm123_vm3, %v4752_v42 }
0x2314   :  { %5934 = vmatprep.mubr.msk.f32.mxu0 %vm5973_vm2, %v5972_v0  ;;  %5929 = vmatpush3.msra.mxu0 %v4841_v44 }
0x2315   :  { %5930 = vmatprep.subr.mxu0 %v5972_v0 }
0x2316   :  { %5931 = vmatpush3.msra.mxu0 %v4840_v46 }
0x2317   :  { %5932 = vmatprep.subr.mxu0 %v5972_v0  ;;  %v5169_v0 = vld [vmem:[%s6957_s1 + $0xe0] sm:$0xff] }
0x2318   :  { %5933 = vmatpush3.msra.mxu0 %v4839_v48 }
0x23d3   :  { %v4822_v49 = vpop.f32.mrf.mxu0 }
0x23d4   :  { %v4826_v50 = vmul.f32 0.041666668, %v4822_v49 }
0x23d5   :  { %v5918_v51 = vpop.f32.mrf.mxu0 }
0x23d6   :  { %v4827_v52 = vadd.f32 1e-05, %v4826_v50 }
0x23d8   :  { %5965 = vrsqrt.f32 %v4827_v52 }
0x23e5   :  { %v5966_v53 = vpop.eup %5965 }
0x23e6   :  { %v4832_v54 = vrot.slane %v5966_v53, %v6096_v32 }
0x23e8   :  { %v4833_v55 = vmul.f32 %v4832_v54, %v4744_v33 }
0x23ea   :  { %v4834_v56 = vmul.f32 %v6576_v19, %v4833_v55 }
0x23ec   :  { %v4835_v57 = vadd.f32 %v6588_v23, %v4834_v56 }
0x23ee   :  { %v4844_v59 = vmul.f32 %v5170_v15, %v4835_v57  ;;  %v4838_v61 = vmul.f32 %v5169_v0, %v4835_v57 }
0x23f0   :  { %5926 = vmatmul.mubr.msk.f32.vlgmr.msra.gmra.mxu1 %vm123_vm3, %v4844_v59  ;;  %5935 = vmatmul.mubr.msk.f32.vlgmr.msra.gmra.mxu0 %vm123_vm3, %v4838_v61 }
0x24b0   :  { %v4918_v32 = vpop.f32.mrf.mxu1  ;;  %v4991_v62 = vpop.f32.mrf.mxu0 }
0x24b1   :  { %v4992_v19 = vadd.f32 %v4991_v62, %v4918_v32 }
0x24b2   :  { %v5927_v16 = vpop.f32.mrf.mxu1  ;;  %v5936_v63 = vpop.f32.mrf.mxu0 }
0x24b3   :  { %4996 = vst.msk [vmem:[%s6961_s7] sm:$0xff] %vm4995_vm4, %v4992_v19 }

</bundles_post_ra>
